<compile_context>
chip_gen: v7x
topology: tpu7x:2x2x1
jax: 0.10.0
libtpu: 0.0.40
codegen_flags: <defaults>
</compile_context>

<pallas_src>
import functools

import numpy as np
import jax
import jax.numpy as jnp
from jax.experimental import pallas as pl
from jax.experimental.pallas import tpu as pltpu


def _round_up(v, m):
    return ((v + m - 1) // m) * m


def _choose_tm(m, k, cap=1024):
    """Pick an M tile: multiple of 16 (bf16 sublanes), divides M when possible
    (avoids pad+slice HBM copies), <= cap, and <= M//2 when M is large enough
    so the 'parallel' grid has >= 2 steps (lets v7x use both TensorCores)."""
    eff_cap = min(cap, m // 2) if m >= 64 else m
    eff_cap = max(16, eff_cap)
    if m <= eff_cap:
        return m
    for t in range(eff_cap - eff_cap % 16, 15, -16):
        if m % t == 0:
            return t
    # No multiple-of-16 divisor of M: single step if the block is small
    # (common for odd small batches), otherwise fall back to a padded tile.
    if m * k * 2 <= (4 << 20):
        return m
    return eff_cap - eff_cap % 16


# ----------------------------------------------------------------------------
# Pallas kernels
# ----------------------------------------------------------------------------
def _matmul_bias_act_kernel(x_ref, w_ref, b_ref, o_ref, *, relu):
    # bf16 x bf16 -> f32 accumulation on the MXU; bias + ReLU in f32.
    acc = jnp.dot(x_ref[...], w_ref[...], preferred_element_type=jnp.float32)
    acc = acc + b_ref[...]
    if relu:
        acc = jnp.maximum(acc, 0.0)
    o_ref[...] = acc.astype(o_ref.dtype)


def _fc_critic_kernel(x_ref, wf_ref, bf_ref, wc_ref, bc_ref, h_ref, c_ref):
    # hidden = relu(x @ Wfc + bfc)   (f32 accumulation on the MXU)
    h = jnp.dot(x_ref[...], wf_ref[...], preferred_element_type=jnp.float32)
    h = jnp.maximum(h + bf_ref[...], 0.0)
    h_ref[...] = h.astype(h_ref.dtype)
    # critic = <hidden, w_c> + b_c as a VPU/XLU cross-lane reduction over the
    # f32 hidden (an N=1 MXU matmul would waste 127/255 of the MXU columns and
    # force an extra f32->bf16 cast of hidden).  wc_ref is a (1, H) f32 row.
    c = jnp.sum(h * wc_ref[...], axis=-1, keepdims=True) + bc_ref[...]
    c_ref[...] = c.astype(c_ref.dtype)


# ----------------------------------------------------------------------------
# Pallas wrappers (M-tiled parallel grid, weights resident, exact K)
# ----------------------------------------------------------------------------
def matmul_bias_act(x, w, b, *, relu, out_dtype, tm_cap=1024):
    """act(x @ w + b).  x: (M, K) bf16, w: (K, N) bf16, b: (1, N) f32."""
    m, k = x.shape
    kw, n = w.shape
    assert k == kw, (k, kw)
    tm = _choose_tm(m, k, tm_cap)
    mp = _round_up(m, tm)
    if mp != m:                       # rare fallback (no nice divisor of M)
        x = jnp.pad(x, ((0, mp - m), (0, 0)))

    out = pl.pallas_call(
        functools.partial(_matmul_bias_act_kernel, relu=relu),
        out_shape=jax.ShapeDtypeStruct((mp, n), out_dtype),
        grid=(mp // tm,),
        in_specs=[
            pl.BlockSpec((tm, k), lambda i: (i, 0)),
            pl.BlockSpec((k, n), lambda i: (0, 0)),    # weight stays resident
            pl.BlockSpec((1, n), lambda i: (0, 0)),
        ],
        out_specs=pl.BlockSpec((tm, n), lambda i: (i, 0)),
        compiler_params=pltpu.CompilerParams(
            dimension_semantics=("parallel",)),
    )(x, w, b)
    return out[:m] if mp != m else out


def fc_critic(x, wf, bf, wc, bc, *, tm_cap=512):
    """Fused hidden = relu(x@Wfc+bfc) and critic = hidden@wc^T + bc.

    x: (M, 1568) bf16, wf: (1568, 512) bf16, bf: (1, 512) f32,
    wc: (1, 512) f32 row, bc: (1, 1) f32.  Outputs f32 (module fidelity)."""
    m, k = x.shape
    kw, h = wf.shape
    assert k == kw, (k, kw)
    tm = _choose_tm(m, k, tm_cap)
    mp = _round_up(m, tm)
    if mp != m:
        x = jnp.pad(x, ((0, mp - m), (0, 0)))

    hidden, critic = pl.pallas_call(
        _fc_critic_kernel,
        out_shape=(jax.ShapeDtypeStruct((mp, h), jnp.float32),
                   jax.ShapeDtypeStruct((mp, 1), jnp.float32)),
        grid=(mp // tm,),
        in_specs=[
            pl.BlockSpec((tm, k), lambda i: (i, 0)),
            pl.BlockSpec((k, h), lambda i: (0, 0)),
            pl.BlockSpec((1, h), lambda i: (0, 0)),
            pl.BlockSpec((1, h), lambda i: (0, 0)),
            pl.BlockSpec((1, 1), lambda i: (0, 0)),
        ],
        out_specs=(pl.BlockSpec((tm, h), lambda i: (i, 0)),
                   pl.BlockSpec((tm, 1), lambda i: (i, 0))),
        compiler_params=pltpu.CompilerParams(
            dimension_semantics=("parallel",)),
    )(x, wf, bf, wc, bc)
    if mp != m:
        hidden, critic = hidden[:m], critic[:m]
    return hidden, critic


# ----------------------------------------------------------------------------
# im2col glue (NHWC, data movement only; matmuls happen in the Pallas kernels)
# ----------------------------------------------------------------------------
def im2col_nhwc(x, kh, kw, stride):
    """x: (N, H, W, C) -> patches (N*OH*OW, kh*kw*C) in (kh, kw, C) K-order."""
    n, h, w, c = x.shape
    oh = (h - kh) // stride + 1
    ow = (w - kw) // stride + 1
    cols = []
    for i in range(kh):
        for j in range(kw):
            cols.append(x[:, i:i + stride * oh:stride,
                          j:j + stride * ow:stride, :])      # (n, oh, ow, c)
    cols = jnp.stack(cols, axis=3)                            # (n, oh, ow, kh*kw, c)
    return cols.reshape(n * oh * ow, kh * kw * c), oh, ow


def conv2d_relu_nhwc(x, w_mat, b, *, stride, kh, kw):
    """Conv2d + ReLU, NHWC in / NHWC out; w_mat is (kh*kw*C, OC) exact-K."""
    n = x.shape[0]
    patches, oh, ow = im2col_nhwc(x, kh, kw, stride)
    out = matmul_bias_act(patches, w_mat, b, relu=True, out_dtype=x.dtype)
    return out.reshape(n, oh, ow, w_mat.shape[1])


# ----------------------------------------------------------------------------
# Parameters: PyTorch-layout init + one-time kernel-layout preparation
# ----------------------------------------------------------------------------
def orthogonal_init(key, shape, gain=1.0):
    rows = shape[0]
    cols = int(np.prod(shape[1:]))
    a = jax.random.normal(key, (rows, cols), dtype=jnp.float32)
    transpose = rows < cols
    if transpose:
        a = a.T
    q, r = jnp.linalg.qr(a)
    d = jnp.diagonal(r)
    q = q * jnp.where(d >= 0, 1.0, -1.0)     # robust sign (avoid sign(0)=0)
    if transpose:
        q = q.T
    return (gain * q).reshape(shape).astype(jnp.float32)


def make_params(key, num_inputs, hidden_size=512):
    """PyTorch-layout parameters (same shapes/init style as the nn.Module)."""
    gain_relu = float(np.sqrt(2.0))
    ks = jax.random.split(key, 5)
    return {
        "conv1_w": orthogonal_init(ks[0], (32, num_inputs, 8, 8), gain_relu),
        "conv1_b": jnp.zeros((32,), jnp.float32),
        "conv2_w": orthogonal_init(ks[1], (64, 32, 4, 4), gain_relu),
        "conv2_b": jnp.zeros((64,), jnp.float32),
        "conv3_w": orthogonal_init(ks[2], (32, 64, 3, 3), gain_relu),
        "conv3_b": jnp.zeros((32,), jnp.float32),
        "fc_w": orthogonal_init(ks[3], (hidden_size, 32 * 7 * 7), gain_relu),
        "fc_b": jnp.zeros((hidden_size,), jnp.float32),
        "critic_w": orthogonal_init(ks[4], (1, hidden_size), 1.0),
        "critic_b": jnp.zeros((1,), jnp.float32),
    }


def prepare_params(params, hidden_size=512):
    """One-time conversion to kernel layout: NHWC-ordered exact-K bf16 weights
    (no row padding), (1, N) f32 biases, /255 folded into conv1 in f32 before
    the bf16 cast, critic weight as a (1, H) f32 row for the VPU reduction."""
    def conv_w(w, scale=1.0):
        oc, ic, kh, kw = w.shape
        m = (w.astype(jnp.float32) * scale).transpose(2, 3, 1, 0)
        return m.reshape(kh * kw * ic, oc).astype(jnp.bfloat16)

    fc_w = params["fc_w"].reshape(hidden_size, 32, 7, 7)            # (out, C, H, W)
    fc_w = fc_w.transpose(2, 3, 1, 0).reshape(7 * 7 * 32, hidden_size)  # NHWC K-order
    return {
        "conv1_w": conv_w(params["conv1_w"], scale=1.0 / 255.0),
        "conv1_b": params["conv1_b"].reshape(1, -1).astype(jnp.float32),
        "conv2_w": conv_w(params["conv2_w"]),
        "conv2_b": params["conv2_b"].reshape(1, -1).astype(jnp.float32),
        "conv3_w": conv_w(params["conv3_w"]),
        "conv3_b": params["conv3_b"].reshape(1, -1).astype(jnp.float32),
        "fc_w": fc_w.astype(jnp.bfloat16),
        "fc_b": params["fc_b"].reshape(1, -1).astype(jnp.float32),
        "critic_w": params["critic_w"].reshape(1, hidden_size).astype(jnp.float32),
        "critic_b": params["critic_b"].reshape(1, 1).astype(jnp.float32),
    }


# ----------------------------------------------------------------------------
# CNNBase.forward (recurrent=False path)
# ----------------------------------------------------------------------------
def cnn_base_forward(prepared, inputs, rnn_hxs, masks):
    # TODO(synk): recurrent=False (default) -> the GRU branch of NNBase is not
    # exercised; rnn_hxs is passed through unchanged, masks unused.
    del masks
    n = inputs.shape[0]
    # bf16 cast BEFORE the single NCHW->NHWC transpose (half the bytes moved);
    # /255 is folded into conv1's weights.
    x = jnp.transpose(inputs.astype(jnp.bfloat16), (0, 2, 3, 1))
    x = conv2d_relu_nhwc(x, prepared["conv1_w"], prepared["conv1_b"],
                         stride=4, kh=8, kw=8)                    # (N,20,20,32)
    x = conv2d_relu_nhwc(x, prepared["conv2_w"], prepared["conv2_b"],
                         stride=2, kh=4, kw=4)                    # (N, 9, 9,64)
    x = conv2d_relu_nhwc(x, prepared["conv3_w"], prepared["conv3_b"],
                         stride=1, kh=3, kw=3)                    # (N, 7, 7,32)
    x = x.reshape(n, -1)              # NHWC flatten; fc weight pre-permuted to match
    hidden, critic = fc_critic(x, prepared["fc_w"], prepared["fc_b"],
                               prepared["critic_w"], prepared["critic_b"])
    return critic, hidden, rnn_hxs


if __name__ == "__main__":
    key = jax.random.PRNGKey(0)
    k_param, k_x = jax.random.split(key)

    batch = 2
    num_inputs = 4          # Atari frame-stack channels
    hidden_size = 512
    # Spatial size must be 84x84: the module hard-codes Linear(32*7*7, ...).
    inputs = jax.random.uniform(k_x, (batch, num_inputs, 84, 84),
                                dtype=jnp.float32, minval=0.0, maxval=255.0)
    rnn_hxs = jnp.zeros((batch, 1), jnp.float32)   # recurrent_hidden_state_size == 1
    masks = jnp.ones((batch, 1), jnp.float32)

    params = make_params(k_param, num_inputs, hidden_size)
    prepared = prepare_params(params, hidden_size)   # one-time weight prep

    fwd = jax.jit(cnn_base_forward)
    critic, hidden, rnn_hxs_out = fwd(prepared, inputs, rnn_hxs, masks)
    jax.block_until_ready((critic, hidden, rnn_hxs_out))

    assert critic.shape == (batch, 1)
    assert hidden.shape == (batch, hidden_size)
    assert rnn_hxs_out.shape == (batch, 1)
    assert bool(jnp.all(jnp.isfinite(critic))) and bool(jnp.all(jnp.isfinite(hidden)))
    print("KERNEL_OK")
</pallas_src>

<mosaic_0001>
module attributes {stable_mosaic.version = 11 : i64} {
  func.func @_matmul_bias_act_kernel(%arg0: i32, %arg1: memref<400x256xbf16, #tpu.memory_space<vmem>>, %arg2: memref<256x32xbf16, #tpu.memory_space<vmem>>, %arg3: memref<1x32xf32, #tpu.memory_space<vmem>>, %arg4: memref<400x32xbf16, #tpu.memory_space<vmem>>) attributes {dimension_semantics = [#tpu.dimension_semantics<parallel>], iteration_bounds = array<i64: 2>, scalar_prefetch = 0 : i64, scratch_operands = 0 : i64, tpu.core_type = #tpu.core_type<tc>, window_params = [{transform_indices = @transform_0, window_bounds = array<i64: 400, 256>}, {pipeline_mode = #tpu.pipeline_mode<synchronous>, transform_indices = @transform_1, window_bounds = array<i64: 256, 32>}, {pipeline_mode = #tpu.pipeline_mode<synchronous>, transform_indices = @transform_2, window_bounds = array<i64: 1, 32>}, {transform_indices = @transform_3, window_bounds = array<i64: 400, 32>}]} {
    %c0 = arith.constant 0 : index
    %c0_0 = arith.constant 0 : index
    %0 = vector.load %arg1[%c0, %c0_0] : memref<400x256xbf16, #tpu.memory_space<vmem>>, vector<400x256xbf16>
    %c0_1 = arith.constant 0 : index
    %c0_2 = arith.constant 0 : index
    %1 = vector.load %arg2[%c0_1, %c0_2] : memref<256x32xbf16, #tpu.memory_space<vmem>>, vector<256x32xbf16>
    %cst = arith.constant dense<0.000000e+00> : vector<400x32xf32>
    %2 = tpu.matmul %0, %1, %cst {dimension_numbers = #tpu.dot_dimension_numbers<[1], [0], [0], [1], [0, 0, 1, 1], [], []>} : vector<400x256xbf16>, vector<256x32xbf16>, vector<400x32xf32> -> vector<400x32xf32>
    %c0_3 = arith.constant 0 : index
    %c0_4 = arith.constant 0 : index
    %3 = vector.load %arg3[%c0_3, %c0_4] : memref<1x32xf32, #tpu.memory_space<vmem>>, vector<1x32xf32>
    %4 = vector.broadcast %3 : vector<1x32xf32> to vector<400x32xf32>
    %5 = arith.addf %2, %4 : vector<400x32xf32>
    %cst_5 = arith.constant 0.000000e+00 : f32
    %6 = vector.broadcast %cst_5 : f32 to vector<400x32xf32>
    %7 = arith.maximumf %5, %6 : vector<400x32xf32>
    %8 = arith.truncf %7 : vector<400x32xf32> to vector<400x32xbf16>
    %c0_6 = arith.constant 0 : index
    %c0_7 = arith.constant 0 : index
    %9 = vector.load %arg4[%c0_6, %c0_7] : memref<400x32xbf16, #tpu.memory_space<vmem>>, vector<400x32xbf16>
    tpu.vector_store %arg4[%c0_6, %c0_7], %8 {strides = array<i32>} : memref<400x32xbf16, #tpu.memory_space<vmem>>, vector<400x32xbf16>,
    return
  }
  func.func @transform_0(%arg0: i32) -> (i32, i32) {
    %c0_i32 = arith.constant 0 : i32
    %c0_i32_0 = arith.constant 0 : i32
    return %arg0, %c0_i32 : i32, i32
  }
  func.func @transform_1(%arg0: i32) -> (i32, i32) {
    %c0_i32 = arith.constant 0 : i32
    %c0_i32_0 = arith.constant 0 : i32
    %c0_i32_1 = arith.constant 0 : i32
    return %c0_i32, %c0_i32_0 : i32, i32
  }
  func.func @transform_2(%arg0: i32) -> (i32, i32) {
    %c0_i32 = arith.constant 0 : i32
    %c0_i32_0 = arith.constant 0 : i32
    %c0_i32_1 = arith.constant 0 : i32
    return %c0_i32, %c0_i32_0 : i32, i32
  }
  func.func @transform_3(%arg0: i32) -> (i32, i32) {
    %c0_i32 = arith.constant 0 : i32
    %c0_i32_0 = arith.constant 0 : i32
    return %arg0, %c0_i32 : i32, i32
  }
}

module attributes {stable_mosaic.version = 11 : i64} {
  func.func @_matmul_bias_act_kernel(%arg0: i32, %arg1: memref<162x512xbf16, #tpu.memory_space<vmem>>, %arg2: memref<512x64xbf16, #tpu.memory_space<vmem>>, %arg3: memref<1x64xf32, #tpu.memory_space<vmem>>, %arg4: memref<162x64xbf16, #tpu.memory_space<vmem>>) attributes {dimension_semantics = [#tpu.dimension_semantics<parallel>], iteration_bounds = array<i64: 1>, scalar_prefetch = 0 : i64, scratch_operands = 0 : i64, tpu.core_type = #tpu.core_type<tc>, window_params = [{transform_indices = @transform_0, window_bounds = array<i64: 162, 512>}, {pipeline_mode = #tpu.pipeline_mode<synchronous>, transform_indices = @transform_1, window_bounds = array<i64: 512, 64>}, {pipeline_mode = #tpu.pipeline_mode<synchronous>, transform_indices = @transform_2, window_bounds = array<i64: 1, 64>}, {transform_indices = @transform_3, window_bounds = array<i64: 162, 64>}]} {
    %c0 = arith.constant 0 : index
    %c0_0 = arith.constant 0 : index
    %0 = vector.load %arg1[%c0, %c0_0] : memref<162x512xbf16, #tpu.memory_space<vmem>>, vector<162x512xbf16>
    %c0_1 = arith.constant 0 : index
    %c0_2 = arith.constant 0 : index
    %1 = vector.load %arg2[%c0_1, %c0_2] : memref<512x64xbf16, #tpu.memory_space<vmem>>, vector<512x64xbf16>
    %cst = arith.constant dense<0.000000e+00> : vector<162x64xf32>
    %2 = tpu.matmul %0, %1, %cst {dimension_numbers = #tpu.dot_dimension_numbers<[1], [0], [0], [1], [0, 0, 1, 1], [], []>} : vector<162x512xbf16>, vector<512x64xbf16>, vector<162x64xf32> -> vector<162x64xf32>
    %c0_3 = arith.constant 0 : index
    %c0_4 = arith.constant 0 : index
    %3 = vector.load %arg3[%c0_3, %c0_4] : memref<1x64xf32, #tpu.memory_space<vmem>>, vector<1x64xf32>
    %4 = vector.broadcast %3 : vector<1x64xf32> to vector<162x64xf32>
    %5 = arith.addf %2, %4 : vector<162x64xf32>
    %cst_5 = arith.constant 0.000000e+00 : f32
    %6 = vector.broadcast %cst_5 : f32 to vector<162x64xf32>
    %7 = arith.maximumf %5, %6 : vector<162x64xf32>
    %8 = arith.truncf %7 : vector<162x64xf32> to vector<162x64xbf16>
    %c0_6 = arith.constant 0 : index
    %c0_7 = arith.constant 0 : index
    %9 = vector.load %arg4[%c0_6, %c0_7] : memref<162x64xbf16, #tpu.memory_space<vmem>>, vector<162x64xbf16>
    tpu.vector_store %arg4[%c0_6, %c0_7], %8 {strides = array<i32>} : memref<162x64xbf16, #tpu.memory_space<vmem>>, vector<162x64xbf16>,
    return
  }
  func.func @transform_0(%arg0: i32) -> (i32, i32) {
    %c0_i32 = arith.constant 0 : i32
    %c0_i32_0 = arith.constant 0 : i32
    return %arg0, %c0_i32 : i32, i32
  }
  func.func @transform_1(%arg0: i32) -> (i32, i32) {
    %c0_i32 = arith.constant 0 : i32
    %c0_i32_0 = arith.constant 0 : i32
    %c0_i32_1 = arith.constant 0 : i32
    return %c0_i32, %c0_i32_0 : i32, i32
  }
  func.func @transform_2(%arg0: i32) -> (i32, i32) {
    %c0_i32 = arith.constant 0 : i32
    %c0_i32_0 = arith.constant 0 : i32
    %c0_i32_1 = arith.constant 0 : i32
    return %c0_i32, %c0_i32_0 : i32, i32
  }
  func.func @transform_3(%arg0: i32) -> (i32, i32) {
    %c0_i32 = arith.constant 0 : i32
    %c0_i32_0 = arith.constant 0 : i32
    return %arg0, %c0_i32 : i32, i32
  }
}

module attributes {stable_mosaic.version = 11 : i64} {
  func.func @_matmul_bias_act_kernel(%arg0: i32, %arg1: memref<98x576xbf16, #tpu.memory_space<vmem>>, %arg2: memref<576x32xbf16, #tpu.memory_space<vmem>>, %arg3: memref<1x32xf32, #tpu.memory_space<vmem>>, %arg4: memref<98x32xbf16, #tpu.memory_space<vmem>>) attributes {dimension_semantics = [#tpu.dimension_semantics<parallel>], iteration_bounds = array<i64: 1>, scalar_prefetch = 0 : i64, scratch_operands = 0 : i64, tpu.core_type = #tpu.core_type<tc>, window_params = [{transform_indices = @transform_0, window_bounds = array<i64: 98, 576>}, {pipeline_mode = #tpu.pipeline_mode<synchronous>, transform_indices = @transform_1, window_bounds = array<i64: 576, 32>}, {pipeline_mode = #tpu.pipeline_mode<synchronous>, transform_indices = @transform_2, window_bounds = array<i64: 1, 32>}, {transform_indices = @transform_3, window_bounds = array<i64: 98, 32>}]} {
    %c0 = arith.constant 0 : index
    %c0_0 = arith.constant 0 : index
    %0 = vector.load %arg1[%c0, %c0_0] : memref<98x576xbf16, #tpu.memory_space<vmem>>, vector<98x576xbf16>
    %c0_1 = arith.constant 0 : index
    %c0_2 = arith.constant 0 : index
    %1 = vector.load %arg2[%c0_1, %c0_2] : memref<576x32xbf16, #tpu.memory_space<vmem>>, vector<576x32xbf16>
    %cst = arith.constant dense<0.000000e+00> : vector<98x32xf32>
    %2 = tpu.matmul %0, %1, %cst {dimension_numbers = #tpu.dot_dimension_numbers<[1], [0], [0], [1], [0, 0, 1, 1], [], []>} : vector<98x576xbf16>, vector<576x32xbf16>, vector<98x32xf32> -> vector<98x32xf32>
    %c0_3 = arith.constant 0 : index
    %c0_4 = arith.constant 0 : index
    %3 = vector.load %arg3[%c0_3, %c0_4] : memref<1x32xf32, #tpu.memory_space<vmem>>, vector<1x32xf32>
    %4 = vector.broadcast %3 : vector<1x32xf32> to vector<98x32xf32>
    %5 = arith.addf %2, %4 : vector<98x32xf32>
    %cst_5 = arith.constant 0.000000e+00 : f32
    %6 = vector.broadcast %cst_5 : f32 to vector<98x32xf32>
    %7 = arith.maximumf %5, %6 : vector<98x32xf32>
    %8 = arith.truncf %7 : vector<98x32xf32> to vector<98x32xbf16>
    %c0_6 = arith.constant 0 : index
    %c0_7 = arith.constant 0 : index
    %9 = vector.load %arg4[%c0_6, %c0_7] : memref<98x32xbf16, #tpu.memory_space<vmem>>, vector<98x32xbf16>
    tpu.vector_store %arg4[%c0_6, %c0_7], %8 {strides = array<i32>} : memref<98x32xbf16, #tpu.memory_space<vmem>>, vector<98x32xbf16>,
    return
  }
  func.func @transform_0(%arg0: i32) -> (i32, i32) {
    %c0_i32 = arith.constant 0 : i32
    %c0_i32_0 = arith.constant 0 : i32
    return %arg0, %c0_i32 : i32, i32
  }
  func.func @transform_1(%arg0: i32) -> (i32, i32) {
    %c0_i32 = arith.constant 0 : i32
    %c0_i32_0 = arith.constant 0 : i32
    %c0_i32_1 = arith.constant 0 : i32
    return %c0_i32, %c0_i32_0 : i32, i32
  }
  func.func @transform_2(%arg0: i32) -> (i32, i32) {
    %c0_i32 = arith.constant 0 : i32
    %c0_i32_0 = arith.constant 0 : i32
    %c0_i32_1 = arith.constant 0 : i32
    return %c0_i32, %c0_i32_0 : i32, i32
  }
  func.func @transform_3(%arg0: i32) -> (i32, i32) {
    %c0_i32 = arith.constant 0 : i32
    %c0_i32_0 = arith.constant 0 : i32
    return %arg0, %c0_i32 : i32, i32
  }
}

module attributes {stable_mosaic.version = 11 : i64} {
  func.func @_fc_critic_kernel(%arg0: i32, %arg1: memref<2x1568xbf16, #tpu.memory_space<vmem>>, %arg2: memref<1568x512xbf16, #tpu.memory_space<vmem>>, %arg3: memref<1x512xf32, #tpu.memory_space<vmem>>, %arg4: memref<1x512xf32, #tpu.memory_space<vmem>>, %arg5: memref<1x1xf32, #tpu.memory_space<vmem>>, %arg6: memref<2x512xf32, #tpu.memory_space<vmem>>, %arg7: memref<2x1xf32, #tpu.memory_space<vmem>>) attributes {dimension_semantics = [#tpu.dimension_semantics<parallel>], iteration_bounds = array<i64: 1>, scalar_prefetch = 0 : i64, scratch_operands = 0 : i64, tpu.core_type = #tpu.core_type<tc>, window_params = [{transform_indices = @transform_0, window_bounds = array<i64: 2, 1568>}, {pipeline_mode = #tpu.pipeline_mode<synchronous>, transform_indices = @transform_1, window_bounds = array<i64: 1568, 512>}, {pipeline_mode = #tpu.pipeline_mode<synchronous>, transform_indices = @transform_2, window_bounds = array<i64: 1, 512>}, {pipeline_mode = #tpu.pipeline_mode<synchronous>, transform_indices = @transform_3, window_bounds = array<i64: 1, 512>}, {pipeline_mode = #tpu.pipeline_mode<synchronous>, transform_indices = @transform_4, window_bounds = array<i64: 1, 1>}, {transform_indices = @transform_5, window_bounds = array<i64: 2, 512>}, {transform_indices = @transform_6, window_bounds = array<i64: 2, 1>}]} {
    %c0 = arith.constant 0 : index
    %c0_0 = arith.constant 0 : index
    %0 = vector.load %arg1[%c0, %c0_0] : memref<2x1568xbf16, #tpu.memory_space<vmem>>, vector<2x1568xbf16>
    %c0_1 = arith.constant 0 : index
    %c0_2 = arith.constant 0 : index
    %1 = vector.load %arg2[%c0_1, %c0_2] : memref<1568x512xbf16, #tpu.memory_space<vmem>>, vector<1568x512xbf16>
    %cst = arith.constant dense<0.000000e+00> : vector<2x512xf32>
    %2 = tpu.matmul %0, %1, %cst {dimension_numbers = #tpu.dot_dimension_numbers<[1], [0], [0], [1], [0, 0, 1, 1], [], []>} : vector<2x1568xbf16>, vector<1568x512xbf16>, vector<2x512xf32> -> vector<2x512xf32>
    %c0_3 = arith.constant 0 : index
    %c0_4 = arith.constant 0 : index
    %3 = vector.load %arg3[%c0_3, %c0_4] : memref<1x512xf32, #tpu.memory_space<vmem>>, vector<1x512xf32>
    %4 = vector.broadcast %3 : vector<1x512xf32> to vector<2x512xf32>
    %5 = arith.addf %2, %4 : vector<2x512xf32>
    %cst_5 = arith.constant 0.000000e+00 : f32
    %6 = vector.broadcast %cst_5 : f32 to vector<2x512xf32>
    %7 = arith.maximumf %5, %6 : vector<2x512xf32>
    %c0_6 = arith.constant 0 : index
    %c0_7 = arith.constant 0 : index
    %8 = vector.load %arg6[%c0_6, %c0_7] : memref<2x512xf32, #tpu.memory_space<vmem>>, vector<2x512xf32>
    tpu.vector_store %arg6[%c0_6, %c0_7], %7 {strides = array<i32>} : memref<2x512xf32, #tpu.memory_space<vmem>>, vector<2x512xf32>,
    %c0_8 = arith.constant 0 : index
    %c0_9 = arith.constant 0 : index
    %9 = vector.load %arg4[%c0_8, %c0_9] : memref<1x512xf32, #tpu.memory_space<vmem>>, vector<1x512xf32>
    %10 = vector.broadcast %9 : vector<1x512xf32> to vector<2x512xf32>
    %11 = arith.mulf %7, %10 : vector<2x512xf32>
    %cst_10 = arith.constant dense<0.000000e+00> : vector<2xf32>
    %12 = vector.multi_reduction <add>, %11, %cst_10 [1] : vector<2x512xf32> to vector<2xf32>
    %13 = vector.shape_cast %12 : vector<2xf32> to vector<2x1xf32>
    %c0_11 = arith.constant 0 : index
    %c0_12 = arith.constant 0 : index
    %14 = vector.load %arg5[%c0_11, %c0_12] : memref<1x1xf32, #tpu.memory_space<vmem>>, vector<1x1xf32>
    %15 = vector.broadcast %14 : vector<1x1xf32> to vector<2x1xf32>
    %16 = arith.addf %13, %15 : vector<2x1xf32>
    %c0_13 = arith.constant 0 : index
    %c0_14 = arith.constant 0 : index
    %17 = vector.load %arg7[%c0_13, %c0_14] : memref<2x1xf32, #tpu.memory_space<vmem>>, vector<2x1xf32>
    tpu.vector_store %arg7[%c0_13, %c0_14], %16 {strides = array<i32>} : memref<2x1xf32, #tpu.memory_space<vmem>>, vector<2x1xf32>,
    return
  }
  func.func @transform_0(%arg0: i32) -> (i32, i32) {
    %c0_i32 = arith.constant 0 : i32
    %c0_i32_0 = arith.constant 0 : i32
    return %arg0, %c0_i32 : i32, i32
  }
  func.func @transform_1(%arg0: i32) -> (i32, i32) {
    %c0_i32 = arith.constant 0 : i32
    %c0_i32_0 = arith.constant 0 : i32
    %c0_i32_1 = arith.constant 0 : i32
    return %c0_i32, %c0_i32_0 : i32, i32
  }
  func.func @transform_2(%arg0: i32) -> (i32, i32) {
    %c0_i32 = arith.constant 0 : i32
    %c0_i32_0 = arith.constant 0 : i32
    %c0_i32_1 = arith.constant 0 : i32
    return %c0_i32, %c0_i32_0 : i32, i32
  }
  func.func @transform_3(%arg0: i32) -> (i32, i32) {
    %c0_i32 = arith.constant 0 : i32
    %c0_i32_0 = arith.constant 0 : i32
    %c0_i32_1 = arith.constant 0 : i32
    return %c0_i32, %c0_i32_0 : i32, i32
  }
  func.func @transform_4(%arg0: i32) -> (i32, i32) {
    %c0_i32 = arith.constant 0 : i32
    %c0_i32_0 = arith.constant 0 : i32
    %c0_i32_1 = arith.constant 0 : i32
    return %c0_i32, %c0_i32_0 : i32, i32
  }
  func.func @transform_5(%arg0: i32) -> (i32, i32) {
    %c0_i32 = arith.constant 0 : i32
    %c0_i32_0 = arith.constant 0 : i32
    return %arg0, %c0_i32 : i32, i32
  }
  func.func @transform_6(%arg0: i32) -> (i32, i32) {
    %c0_i32 = arith.constant 0 : i32
    %c0_i32_0 = arith.constant 0 : i32
    return %arg0, %c0_i32 : i32, i32
  }
}

</mosaic_0001>

<bundles_post_ra>
// kernel: cnn_base_forward.4
= control target key start
LH: loop header
LB: loop body
LE: loop exit
PB: predicated region body
PF: predicated region fallthrough
CT: control target
= control target key end

     0   :  { %s1542_s12 = smov 0   ;;  %s1852_s0 = inlined_call_operand.vmem [shape: bf16[800,256], index: 0, kind: input, shape index: {}]   ;;  %s1853_s1 = inlined_call_operand.vmem [shape: bf16[256,32], index: 1, kind: input, shape index: {}]   ;;  %s1854_s2 = inlined_call_operand.vmem [shape: f32[1,32], index: 2, kind: input, shape index: {}]   ;;  %s1855_s3 = inlined_call_operand.vmem [shape: bf16[800,32], index: 3, kind: output, shape index: {}]  }
   0x1 LB: > { %s1203_s13 = sadd.s32 4294967295, %s1519_s12   ;;  %p1207_p0 = scmp.ge.s32.totalorder %s1519_s12, 1  ;;  %s1519_s12 = sphi %s1542_s12, %s13_s12  }
   0x2   : > { %p139_p1 = scmp.lt.s32.totalorder %s1519_s12, 3 }
   0x4   : > { %p140_p2 = pnand %p1207_p0, %p139_p1 }
   0x5   : > { %v1422_v0 = vld [vmem:[%s1853_s1] sm:$0xff] (!%p140_p2)   ;;  %v1521_v1 = vmov (!%p140_p2), 0   ;;  %s164_s16 = smul.u32 (!%p140_p2), 50, %s1203_s13  ;;  %v1423_v2 = vld [vmem:[%s1853_s1 + $0x8] sm:$0xff] (!%p140_p2)   ;;  %v1424_v3 = vld [vmem:[%s1853_s1 + $0x10] sm:$0xff] (!%p140_p2)   ;;  %vm1096_vm0 = vcmask (!%p140_p2), 257024  }
   0x6   : > { %143 = sbr.rel (%p140_p2) target bundleno = 387 (0x183), region = 32  ;;  %613 = vmatprep.subr.bf16.mxu0 (!%p140_p2), %v1521_v1  ;;  %1381 = vmatprep.subr.bf16.mxu1 (!%p140_p2), %v1521_v1  ;;  %v1425_v4 = vld [vmem:[%s1853_s1 + $0x18] sm:$0xff] (!%p140_p2)   ;;  %v1426_v5 = vld [vmem:[%s1853_s1 + $0x20] sm:$0xff] (!%p140_p2)   ;;  %v1427_v7 = vld [vmem:[%s1853_s1 + $0x28] sm:$0xff] (!%p140_p2)  }
   0x7   : > { %614 = vmatpush1.bf16.msra.mxu0 (!%p140_p2), %v1422_v0  ;;  %1397 = vmatpush1.bf16.msra.mxu1 (!%p140_p2), %v1422_v0  ;;  %p165_p3 = scmp.lt.s32.totalorder (!%p140_p2), %s164_s16, 99  ;;  %v1428_v9 = vld [vmem:[%s1853_s1 + $0x30] sm:$0xff] (!%p140_p2)   ;;  %v1429_v10 = vld [vmem:[%s1853_s1 + $0x38] sm:$0xff] (!%p140_p2)   ;;  %v1430_v11 = vld [vmem:[%s1853_s1 + $0x40] sm:$0xff] (!%p140_p2)  }
   0x8   : > { %615 = vmatprep.subr.bf16.mxu0 (!%p140_p2), %v1521_v1  ;;  %1382 = vmatprep.subr.bf16.mxu1 (!%p140_p2), %v1521_v1  ;;  %v1431_v12 = vld [vmem:[%s1853_s1 + $0x48] sm:$0xff] (!%p140_p2)   ;;  %v1432_v13 = vld [vmem:[%s1853_s1 + $0x50] sm:$0xff] (!%p140_p2)   ;;  %v1433_v14 = vld [vmem:[%s1853_s1 + $0x58] sm:$0xff] (!%p140_p2)  }
   0x9   : > { %v1434_v15 = vld [vmem:[%s1853_s1 + $0x60] sm:$0xff] (!%p140_p2)   ;;  %v1435_v16 = vld [vmem:[%s1853_s1 + $0x68] sm:$0xff] (!%p140_p2)   ;;  %v1436_v17 = vld [vmem:[%s1853_s1 + $0x70] sm:$0xff] (!%p140_p2)  }
   0xa   : > { %v1437_v18 = vld [vmem:[%s1853_s1 + $0x78] sm:$0xff] (!%p140_p2)  }
   0xb   : > { %616 = vmatpush1.bf16.msra.mxu0 (!%p140_p2), %v1423_v2  ;;  %1398 = vmatpush1.bf16.msra.mxu1 (!%p140_p2), %v1423_v2 }
   0xc   : > { %617 = vmatprep.subr.bf16.mxu0 (!%p140_p2), %v1521_v1  ;;  %1383 = vmatprep.subr.bf16.mxu1 (!%p140_p2), %v1521_v1 }
   0xd   : > { %s1857_s16 = smov (!%p165_p3, %s164_s16), 99 }
   0xe   : > { %s1330_s23 = sshll.u32 %s1857_s16, 3  ;;  %s1210_s29 = sshll.u32 %s1857_s16, 2 }
   0xf   : > { %618 = vmatpush1.bf16.msra.mxu0 %v1424_v3  ;;  %1399 = vmatpush1.bf16.msra.mxu1 %v1424_v3  ;;  %s1579_s28 = scalar_lea.vmem %s1852_s0, %s1330_s23  ;;  %v1691_v3 = vld [vmem:[%s1854_s2] ss:$0 sm:$0xff]  ;;  %s1701_s16 = scalar_lea.vmem %s1855_s3, %s1210_s29 }
  0x10   : > { %619 = vmatprep.subr.bf16.mxu0 %v1521_v1  ;;  %1384 = vmatprep.subr.bf16.mxu1 %v1521_v1  ;;  %v1440_v6 = vld [vmem:[%s1579_s28 + $0x4] ss:$8 sps:$4 sm:$0xff]   ;;  %v1443_v8 = vld [vmem:[%s1579_s28 + $0xd4] ss:$8 sps:$4 sm:$0xff]   ;;  %v1438_v19 = vld [vmem:[%s1579_s28] ss:$8 sps:$4 sm:$0xff]  }
  0x11   : > { %645 = vmatprep.mubr.bf16.mxu0 %v1440_v6  ;;  %749 = vmatprep.mubr.bf16.mxu1 %v1443_v8  ;;  %v1441_v20 = vld [vmem:[%s1579_s28 + $0xd0] ss:$8 sps:$4 sm:$0xff]   ;;  %v1444_v21 = vld [vmem:[%s1579_s28 + $0x14] ss:$8 sps:$4 sm:$0xff]   ;;  %v1447_v22 = vld [vmem:[%s1579_s28 + $0xe4] ss:$8 sps:$4 sm:$0xff]  }
  0x12   : > { %v1446_v23 = vld [vmem:[%s1579_s28 + $0x10] ss:$8 sps:$4 sm:$0xff]   ;;  %v1449_v24 = vld [vmem:[%s1579_s28 + $0xe0] ss:$8 sps:$4 sm:$0xff]   ;;  %v1450_v25 = vld [vmem:[%s1579_s28 + $0x24] ss:$8 sps:$4 sm:$0xff]  }
  0x13   : > { %620 = vmatpush1.bf16.msra.mxu0 %v1425_v4  ;;  %1400 = vmatpush1.bf16.msra.mxu1 %v1425_v4  ;;  %v1453_v26 = vld [vmem:[%s1579_s28 + $0xf4] ss:$8 sps:$4 sm:$0xff]   ;;  %v1452_v27 = vld [vmem:[%s1579_s28 + $0x20] ss:$8 sps:$4 sm:$0xff]   ;;  %v1455_v28 = vld [vmem:[%s1579_s28 + $0xf0] ss:$8 sps:$4 sm:$0xff]  }
  0x14   : > { %621 = vmatprep.subr.bf16.mxu0 %v1521_v1  ;;  %1385 = vmatprep.subr.bf16.mxu1 %v1521_v1  ;;  %v1456_v29 = vld [vmem:[%s1579_s28 + $0x34] ss:$8 sps:$4 sm:$0xff]   ;;  %v1459_v30 = vld [vmem:[%s1579_s28 + $0x104] ss:$8 sps:$4 sm:$0xff]   ;;  %v1458_v31 = vld [vmem:[%s1579_s28 + $0x30] ss:$8 sps:$4 sm:$0xff]  }
  0x15   : > { %v1461_v32 = vld [vmem:[%s1579_s28 + $0x100] ss:$8 sps:$4 sm:$0xff]   ;;  %v1462_v33 = vld [vmem:[%s1579_s28 + $0x44] ss:$8 sps:$4 sm:$0xff]   ;;  %v1465_v34 = vld [vmem:[%s1579_s28 + $0x114] ss:$8 sps:$4 sm:$0xff]  }
  0x16   : > { %v1464_v35 = vld [vmem:[%s1579_s28 + $0x40] ss:$8 sps:$4 sm:$0xff]   ;;  %v1467_v36 = vld [vmem:[%s1579_s28 + $0x110] ss:$8 sps:$4 sm:$0xff]   ;;  %v1468_v37 = vld [vmem:[%s1579_s28 + $0x54] ss:$8 sps:$4 sm:$0xff]  }
  0x17   : > { %622 = vmatpush1.bf16.msra.mxu0 %v1426_v5  ;;  %1401 = vmatpush1.bf16.msra.mxu1 %v1426_v5  ;;  %v1471_v38 = vld [vmem:[%s1579_s28 + $0x124] ss:$8 sps:$4 sm:$0xff]   ;;  %v1470_v39 = vld [vmem:[%s1579_s28 + $0x50] ss:$8 sps:$4 sm:$0xff]   ;;  %v1473_v40 = vld [vmem:[%s1579_s28 + $0x120] ss:$8 sps:$4 sm:$0xff]  }
  0x18   : > { %623 = vmatprep.subr.bf16.mxu0 %v1521_v1  ;;  %1386 = vmatprep.subr.bf16.mxu1 %v1521_v1  ;;  %v1474_v41 = vld [vmem:[%s1579_s28 + $0x64] ss:$8 sps:$4 sm:$0xff]   ;;  %v1477_v42 = vld [vmem:[%s1579_s28 + $0x134] ss:$8 sps:$4 sm:$0xff]   ;;  %v1476_v43 = vld [vmem:[%s1579_s28 + $0x60] ss:$8 sps:$4 sm:$0xff]  }
  0x19   : > { %v1479_v44 = vld [vmem:[%s1579_s28 + $0x130] ss:$8 sps:$4 sm:$0xff]   ;;  %v1480_v45 = vld [vmem:[%s1579_s28 + $0x74] ss:$8 sps:$4 sm:$0xff]   ;;  %v1483_v46 = vld [vmem:[%s1579_s28 + $0x144] ss:$8 sps:$4 sm:$0xff]  }
  0x1a   : > { %v1482_v47 = vld [vmem:[%s1579_s28 + $0x70] ss:$8 sps:$4 sm:$0xff]   ;;  %v1485_v48 = vld [vmem:[%s1579_s28 + $0x140] ss:$8 sps:$4 sm:$0xff]   ;;  %v1486_v49 = vld [vmem:[%s1579_s28 + $0x84] ss:$8 sps:$4 sm:$0xff]  }
  0x1b   : > { %624 = vmatpush1.bf16.msra.mxu0 %v1427_v7  ;;  %1402 = vmatpush1.bf16.msra.mxu1 %v1427_v7  ;;  %v1489_v50 = vld [vmem:[%s1579_s28 + $0x154] ss:$8 sps:$4 sm:$0xff]   ;;  %v1488_v51 = vld [vmem:[%s1579_s28 + $0x80] ss:$8 sps:$4 sm:$0xff]   ;;  %v1491_v52 = vld [vmem:[%s1579_s28 + $0x150] ss:$8 sps:$4 sm:$0xff]  }
  0x1c   : > { %625 = vmatprep.subr.bf16.mxu0 %v1521_v1  ;;  %1387 = vmatprep.subr.bf16.mxu1 %v1521_v1  ;;  %v1492_v53 = vld [vmem:[%s1579_s28 + $0x94] ss:$8 sps:$4 sm:$0xff]   ;;  %v1495_v54 = vld [vmem:[%s1579_s28 + $0x164] ss:$8 sps:$4 sm:$0xff]   ;;  %v1494_v55 = vld [vmem:[%s1579_s28 + $0x90] ss:$8 sps:$4 sm:$0xff]  }
  0x1d   : > { %v1497_v56 = vld [vmem:[%s1579_s28 + $0x160] ss:$8 sps:$4 sm:$0xff]   ;;  %v1498_v57 = vld [vmem:[%s1579_s28 + $0xa4] ss:$8 sps:$4 sm:$0xff]   ;;  %v1501_v58 = vld [vmem:[%s1579_s28 + $0x174] ss:$8 sps:$4 sm:$0xff]  }
  0x1e   : > { %v1500_v59 = vld [vmem:[%s1579_s28 + $0xa0] ss:$8 sps:$4 sm:$0xff]   ;;  %v1503_v60 = vld [vmem:[%s1579_s28 + $0x170] ss:$8 sps:$4 sm:$0xff]   ;;  %v1504_v61 = vld [vmem:[%s1579_s28 + $0xb4] ss:$8 sps:$4 sm:$0xff]  }
  0x1f   : > { %626 = vmatpush1.bf16.msra.mxu0 %v1428_v9  ;;  %1403 = vmatpush1.bf16.msra.mxu1 %v1428_v9  ;;  %v1507_v62 = vld [vmem:[%s1579_s28 + $0x184] ss:$8 sps:$4 sm:$0xff]   ;;  %v1506_v63 = vld [vmem:[%s1579_s28 + $0xb0] ss:$8 sps:$4 sm:$0xff]   ;;  %v1509_v0 = vld [vmem:[%s1579_s28 + $0x180] ss:$8 sps:$4 sm:$0xff]  }
  0x20   : > { %627 = vmatprep.subr.bf16.mxu0 %v1521_v1  ;;  %1388 = vmatprep.subr.bf16.mxu1 %v1521_v1  ;;  %v1512_v2 = vld [vmem:[%s1579_s28 + $0xc0] ss:$8 sps:$4 sm:$0xff]  }
  0x23   : > { %628 = vmatpush1.bf16.msra.mxu0 %v1429_v10  ;;  %1404 = vmatpush1.bf16.msra.mxu1 %v1429_v10 }
  0x24   : > { %629 = vmatprep.subr.bf16.mxu0 %v1521_v1  ;;  %1389 = vmatprep.subr.bf16.mxu1 %v1521_v1 }
  0x27   : > { %630 = vmatpush1.bf16.msra.mxu0 %v1430_v11  ;;  %1405 = vmatpush1.bf16.msra.mxu1 %v1430_v11 }
  0x28   : > { %631 = vmatprep.subr.bf16.mxu0 %v1521_v1  ;;  %1390 = vmatprep.subr.bf16.mxu1 %v1521_v1 }
  0x2b   : > { %632 = vmatpush1.bf16.msra.mxu0 %v1431_v12  ;;  %1406 = vmatpush1.bf16.msra.mxu1 %v1431_v12 }
  0x2c   : > { %633 = vmatprep.subr.bf16.mxu0 %v1521_v1  ;;  %1391 = vmatprep.subr.bf16.mxu1 %v1521_v1 }
  0x2f   : > { %634 = vmatpush1.bf16.msra.mxu0 %v1432_v13  ;;  %1407 = vmatpush1.bf16.msra.mxu1 %v1432_v13 }
  0x30   : > { %635 = vmatprep.subr.bf16.mxu0 %v1521_v1  ;;  %1392 = vmatprep.subr.bf16.mxu1 %v1521_v1 }
  0x33   : > { %636 = vmatpush1.bf16.msra.mxu0 %v1433_v14  ;;  %1408 = vmatpush1.bf16.msra.mxu1 %v1433_v14 }
  0x34   : > { %637 = vmatprep.subr.bf16.mxu0 %v1521_v1  ;;  %1393 = vmatprep.subr.bf16.mxu1 %v1521_v1 }
  0x37   : > { %638 = vmatpush1.bf16.msra.mxu0 %v1434_v15  ;;  %1409 = vmatpush1.bf16.msra.mxu1 %v1434_v15 }
  0x38   : > { %639 = vmatprep.subr.bf16.mxu0 %v1521_v1  ;;  %1394 = vmatprep.subr.bf16.mxu1 %v1521_v1 }
  0x3b   : > { %640 = vmatpush1.bf16.msra.mxu0 %v1435_v16  ;;  %1410 = vmatpush1.bf16.msra.mxu1 %v1435_v16 }
  0x3c   : > { %641 = vmatprep.subr.bf16.mxu0 %v1521_v1  ;;  %1395 = vmatprep.subr.bf16.mxu1 %v1521_v1 }
  0x3f   : > { %642 = vmatpush1.bf16.msra.mxu0 %v1436_v17  ;;  %1411 = vmatpush1.bf16.msra.mxu1 %v1436_v17 }
  0x40   : > { %643 = vmatprep.subr.bf16.mxu0 %v1521_v1  ;;  %1396 = vmatprep.subr.bf16.mxu1 %v1521_v1  ;;  %v1510_v1 = vld [vmem:[%s1579_s28 + $0xc4] ss:$8 sps:$4 sm:$0xff]  }
  0x43   : > { %644 = vmatpush1.bf16.msra.mxu0 %v1437_v18  ;;  %1412 = vmatpush1.bf16.msra.mxu1 %v1437_v18 }
  0x46   : > { %646 = vmatmul.mubr.bf16.vlgmr.msra.gmra.mrb[0].mxu0 %v1438_v19  ;;  %750 = vmatmul.mubr.bf16.vlgmr.msra.gmra.mrb[0].mxu1 %v1441_v20 }
  0x47   : > { %653 = vmatprep.mubr.bf16.mxu0 %v1444_v21  ;;  %757 = vmatprep.mubr.bf16.mxu1 %v1447_v22 }
  0x4e   : > { %654 = vmatmul.mubr.bf16.gmra.mrb[4].mxu0 %v1446_v23  ;;  %758 = vmatmul.mubr.bf16.gmra.mrb[4].mxu1 %v1449_v24 }
  0x4f   : > { %661 = vmatprep.mubr.bf16.mxu0 %v1450_v25  ;;  %765 = vmatprep.mubr.bf16.mxu1 %v1453_v26 }
  0x56   : > { %662 = vmatmul.mubr.bf16.gmra.mrb[8].mxu0 %v1452_v27  ;;  %766 = vmatmul.mubr.bf16.gmra.mrb[8].mxu1 %v1455_v28 }
  0x57   : > { %669 = vmatprep.mubr.bf16.mxu0 %v1456_v29  ;;  %773 = vmatprep.mubr.bf16.mxu1 %v1459_v30 }
  0x5e   : > { %670 = vmatmul.mubr.bf16.gmra.mrb[12].mxu0 %v1458_v31  ;;  %774 = vmatmul.mubr.bf16.gmra.mrb[12].mxu1 %v1461_v32 }
  0x5f   : > { %677 = vmatprep.mubr.bf16.mxu0 %v1462_v33  ;;  %781 = vmatprep.mubr.bf16.mxu1 %v1465_v34 }
  0x66   : > { %678 = vmatmul.mubr.bf16.gmra.mrb[16].mxu0 %v1464_v35  ;;  %782 = vmatmul.mubr.bf16.gmra.mrb[16].mxu1 %v1467_v36 }
  0x67   : > { %685 = vmatprep.mubr.bf16.mxu0 %v1468_v37  ;;  %789 = vmatprep.mubr.bf16.mxu1 %v1471_v38 }
  0x6e   : > { %686 = vmatmul.mubr.bf16.gmra.mrb[20].mxu0 %v1470_v39  ;;  %790 = vmatmul.mubr.bf16.gmra.mrb[20].mxu1 %v1473_v40 }
  0x6f   : > { %693 = vmatprep.mubr.bf16.mxu0 %v1474_v41  ;;  %797 = vmatprep.mubr.bf16.mxu1 %v1477_v42 }
  0x76   : > { %694 = vmatmul.mubr.bf16.gmra.mrb[24].mxu0 %v1476_v43  ;;  %798 = vmatmul.mubr.bf16.gmra.mrb[24].mxu1 %v1479_v44 }
  0x77   : > { %701 = vmatprep.mubr.bf16.mxu0 %v1480_v45  ;;  %805 = vmatprep.mubr.bf16.mxu1 %v1483_v46 }
  0x7e   : > { %702 = vmatmul.mubr.bf16.gmra.mrb[28].mxu0 %v1482_v47  ;;  %806 = vmatmul.mubr.bf16.gmra.mrb[28].mxu1 %v1485_v48 }
  0x7f   : > { %709 = vmatprep.mubr.bf16.mxu0 %v1486_v49  ;;  %813 = vmatprep.mubr.bf16.mxu1 %v1489_v50 }
  0x86   : > { %710 = vmatmul.mubr.bf16.gmra.mrb[32].mxu0 %v1488_v51  ;;  %814 = vmatmul.mubr.bf16.gmra.mrb[32].mxu1 %v1491_v52 }
  0x87   : > { %717 = vmatprep.mubr.bf16.mxu0 %v1492_v53  ;;  %821 = vmatprep.mubr.bf16.mxu1 %v1495_v54 }
  0x8e   : > { %718 = vmatmul.mubr.bf16.gmra.mrb[36].mxu0 %v1494_v55  ;;  %822 = vmatmul.mubr.bf16.gmra.mrb[36].mxu1 %v1497_v56 }
  0x8f   : > { %725 = vmatprep.mubr.bf16.mxu0 %v1498_v57  ;;  %829 = vmatprep.mubr.bf16.mxu1 %v1501_v58 }
  0x96   : > { %726 = vmatmul.mubr.bf16.gmra.mrb[40].mxu0 %v1500_v59  ;;  %830 = vmatmul.mubr.bf16.gmra.mrb[40].mxu1 %v1503_v60 }
  0x97   : > { %733 = vmatprep.mubr.bf16.mxu0 %v1504_v61  ;;  %837 = vmatprep.mubr.bf16.mxu1 %v1507_v62 }
  0x9e   : > { %734 = vmatmul.mubr.bf16.gmra.mrb[44].mxu0 %v1506_v63  ;;  %838 = vmatmul.mubr.bf16.gmra.mrb[44].mxu1 %v1509_v0 }
  0x9f   : > { %741 = vmatprep.mubr.bf16.mxu0 %v1510_v1 }
  0xa6   : > { %742 = vmatmul.mubr.bf16.gmra.mrb[48].mxu0 %v1512_v2 }
 0x119   : > { %v647_v4 = vpop.f32.mrb[0].mxu0  ;;  %v751_v5 = vpop.f32.mrb[0].mxu1 }
 0x11a   : > { %v648_v6 = vadd.f32 %v1691_v3, %v647_v4  ;;  %v649_v7 = vpop.f32.mrb[1].mxu0  ;;  %v752_v8 = vadd.f32 %v1691_v3, %v751_v5  ;;  %v753_v9 = vpop.f32.mrb[1].mxu1 }
 0x11b   : > { %v650_v10 = vpop.f32.mrb[2].mxu0  ;;  %v754_v11 = vpop.f32.mrb[2].mxu1 }
 0x11c   : > { %v846_v12 = vmax.f32 %v648_v6, 0.0  ;;  %v651_v13 = vadd.f32 %v1691_v3, %v650_v10  ;;  %v652_v14 = vpop.f32.mrb[3].mxu0  ;;  %v872_v15 = vmax.f32 %v752_v8, 0.0  ;;  %v755_v16 = vadd.f32 %v1691_v3, %v754_v11  ;;  %v756_v17 = vpop.f32.mrb[3].mxu1 }
 0x11e   : > { %v1331_v18 = vpack.c.bf16 %v846_v12, %v846_v12  ;;  %v847_v19 = vmax.f32 %v651_v13, 0.0  ;;  %v1357_v20 = vpack.c.bf16 %v872_v15, %v872_v15  ;;  %v873_v21 = vmax.f32 %v755_v16, 0.0 }
 0x120   : > { %1097 = vst.msk [vmem:[%s1701_s16] sm:$0xf] %vm1096_vm0, %v1331_v18  ;;  %v1332_v22 = vpack.c.bf16 %v847_v19, %v847_v19  ;;  %1123 = vst.msk [vmem:[%s1701_s16 + $0x68] sm:$0xf] %vm1096_vm0, %v1357_v20  ;;  %v1358_v23 = vpack.c.bf16 %v873_v21, %v873_v21 }
 0x121   : > { %v655_v24 = vpop.f32.mrb[4].mxu0  ;;  %v759_v25 = vpop.f32.mrb[4].mxu1 }
 0x122   : > { %1098 = vst.msk [vmem:[%s1701_s16 + $0x4] sm:$0xf] %vm1096_vm0, %v1332_v22  ;;  %1124 = vst.msk [vmem:[%s1701_s16 + $0x6c] sm:$0xf] %vm1096_vm0, %v1358_v23  ;;  %v656_v26 = vadd.f32 %v1691_v3, %v655_v24  ;;  %v657_v27 = vpop.f32.mrb[5].mxu0  ;;  %v760_v28 = vadd.f32 %v1691_v3, %v759_v25  ;;  %v761_v29 = vpop.f32.mrb[5].mxu1 }
 0x123   : > { %v658_v30 = vpop.f32.mrb[6].mxu0  ;;  %v762_v31 = vpop.f32.mrb[6].mxu1 }
 0x124   : > { %v848_v32 = vmax.f32 %v656_v26, 0.0  ;;  %v659_v33 = vadd.f32 %v1691_v3, %v658_v30  ;;  %v660_v34 = vpop.f32.mrb[7].mxu0  ;;  %v874_v35 = vmax.f32 %v760_v28, 0.0  ;;  %v763_v36 = vadd.f32 %v1691_v3, %v762_v31  ;;  %v764_v37 = vpop.f32.mrb[7].mxu1 }
 0x126   : > { %v1333_v38 = vpack.c.bf16 %v848_v32, %v848_v32  ;;  %v849_v39 = vmax.f32 %v659_v33, 0.0  ;;  %v1359_v40 = vpack.c.bf16 %v874_v35, %v874_v35  ;;  %v875_v41 = vmax.f32 %v763_v36, 0.0 }
 0x128   : > { %1099 = vst.msk [vmem:[%s1701_s16 + $0x8] sm:$0xf] %vm1096_vm0, %v1333_v38  ;;  %v1334_v42 = vpack.c.bf16 %v849_v39, %v849_v39  ;;  %1125 = vst.msk [vmem:[%s1701_s16 + $0x70] sm:$0xf] %vm1096_vm0, %v1359_v40  ;;  %v1360_v43 = vpack.c.bf16 %v875_v41, %v875_v41 }
 0x129   : > { %v663_v44 = vpop.f32.mrb[8].mxu0  ;;  %v767_v45 = vpop.f32.mrb[8].mxu1 }
 0x12a   : > { %1100 = vst.msk [vmem:[%s1701_s16 + $0xc] sm:$0xf] %vm1096_vm0, %v1334_v42  ;;  %1126 = vst.msk [vmem:[%s1701_s16 + $0x74] sm:$0xf] %vm1096_vm0, %v1360_v43  ;;  %v664_v46 = vadd.f32 %v1691_v3, %v663_v44  ;;  %v665_v47 = vpop.f32.mrb[9].mxu0  ;;  %v768_v48 = vadd.f32 %v1691_v3, %v767_v45  ;;  %v769_v49 = vpop.f32.mrb[9].mxu1 }
 0x12b   : > { %v666_v50 = vpop.f32.mrb[10].mxu0  ;;  %v770_v51 = vpop.f32.mrb[10].mxu1 }
 0x12c   : > { %v850_v52 = vmax.f32 %v664_v46, 0.0  ;;  %v667_v53 = vadd.f32 %v1691_v3, %v666_v50  ;;  %v668_v54 = vpop.f32.mrb[11].mxu0  ;;  %v876_v55 = vmax.f32 %v768_v48, 0.0  ;;  %v771_v56 = vadd.f32 %v1691_v3, %v770_v51  ;;  %v772_v57 = vpop.f32.mrb[11].mxu1 }
 0x12e   : > { %v1335_v58 = vpack.c.bf16 %v850_v52, %v850_v52  ;;  %v851_v59 = vmax.f32 %v667_v53, 0.0  ;;  %v1361_v60 = vpack.c.bf16 %v876_v55, %v876_v55  ;;  %v877_v61 = vmax.f32 %v771_v56, 0.0 }
 0x130   : > { %1101 = vst.msk [vmem:[%s1701_s16 + $0x10] sm:$0xf] %vm1096_vm0, %v1335_v58  ;;  %v1336_v62 = vpack.c.bf16 %v851_v59, %v851_v59  ;;  %1127 = vst.msk [vmem:[%s1701_s16 + $0x78] sm:$0xf] %vm1096_vm0, %v1361_v60  ;;  %v1362_v63 = vpack.c.bf16 %v877_v61, %v877_v61 }
 0x131   : > { %v671_v0 = vpop.f32.mrb[12].mxu0  ;;  %v775_v1 = vpop.f32.mrb[12].mxu1 }
 0x132   : > { %1102 = vst.msk [vmem:[%s1701_s16 + $0x14] sm:$0xf] %vm1096_vm0, %v1336_v62  ;;  %1128 = vst.msk [vmem:[%s1701_s16 + $0x7c] sm:$0xf] %vm1096_vm0, %v1362_v63  ;;  %v672_v2 = vadd.f32 %v1691_v3, %v671_v0  ;;  %v673_v4 = vpop.f32.mrb[13].mxu0  ;;  %v776_v5 = vadd.f32 %v1691_v3, %v775_v1  ;;  %v777_v6 = vpop.f32.mrb[13].mxu1 }
 0x133   : > { %v674_v7 = vpop.f32.mrb[14].mxu0  ;;  %v778_v8 = vpop.f32.mrb[14].mxu1 }
 0x134   : > { %v852_v9 = vmax.f32 %v672_v2, 0.0  ;;  %v675_v10 = vadd.f32 %v1691_v3, %v674_v7  ;;  %v676_v11 = vpop.f32.mrb[15].mxu0  ;;  %v878_v12 = vmax.f32 %v776_v5, 0.0  ;;  %v779_v13 = vadd.f32 %v1691_v3, %v778_v8  ;;  %v780_v14 = vpop.f32.mrb[15].mxu1 }
 0x136   : > { %v1337_v15 = vpack.c.bf16 %v852_v9, %v852_v9  ;;  %v853_v16 = vmax.f32 %v675_v10, 0.0  ;;  %v1363_v17 = vpack.c.bf16 %v878_v12, %v878_v12  ;;  %v879_v18 = vmax.f32 %v779_v13, 0.0 }
 0x138   : > { %1103 = vst.msk [vmem:[%s1701_s16 + $0x18] sm:$0xf] %vm1096_vm0, %v1337_v15  ;;  %v1338_v19 = vpack.c.bf16 %v853_v16, %v853_v16  ;;  %1129 = vst.msk [vmem:[%s1701_s16 + $0x80] sm:$0xf] %vm1096_vm0, %v1363_v17  ;;  %v1364_v20 = vpack.c.bf16 %v879_v18, %v879_v18 }
 0x139   : > { %v679_v21 = vpop.f32.mrb[16].mxu0  ;;  %v783_v22 = vpop.f32.mrb[16].mxu1 }
 0x13a   : > { %1104 = vst.msk [vmem:[%s1701_s16 + $0x1c] sm:$0xf] %vm1096_vm0, %v1338_v19  ;;  %1130 = vst.msk [vmem:[%s1701_s16 + $0x84] sm:$0xf] %vm1096_vm0, %v1364_v20  ;;  %v680_v23 = vadd.f32 %v1691_v3, %v679_v21  ;;  %v681_v24 = vpop.f32.mrb[17].mxu0  ;;  %v784_v25 = vadd.f32 %v1691_v3, %v783_v22  ;;  %v785_v26 = vpop.f32.mrb[17].mxu1 }
 0x13b   : > { %v682_v27 = vpop.f32.mrb[18].mxu0  ;;  %v786_v28 = vpop.f32.mrb[18].mxu1 }
 0x13c   : > { %v854_v29 = vmax.f32 %v680_v23, 0.0  ;;  %v683_v30 = vadd.f32 %v1691_v3, %v682_v27  ;;  %v684_v31 = vpop.f32.mrb[19].mxu0  ;;  %v880_v32 = vmax.f32 %v784_v25, 0.0  ;;  %v787_v33 = vadd.f32 %v1691_v3, %v786_v28  ;;  %v788_v34 = vpop.f32.mrb[19].mxu1 }
 0x13e   : > { %v1339_v35 = vpack.c.bf16 %v854_v29, %v854_v29  ;;  %v855_v36 = vmax.f32 %v683_v30, 0.0  ;;  %v1365_v37 = vpack.c.bf16 %v880_v32, %v880_v32  ;;  %v881_v38 = vmax.f32 %v787_v33, 0.0 }
 0x140   : > { %1105 = vst.msk [vmem:[%s1701_s16 + $0x20] sm:$0xf] %vm1096_vm0, %v1339_v35  ;;  %v1340_v39 = vpack.c.bf16 %v855_v36, %v855_v36  ;;  %1131 = vst.msk [vmem:[%s1701_s16 + $0x88] sm:$0xf] %vm1096_vm0, %v1365_v37  ;;  %v1366_v40 = vpack.c.bf16 %v881_v38, %v881_v38 }
 0x141   : > { %v687_v41 = vpop.f32.mrb[20].mxu0  ;;  %v791_v42 = vpop.f32.mrb[20].mxu1 }
 0x142   : > { %1106 = vst.msk [vmem:[%s1701_s16 + $0x24] sm:$0xf] %vm1096_vm0, %v1340_v39  ;;  %1132 = vst.msk [vmem:[%s1701_s16 + $0x8c] sm:$0xf] %vm1096_vm0, %v1366_v40  ;;  %v688_v43 = vadd.f32 %v1691_v3, %v687_v41  ;;  %v689_v44 = vpop.f32.mrb[21].mxu0  ;;  %v792_v45 = vadd.f32 %v1691_v3, %v791_v42  ;;  %v793_v46 = vpop.f32.mrb[21].mxu1 }
 0x143   : > { %v690_v47 = vpop.f32.mrb[22].mxu0  ;;  %v794_v48 = vpop.f32.mrb[22].mxu1 }
 0x144   : > { %v856_v49 = vmax.f32 %v688_v43, 0.0  ;;  %v691_v50 = vadd.f32 %v1691_v3, %v690_v47  ;;  %v692_v51 = vpop.f32.mrb[23].mxu0  ;;  %v882_v52 = vmax.f32 %v792_v45, 0.0  ;;  %v795_v53 = vadd.f32 %v1691_v3, %v794_v48  ;;  %v796_v54 = vpop.f32.mrb[23].mxu1 }
 0x146   : > { %v1341_v55 = vpack.c.bf16 %v856_v49, %v856_v49  ;;  %v857_v56 = vmax.f32 %v691_v50, 0.0  ;;  %v1367_v57 = vpack.c.bf16 %v882_v52, %v882_v52  ;;  %v883_v58 = vmax.f32 %v795_v53, 0.0 }
 0x148   : > { %1107 = vst.msk [vmem:[%s1701_s16 + $0x28] sm:$0xf] %vm1096_vm0, %v1341_v55  ;;  %v1342_v59 = vpack.c.bf16 %v857_v56, %v857_v56  ;;  %1133 = vst.msk [vmem:[%s1701_s16 + $0x90] sm:$0xf] %vm1096_vm0, %v1367_v57  ;;  %v1368_v60 = vpack.c.bf16 %v883_v58, %v883_v58 }
 0x149   : > { %v695_v61 = vpop.f32.mrb[24].mxu0  ;;  %v799_v62 = vpop.f32.mrb[24].mxu1 }
 0x14a   : > { %1108 = vst.msk [vmem:[%s1701_s16 + $0x2c] sm:$0xf] %vm1096_vm0, %v1342_v59  ;;  %1134 = vst.msk [vmem:[%s1701_s16 + $0x94] sm:$0xf] %vm1096_vm0, %v1368_v60  ;;  %v696_v63 = vadd.f32 %v1691_v3, %v695_v61  ;;  %v697_v0 = vpop.f32.mrb[25].mxu0  ;;  %v800_v1 = vadd.f32 %v1691_v3, %v799_v62  ;;  %v801_v2 = vpop.f32.mrb[25].mxu1 }
 0x14b   : > { %v698_v4 = vpop.f32.mrb[26].mxu0  ;;  %v802_v5 = vpop.f32.mrb[26].mxu1 }
 0x14c   : > { %v858_v6 = vmax.f32 %v696_v63, 0.0  ;;  %v699_v7 = vadd.f32 %v1691_v3, %v698_v4  ;;  %v700_v8 = vpop.f32.mrb[27].mxu0  ;;  %v884_v9 = vmax.f32 %v800_v1, 0.0  ;;  %v803_v10 = vadd.f32 %v1691_v3, %v802_v5  ;;  %v804_v11 = vpop.f32.mrb[27].mxu1 }
 0x14e   : > { %v1343_v12 = vpack.c.bf16 %v858_v6, %v858_v6  ;;  %v859_v13 = vmax.f32 %v699_v7, 0.0  ;;  %v1369_v14 = vpack.c.bf16 %v884_v9, %v884_v9  ;;  %v885_v15 = vmax.f32 %v803_v10, 0.0 }
 0x150   : > { %1109 = vst.msk [vmem:[%s1701_s16 + $0x30] sm:$0xf] %vm1096_vm0, %v1343_v12  ;;  %v1344_v16 = vpack.c.bf16 %v859_v13, %v859_v13  ;;  %1135 = vst.msk [vmem:[%s1701_s16 + $0x98] sm:$0xf] %vm1096_vm0, %v1369_v14  ;;  %v1370_v17 = vpack.c.bf16 %v885_v15, %v885_v15 }
 0x151   : > { %v703_v18 = vpop.f32.mrb[28].mxu0  ;;  %v807_v19 = vpop.f32.mrb[28].mxu1 }
 0x152   : > { %1110 = vst.msk [vmem:[%s1701_s16 + $0x34] sm:$0xf] %vm1096_vm0, %v1344_v16  ;;  %1136 = vst.msk [vmem:[%s1701_s16 + $0x9c] sm:$0xf] %vm1096_vm0, %v1370_v17  ;;  %v704_v20 = vadd.f32 %v1691_v3, %v703_v18  ;;  %v705_v21 = vpop.f32.mrb[29].mxu0  ;;  %v808_v22 = vadd.f32 %v1691_v3, %v807_v19  ;;  %v809_v23 = vpop.f32.mrb[29].mxu1 }
 0x153   : > { %v706_v24 = vpop.f32.mrb[30].mxu0  ;;  %v810_v25 = vpop.f32.mrb[30].mxu1 }
 0x154   : > { %v860_v26 = vmax.f32 %v704_v20, 0.0  ;;  %v707_v27 = vadd.f32 %v1691_v3, %v706_v24  ;;  %v708_v28 = vpop.f32.mrb[31].mxu0  ;;  %v886_v29 = vmax.f32 %v808_v22, 0.0  ;;  %v811_v30 = vadd.f32 %v1691_v3, %v810_v25  ;;  %v812_v31 = vpop.f32.mrb[31].mxu1 }
 0x156   : > { %v1345_v32 = vpack.c.bf16 %v860_v26, %v860_v26  ;;  %v861_v33 = vmax.f32 %v707_v27, 0.0  ;;  %v1371_v34 = vpack.c.bf16 %v886_v29, %v886_v29  ;;  %v887_v35 = vmax.f32 %v811_v30, 0.0 }
 0x158   : > { %1111 = vst.msk [vmem:[%s1701_s16 + $0x38] sm:$0xf] %vm1096_vm0, %v1345_v32  ;;  %v1346_v36 = vpack.c.bf16 %v861_v33, %v861_v33  ;;  %1137 = vst.msk [vmem:[%s1701_s16 + $0xa0] sm:$0xf] %vm1096_vm0, %v1371_v34  ;;  %v1372_v37 = vpack.c.bf16 %v887_v35, %v887_v35 }
 0x159   : > { %v711_v38 = vpop.f32.mrb[32].mxu0  ;;  %v815_v39 = vpop.f32.mrb[32].mxu1 }
 0x15a   : > { %1112 = vst.msk [vmem:[%s1701_s16 + $0x3c] sm:$0xf] %vm1096_vm0, %v1346_v36  ;;  %1138 = vst.msk [vmem:[%s1701_s16 + $0xa4] sm:$0xf] %vm1096_vm0, %v1372_v37  ;;  %v712_v40 = vadd.f32 %v1691_v3, %v711_v38  ;;  %v713_v41 = vpop.f32.mrb[33].mxu0  ;;  %v816_v42 = vadd.f32 %v1691_v3, %v815_v39  ;;  %v817_v43 = vpop.f32.mrb[33].mxu1 }
 0x15b   : > { %v714_v44 = vpop.f32.mrb[34].mxu0  ;;  %v818_v45 = vpop.f32.mrb[34].mxu1 }
 0x15c   : > { %v862_v46 = vmax.f32 %v712_v40, 0.0  ;;  %v715_v47 = vadd.f32 %v1691_v3, %v714_v44  ;;  %v716_v48 = vpop.f32.mrb[35].mxu0  ;;  %v888_v49 = vmax.f32 %v816_v42, 0.0  ;;  %v819_v50 = vadd.f32 %v1691_v3, %v818_v45  ;;  %v820_v51 = vpop.f32.mrb[35].mxu1 }
 0x15e   : > { %v1347_v52 = vpack.c.bf16 %v862_v46, %v862_v46  ;;  %v863_v53 = vmax.f32 %v715_v47, 0.0  ;;  %v1373_v54 = vpack.c.bf16 %v888_v49, %v888_v49  ;;  %v889_v55 = vmax.f32 %v819_v50, 0.0 }
 0x160   : > { %1113 = vst.msk [vmem:[%s1701_s16 + $0x40] sm:$0xf] %vm1096_vm0, %v1347_v52  ;;  %v1348_v56 = vpack.c.bf16 %v863_v53, %v863_v53  ;;  %1139 = vst.msk [vmem:[%s1701_s16 + $0xa8] sm:$0xf] %vm1096_vm0, %v1373_v54  ;;  %v1374_v57 = vpack.c.bf16 %v889_v55, %v889_v55 }
 0x161   : > { %v719_v58 = vpop.f32.mrb[36].mxu0  ;;  %v823_v59 = vpop.f32.mrb[36].mxu1 }
 0x162   : > { %1114 = vst.msk [vmem:[%s1701_s16 + $0x44] sm:$0xf] %vm1096_vm0, %v1348_v56  ;;  %1140 = vst.msk [vmem:[%s1701_s16 + $0xac] sm:$0xf] %vm1096_vm0, %v1374_v57  ;;  %v720_v60 = vadd.f32 %v1691_v3, %v719_v58  ;;  %v721_v61 = vpop.f32.mrb[37].mxu0  ;;  %v824_v62 = vadd.f32 %v1691_v3, %v823_v59  ;;  %v825_v63 = vpop.f32.mrb[37].mxu1 }
 0x163   : > { %v722_v0 = vpop.f32.mrb[38].mxu0  ;;  %v826_v1 = vpop.f32.mrb[38].mxu1 }
 0x164   : > { %v864_v2 = vmax.f32 %v720_v60, 0.0  ;;  %v723_v4 = vadd.f32 %v1691_v3, %v722_v0  ;;  %v724_v5 = vpop.f32.mrb[39].mxu0  ;;  %v890_v6 = vmax.f32 %v824_v62, 0.0  ;;  %v827_v7 = vadd.f32 %v1691_v3, %v826_v1  ;;  %v828_v8 = vpop.f32.mrb[39].mxu1 }
 0x166   : > { %v1349_v9 = vpack.c.bf16 %v864_v2, %v864_v2  ;;  %v865_v10 = vmax.f32 %v723_v4, 0.0  ;;  %v1375_v11 = vpack.c.bf16 %v890_v6, %v890_v6  ;;  %v891_v12 = vmax.f32 %v827_v7, 0.0 }
 0x168   : > { %1115 = vst.msk [vmem:[%s1701_s16 + $0x48] sm:$0xf] %vm1096_vm0, %v1349_v9  ;;  %v1350_v13 = vpack.c.bf16 %v865_v10, %v865_v10  ;;  %1141 = vst.msk [vmem:[%s1701_s16 + $0xb0] sm:$0xf] %vm1096_vm0, %v1375_v11  ;;  %v1376_v14 = vpack.c.bf16 %v891_v12, %v891_v12 }
 0x169   : > { %v727_v15 = vpop.f32.mrb[40].mxu0  ;;  %v831_v16 = vpop.f32.mrb[40].mxu1 }
 0x16a   : > { %1116 = vst.msk [vmem:[%s1701_s16 + $0x4c] sm:$0xf] %vm1096_vm0, %v1350_v13  ;;  %1142 = vst.msk [vmem:[%s1701_s16 + $0xb4] sm:$0xf] %vm1096_vm0, %v1376_v14  ;;  %v728_v17 = vadd.f32 %v1691_v3, %v727_v15  ;;  %v729_v18 = vpop.f32.mrb[41].mxu0  ;;  %v832_v19 = vadd.f32 %v1691_v3, %v831_v16  ;;  %v833_v20 = vpop.f32.mrb[41].mxu1 }
 0x16b   : > { %v730_v21 = vpop.f32.mrb[42].mxu0  ;;  %v834_v22 = vpop.f32.mrb[42].mxu1 }
 0x16c   : > { %v866_v23 = vmax.f32 %v728_v17, 0.0  ;;  %v731_v24 = vadd.f32 %v1691_v3, %v730_v21  ;;  %v732_v25 = vpop.f32.mrb[43].mxu0  ;;  %v892_v26 = vmax.f32 %v832_v19, 0.0  ;;  %v835_v27 = vadd.f32 %v1691_v3, %v834_v22  ;;  %v836_v28 = vpop.f32.mrb[43].mxu1 }
 0x16e   : > { %v1351_v29 = vpack.c.bf16 %v866_v23, %v866_v23  ;;  %v867_v30 = vmax.f32 %v731_v24, 0.0  ;;  %v1377_v31 = vpack.c.bf16 %v892_v26, %v892_v26  ;;  %v893_v32 = vmax.f32 %v835_v27, 0.0 }
 0x170   : > { %1117 = vst.msk [vmem:[%s1701_s16 + $0x50] sm:$0xf] %vm1096_vm0, %v1351_v29  ;;  %v1352_v33 = vpack.c.bf16 %v867_v30, %v867_v30  ;;  %1143 = vst.msk [vmem:[%s1701_s16 + $0xb8] sm:$0xf] %vm1096_vm0, %v1377_v31  ;;  %v1378_v34 = vpack.c.bf16 %v893_v32, %v893_v32 }
 0x171   : > { %v735_v35 = vpop.f32.mrb[44].mxu0  ;;  %v839_v36 = vpop.f32.mrb[44].mxu1 }
 0x172   : > { %1118 = vst.msk [vmem:[%s1701_s16 + $0x54] sm:$0xf] %vm1096_vm0, %v1352_v33  ;;  %1144 = vst.msk [vmem:[%s1701_s16 + $0xbc] sm:$0xf] %vm1096_vm0, %v1378_v34  ;;  %v736_v37 = vadd.f32 %v1691_v3, %v735_v35  ;;  %v737_v38 = vpop.f32.mrb[45].mxu0  ;;  %v840_v39 = vadd.f32 %v1691_v3, %v839_v36  ;;  %v841_v40 = vpop.f32.mrb[45].mxu1 }
 0x173   : > { %v738_v41 = vpop.f32.mrb[46].mxu0  ;;  %v842_v42 = vpop.f32.mrb[46].mxu1 }
 0x174   : > { %v868_v43 = vmax.f32 %v736_v37, 0.0  ;;  %v739_v44 = vadd.f32 %v1691_v3, %v738_v41  ;;  %v740_v45 = vpop.f32.mrb[47].mxu0  ;;  %v894_v46 = vmax.f32 %v840_v39, 0.0  ;;  %v843_v47 = vadd.f32 %v1691_v3, %v842_v42  ;;  %v844_v48 = vpop.f32.mrb[47].mxu1 }
 0x176   : > { %v1353_v49 = vpack.c.bf16 %v868_v43, %v868_v43  ;;  %v869_v50 = vmax.f32 %v739_v44, 0.0  ;;  %v1379_v51 = vpack.c.bf16 %v894_v46, %v894_v46  ;;  %v895_v52 = vmax.f32 %v843_v47, 0.0 }
 0x178   : > { %1119 = vst.msk [vmem:[%s1701_s16 + $0x58] sm:$0xf] %vm1096_vm0, %v1353_v49  ;;  %v1354_v53 = vpack.c.bf16 %v869_v50, %v869_v50  ;;  %1145 = vst.msk [vmem:[%s1701_s16 + $0xc0] sm:$0xf] %vm1096_vm0, %v1379_v51  ;;  %v1380_v54 = vpack.c.bf16 %v895_v52, %v895_v52 }
 0x179   : > { %v743_v55 = vpop.f32.mrb[48].mxu0 }
 0x17a   : > { %1120 = vst.msk [vmem:[%s1701_s16 + $0x5c] sm:$0xf] %vm1096_vm0, %v1354_v53  ;;  %1146 = vst.msk [vmem:[%s1701_s16 + $0xc4] sm:$0xf] %vm1096_vm0, %v1380_v54  ;;  %v744_v56 = vadd.f32 %v1691_v3, %v743_v55  ;;  %v745_v57 = vpop.f32.mrb[49].mxu0 }
 0x17b   : > { %v746_v58 = vpop.f32.mrb[50].mxu0 }
 0x17c   : > { %v870_v59 = vmax.f32 %v744_v56, 0.0  ;;  %v747_v60 = vadd.f32 %v1691_v3, %v746_v58  ;;  %v748_v61 = vpop.f32.mrb[51].mxu0 }
 0x17e   : > { %v1355_v62 = vpack.c.bf16 %v870_v59, %v870_v59  ;;  %v871_v63 = vmax.f32 %v747_v60, 0.0 }
 0x180   : > { %1121 = vst.msk [vmem:[%s1701_s16 + $0x60] sm:$0xf] %vm1096_vm0, %v1355_v62  ;;  %v1356_v0 = vpack.c.bf16 %v871_v63, %v871_v63 }
 0x182   : > { %1122 = vst.msk [vmem:[%s1701_s16 + $0x64] sm:$0xf] %vm1096_vm0, %v1356_v0 }
 0x183 PF: > { %s13_s12 = sadd.s32 1, %s1519_s12  }
 0x184   : > { %p10_p4 = scmp.ge.s32.totalorder %s13_s12, 4  }
 0x186   :  { %12 = sbr.rel (!%p10_p4) target bundleno = 1 (0x1), region = 62 }

// kernel: cnn_base_forward.5
= control target key start
LH: loop header
LB: loop body
LE: loop exit
PB: predicated region body
PF: predicated region fallthrough
CT: control target
= control target key end

     0   :  { %vm880_vm0 = vcmask 519168   ;;  %vm901_vm1 = vcmask 516096   ;;  %s1637_s1 = inlined_call_operand.vmem [shape: bf16[512,64], index: 1, kind: input, shape index: {}]   ;;  %s1638_s0 = inlined_call_operand.vmem [shape: bf16[162,512], index: 0, kind: input, shape index: {}]   ;;  %s1639_s2 = inlined_call_operand.vmem [shape: f32[1,64], index: 2, kind: input, shape index: {}]   ;;  %s1640_s3 = inlined_call_operand.vmem [shape: bf16[162,64], index: 3, kind: output, shape index: {}]  }
   0x1   :  { %v1190_v0 = vld [vmem:[%s1637_s1 + $0x40] sm:$0xff]   ;;  %v1194_v4 = vld [vmem:[%s1637_s1 + $0x48] sm:$0xff]   ;;  %v1198_v8 = vld [vmem:[%s1637_s1 + $0x50] sm:$0xff]  }
   0x2   :  { %v1191_v1 = vld [vmem:[%s1637_s1 + $0xc0] sm:$0xff]   ;;  %1026 = vmatprep.subr.bf16.mxu0 %v1190_v0  ;;  %v1195_v5 = vld [vmem:[%s1637_s1 + $0xc8] sm:$0xff]   ;;  %v1199_v9 = vld [vmem:[%s1637_s1 + $0xd0] sm:$0xff]  }
   0x3   :  { %v1192_v2 = vld [vmem:[%s1637_s1] sm:$0xff]   ;;  %1108 = vmatprep.subr.bf16.mxu1 %v1191_v1  ;;  %v1196_v6 = vld [vmem:[%s1637_s1 + $0x8] sm:$0xff]   ;;  %v1200_v10 = vld [vmem:[%s1637_s1 + $0x10] sm:$0xff]  }
   0x4   :  { %v1193_v3 = vld [vmem:[%s1637_s1 + $0x80] sm:$0xff]   ;;  %1027 = vmatpush3.bf16.msra.mxu0 %v1192_v2  ;;  %v1197_v7 = vld [vmem:[%s1637_s1 + $0x88] sm:$0xff]   ;;  %v1201_v11 = vld [vmem:[%s1637_s1 + $0x90] sm:$0xff]  }
   0x5   :  { %1109 = vmatpush3.bf16.msra.mxu1 %v1193_v3  ;;  %1028 = vmatprep.subr.bf16.mxu0 %v1194_v4  ;;  %v1202_v12 = vld [vmem:[%s1637_s1 + $0x58] sm:$0xff]   ;;  %v1206_v16 = vld [vmem:[%s1637_s1 + $0x60] sm:$0xff]   ;;  %v1210_v20 = vld [vmem:[%s1637_s1 + $0x68] sm:$0xff]  }
   0x6   :  { %1110 = vmatprep.subr.bf16.mxu1 %v1195_v5  ;;  %v1203_v13 = vld [vmem:[%s1637_s1 + $0xd8] sm:$0xff]   ;;  %v1207_v17 = vld [vmem:[%s1637_s1 + $0xe0] sm:$0xff]   ;;  %v1211_v21 = vld [vmem:[%s1637_s1 + $0xe8] sm:$0xff]  }
   0x7   :  { %v1204_v14 = vld [vmem:[%s1637_s1 + $0x18] sm:$0xff]   ;;  %v1208_v18 = vld [vmem:[%s1637_s1 + $0x20] sm:$0xff]   ;;  %v1212_v22 = vld [vmem:[%s1637_s1 + $0x28] sm:$0xff]  }
   0x8   :  { %1029 = vmatpush3.bf16.msra.mxu0 %v1196_v6  ;;  %v1205_v15 = vld [vmem:[%s1637_s1 + $0x98] sm:$0xff]   ;;  %v1209_v19 = vld [vmem:[%s1637_s1 + $0xa0] sm:$0xff]   ;;  %v1213_v23 = vld [vmem:[%s1637_s1 + $0xa8] sm:$0xff]  }
   0x9   :  { %1111 = vmatpush3.bf16.msra.mxu1 %v1197_v7  ;;  %1030 = vmatprep.subr.bf16.mxu0 %v1198_v8  ;;  %v1214_v24 = vld [vmem:[%s1637_s1 + $0x70] sm:$0xff]   ;;  %v1218_v28 = vld [vmem:[%s1637_s1 + $0x78] sm:$0xff]   ;;  %v55_v6 = vld [vmem:[%s1638_s0 + $0x140] sm:$0x11] }
   0xa   :  { %1112 = vmatprep.subr.bf16.mxu1 %v1199_v9  ;;  %v1215_v25 = vld [vmem:[%s1637_s1 + $0xf0] sm:$0xff]   ;;  %v1219_v29 = vld [vmem:[%s1637_s1 + $0xf8] sm:$0xff]   ;;  %v56_v7 = vld [vmem:[%s1638_s0 + $0x148] sm:$0x11] }
   0xb   :  { %v1216_v26 = vld [vmem:[%s1637_s1 + $0x30] sm:$0xff]   ;;  %v1220_v30 = vld [vmem:[%s1637_s1 + $0x38] sm:$0xff]  }
   0xc   :  { %1031 = vmatpush3.bf16.msra.mxu0 %v1200_v10  ;;  %v1217_v27 = vld [vmem:[%s1637_s1 + $0xb0] sm:$0xff]   ;;  %v1221_v31 = vld [vmem:[%s1637_s1 + $0xb8] sm:$0xff]   ;;  %v949_v10 = vcombine.high %v55_v6, %v55_v6 }
   0xd   :  { %1113 = vmatpush3.bf16.msra.mxu1 %v1201_v11  ;;  %1032 = vmatprep.subr.bf16.mxu0 %v1202_v12  ;;  %v1222_v32 = vld [vmem:[%s1638_s0] ss:$16 sps:$4 sm:$0xff]   ;;  %v1224_v33 = vld [vmem:[%s1638_s0 + $0x4] ss:$16 sps:$4 sm:$0xff]   ;;  %v1225_v34 = vld [vmem:[%s1638_s0 + $0x8] ss:$16 sps:$4 sm:$0xff]   ;;  %v951_v11 = vcombine.high %v56_v7, %v56_v7  ;;  %v948_v12 = vcombine.low %v55_v6, %v55_v6 }
   0xe   :  { %1114 = vmatprep.subr.bf16.mxu1 %v1203_v13  ;;  %v1227_v35 = vld [vmem:[%s1638_s0 + $0xc] ss:$16 sps:$4 sm:$0xff]   ;;  %566 = vmatprep.mubr.bf16.mxu0 %v1224_v33  ;;  %v1228_v36 = vld [vmem:[%s1638_s0 + $0x24] ss:$16 sps:$4 sm:$0xff]   ;;  %v1232_v38 = vld [vmem:[%s1638_s0 + $0x20] ss:$16 sps:$4 sm:$0xff]   ;;  %v950_v13 = vcombine.low %v56_v7, %v56_v7 }
   0xf   :  { %686 = vmatprep.mubr.bf16.mxu1 %v1227_v35  ;;  %v1230_v37 = vld [vmem:[%s1638_s0 + $0x2c] ss:$16 sps:$4 sm:$0xff]   ;;  %v1233_v39 = vld [vmem:[%s1638_s0 + $0x28] ss:$16 sps:$4 sm:$0xff]   ;;  %v1234_v40 = vld [vmem:[%s1638_s0 + $0x44] ss:$16 sps:$4 sm:$0xff]  }
  0x10   :  { %1033 = vmatpush3.bf16.msra.mxu0 %v1204_v14  ;;  %v1236_v41 = vld [vmem:[%s1638_s0 + $0x4c] ss:$16 sps:$4 sm:$0xff]   ;;  %v1238_v42 = vld [vmem:[%s1638_s0 + $0x40] ss:$16 sps:$4 sm:$0xff]   ;;  %v1239_v43 = vld [vmem:[%s1638_s0 + $0x48] ss:$16 sps:$4 sm:$0xff]  }
  0x11   :  { %1115 = vmatpush3.bf16.msra.mxu1 %v1205_v15  ;;  %1034 = vmatprep.subr.bf16.mxu0 %v1206_v16  ;;  %v1240_v44 = vld [vmem:[%s1638_s0 + $0x64] ss:$16 sps:$4 sm:$0xff]   ;;  %v1242_v45 = vld [vmem:[%s1638_s0 + $0x6c] ss:$16 sps:$4 sm:$0xff]   ;;  %v1244_v46 = vld [vmem:[%s1638_s0 + $0x60] ss:$16 sps:$4 sm:$0xff]  }
  0x12   :  { %1116 = vmatprep.subr.bf16.mxu1 %v1207_v17  ;;  %v1245_v47 = vld [vmem:[%s1638_s0 + $0x68] ss:$16 sps:$4 sm:$0xff]   ;;  %v1246_v48 = vld [vmem:[%s1638_s0 + $0x84] ss:$16 sps:$4 sm:$0xff]   ;;  %v1248_v49 = vld [vmem:[%s1638_s0 + $0x8c] ss:$16 sps:$4 sm:$0xff]  }
  0x13   :  { %v1250_v50 = vld [vmem:[%s1638_s0 + $0x80] ss:$16 sps:$4 sm:$0xff]   ;;  %v1251_v51 = vld [vmem:[%s1638_s0 + $0x88] ss:$16 sps:$4 sm:$0xff]   ;;  %v1252_v52 = vld [vmem:[%s1638_s0 + $0xa4] ss:$16 sps:$4 sm:$0xff]  }
  0x14   :  { %1035 = vmatpush3.bf16.msra.mxu0 %v1208_v18  ;;  %v1254_v53 = vld [vmem:[%s1638_s0 + $0xac] ss:$16 sps:$4 sm:$0xff]   ;;  %v1256_v54 = vld [vmem:[%s1638_s0 + $0xa0] ss:$16 sps:$4 sm:$0xff]   ;;  %v1257_v55 = vld [vmem:[%s1638_s0 + $0xa8] ss:$16 sps:$4 sm:$0xff]  }
  0x15   :  { %1117 = vmatpush3.bf16.msra.mxu1 %v1209_v19  ;;  %1036 = vmatprep.subr.bf16.mxu0 %v1210_v20  ;;  %v1258_v56 = vld [vmem:[%s1638_s0 + $0xc4] ss:$16 sps:$4 sm:$0xff]   ;;  %v1260_v57 = vld [vmem:[%s1638_s0 + $0xcc] ss:$16 sps:$4 sm:$0xff]   ;;  %v1262_v58 = vld [vmem:[%s1638_s0 + $0xc0] ss:$16 sps:$4 sm:$0xff]  }
  0x16   :  { %1118 = vmatprep.subr.bf16.mxu1 %v1211_v21  ;;  %v1263_v59 = vld [vmem:[%s1638_s0 + $0xc8] ss:$16 sps:$4 sm:$0xff]   ;;  %v1264_v60 = vld [vmem:[%s1638_s0 + $0xe4] ss:$16 sps:$4 sm:$0xff]   ;;  %v1266_v61 = vld [vmem:[%s1638_s0 + $0xec] ss:$16 sps:$4 sm:$0xff]  }
  0x17   :  { %v1268_v62 = vld [vmem:[%s1638_s0 + $0xe0] ss:$16 sps:$4 sm:$0xff]   ;;  %v1269_v63 = vld [vmem:[%s1638_s0 + $0xe8] ss:$16 sps:$4 sm:$0xff]   ;;  %v1270_v0 = vld [vmem:[%s1638_s0 + $0x104] ss:$16 sps:$4 sm:$0xff]  }
  0x18   :  { %1037 = vmatpush3.bf16.msra.mxu0 %v1212_v22  ;;  %v1272_v1 = vld [vmem:[%s1638_s0 + $0x10c] ss:$16 sps:$4 sm:$0xff]   ;;  %v1274_v2 = vld [vmem:[%s1638_s0 + $0x100] ss:$16 sps:$4 sm:$0xff]   ;;  %v1275_v3 = vld [vmem:[%s1638_s0 + $0x108] ss:$16 sps:$4 sm:$0xff]  }
  0x19   :  { %1119 = vmatpush3.bf16.msra.mxu1 %v1213_v23  ;;  %1038 = vmatprep.subr.bf16.mxu0 %v1214_v24  ;;  %v1276_v4 = vld [vmem:[%s1638_s0 + $0x124] ss:$16 sps:$4 sm:$0xff]   ;;  %v1278_v5 = vld [vmem:[%s1638_s0 + $0x12c] ss:$16 sps:$4 sm:$0xff]   ;;  %v1280_v8 = vld [vmem:[%s1638_s0 + $0x120] ss:$16 sps:$4 sm:$0xff]  }
  0x1a   :  { %1120 = vmatprep.subr.bf16.mxu1 %v1215_v25  ;;  %v1281_v9 = vld [vmem:[%s1638_s0 + $0x128] ss:$16 sps:$4 sm:$0xff]   ;;  %v1531_v16 = vld [vmem:[%s1639_s2] ss:$0 sm:$0xff] }
  0x1c   :  { %1039 = vmatpush3.bf16.msra.mxu0 %v1216_v26 }
  0x1d   :  { %1121 = vmatpush3.bf16.msra.mxu1 %v1217_v27  ;;  %1040 = vmatprep.subr.bf16.mxu0 %v1218_v28 }
  0x1e   :  { %1122 = vmatprep.subr.bf16.mxu1 %v1219_v29 }
  0x20   :  { %1041 = vmatpush3.bf16.msra.mxu0 %v1220_v30 }
  0x21   :  { %1123 = vmatpush3.bf16.msra.mxu1 %v1221_v31 }
  0x23   :  { %567 = vmatmul.mubr.bf16.vlgmr.msra.gmra.mrb[0].mxu0 %v1222_v32 }
  0x24   :  { %687 = vmatmul.mubr.bf16.vlgmr.msra.gmra.mrb[0].mxu1 %v1225_v34  ;;  %574 = vmatprep.mubr.bf16.mxu0 %v1228_v36 }
  0x25   :  { %694 = vmatprep.mubr.bf16.mxu1 %v1230_v37 }
  0x2b   :  { %575 = vmatmul.mubr.bf16.gmra.mrb[4].mxu0 %v1232_v38 }
  0x2c   :  { %695 = vmatmul.mubr.bf16.gmra.mrb[4].mxu1 %v1233_v39  ;;  %582 = vmatprep.mubr.bf16.mxu0 %v1234_v40 }
  0x2d   :  { %702 = vmatprep.mubr.bf16.mxu1 %v1236_v41 }
  0x33   :  { %583 = vmatmul.mubr.bf16.gmra.mrb[8].mxu0 %v1238_v42 }
  0x34   :  { %703 = vmatmul.mubr.bf16.gmra.mrb[8].mxu1 %v1239_v43  ;;  %590 = vmatprep.mubr.bf16.mxu0 %v1240_v44 }
  0x35   :  { %710 = vmatprep.mubr.bf16.mxu1 %v1242_v45 }
  0x3b   :  { %591 = vmatmul.mubr.bf16.gmra.mrb[12].mxu0 %v1244_v46 }
  0x3c   :  { %711 = vmatmul.mubr.bf16.gmra.mrb[12].mxu1 %v1245_v47  ;;  %598 = vmatprep.mubr.bf16.mxu0 %v1246_v48 }
  0x3d   :  { %718 = vmatprep.mubr.bf16.mxu1 %v1248_v49 }
  0x43   :  { %599 = vmatmul.mubr.bf16.gmra.mrb[16].mxu0 %v1250_v50 }
  0x44   :  { %719 = vmatmul.mubr.bf16.gmra.mrb[16].mxu1 %v1251_v51  ;;  %606 = vmatprep.mubr.bf16.mxu0 %v1252_v52 }
  0x45   :  { %726 = vmatprep.mubr.bf16.mxu1 %v1254_v53 }
  0x4b   :  { %607 = vmatmul.mubr.bf16.gmra.mrb[20].mxu0 %v1256_v54 }
  0x4c   :  { %727 = vmatmul.mubr.bf16.gmra.mrb[20].mxu1 %v1257_v55  ;;  %614 = vmatprep.mubr.bf16.mxu0 %v1258_v56 }
  0x4d   :  { %734 = vmatprep.mubr.bf16.mxu1 %v1260_v57 }
  0x53   :  { %615 = vmatmul.mubr.bf16.gmra.mrb[24].mxu0 %v1262_v58 }
  0x54   :  { %735 = vmatmul.mubr.bf16.gmra.mrb[24].mxu1 %v1263_v59  ;;  %622 = vmatprep.mubr.bf16.mxu0 %v1264_v60 }
  0x55   :  { %742 = vmatprep.mubr.bf16.mxu1 %v1266_v61 }
  0x5b   :  { %623 = vmatmul.mubr.bf16.gmra.mrb[28].mxu0 %v1268_v62 }
  0x5c   :  { %743 = vmatmul.mubr.bf16.gmra.mrb[28].mxu1 %v1269_v63  ;;  %630 = vmatprep.mubr.bf16.mxu0 %v1270_v0 }
  0x5d   :  { %750 = vmatprep.mubr.bf16.mxu1 %v1272_v1 }
  0x63   :  { %631 = vmatmul.mubr.bf16.gmra.mrb[32].mxu0 %v1274_v2 }
  0x64   :  { %751 = vmatmul.mubr.bf16.gmra.mrb[32].mxu1 %v1275_v3  ;;  %638 = vmatprep.mubr.bf16.mxu0 %v1276_v4 }
  0x65   :  { %758 = vmatprep.mubr.bf16.mxu1 %v1278_v5 }
  0x6b   :  { %639 = vmatmul.mubr.bf16.gmra.mrb[36].mxu0 %v1280_v8 }
  0x6c   :  { %759 = vmatmul.mubr.bf16.gmra.mrb[36].mxu1 %v1281_v9  ;;  %646 = vmatprep.mubr.bf16.mxu0 %v949_v10 }
  0x6d   :  { %766 = vmatprep.mubr.bf16.mxu1 %v951_v11 }
  0x73   :  { %647 = vmatmul.mubr.bf16.gmra.mrb[40].mxu0 %v948_v12 }
  0x74   :  { %767 = vmatmul.mubr.bf16.gmra.mrb[40].mxu1 %v950_v13 }
  0xf6   :  { %v1042_v14 = vpop.f32.mrb[0].mxu0 }
  0xf7   :  { %v1124_v15 = vpop.f32.mrb[0].mxu1  ;;  %v1043_v17 = vpop.f32.mrb[1].mxu0 }
  0xf8   :  { %v1044_v18 = vadd.f32 %v1043_v17, %v1042_v14  ;;  %v1125_v19 = vpop.f32.mrb[1].mxu1  ;;  %v1045_v20 = vpop.f32.mrb[2].mxu0 }
  0xf9   :  { %v1126_v21 = vadd.f32 %v1125_v19, %v1124_v15  ;;  %v1127_v22 = vpop.f32.mrb[2].mxu1  ;;  %v1046_v23 = vpop.f32.mrb[3].mxu0 }
  0xfa   :  { %v569_v24 = vadd.f32 %v1044_v18, %v1531_v16  ;;  %v1047_v25 = vadd.f32 %v1046_v23, %v1045_v20  ;;  %v1128_v26 = vpop.f32.mrb[3].mxu1 }
  0xfb   :  { %v1129_v27 = vadd.f32 %v1128_v26, %v1127_v22 }
  0xfc   :  { %v689_v28 = vadd.f32 %v1126_v21, %v569_v24  ;;  %v572_v29 = vadd.f32 %v1047_v25, %v1531_v16 }
  0xfe   :  { %v774_v30 = vmax.f32 %v689_v28, 0.0  ;;  %v692_v31 = vadd.f32 %v1129_v27, %v572_v29  ;;  %v1048_v32 = vpop.f32.mrb[4].mxu0 }
  0xff   :  { %v1130_v33 = vpop.f32.mrb[4].mxu1  ;;  %v1049_v34 = vpop.f32.mrb[5].mxu0 }
 0x100   :  { %v1005_v35 = vpack.c.bf16 %v774_v30, %v774_v30  ;;  %v775_v36 = vmax.f32 %v692_v31, 0.0  ;;  %v1050_v37 = vadd.f32 %v1049_v34, %v1048_v32  ;;  %v1131_v38 = vpop.f32.mrb[5].mxu1  ;;  %v1051_v39 = vpop.f32.mrb[6].mxu0 }
 0x101   :  { %v1132_v40 = vadd.f32 %v1131_v38, %v1130_v33  ;;  %v1133_v41 = vpop.f32.mrb[6].mxu1  ;;  %v1052_v42 = vpop.f32.mrb[7].mxu0 }
 0x102   :  { %881 = vst.msk [vmem:[%s1640_s3] sm:$0xf] %vm880_vm0, %v1005_v35  ;;  %v1006_v43 = vpack.c.bf16 %v775_v36, %v775_v36  ;;  %v577_v44 = vadd.f32 %v1050_v37, %v1531_v16  ;;  %v1053_v45 = vadd.f32 %v1052_v42, %v1051_v39  ;;  %v1134_v46 = vpop.f32.mrb[7].mxu1 }
 0x103   :  { %v1135_v47 = vadd.f32 %v1134_v46, %v1133_v41 }
 0x104   :  { %882 = vst.msk [vmem:[%s1640_s3 + $0x4] sm:$0xf] %vm880_vm0, %v1006_v43  ;;  %v697_v48 = vadd.f32 %v1132_v40, %v577_v44  ;;  %v580_v49 = vadd.f32 %v1053_v45, %v1531_v16 }
 0x106   :  { %v776_v50 = vmax.f32 %v697_v48, 0.0  ;;  %v700_v51 = vadd.f32 %v1135_v47, %v580_v49  ;;  %v1054_v52 = vpop.f32.mrb[8].mxu0 }
 0x107   :  { %v1136_v53 = vpop.f32.mrb[8].mxu1  ;;  %v1055_v54 = vpop.f32.mrb[9].mxu0 }
 0x108   :  { %v1007_v55 = vpack.c.bf16 %v776_v50, %v776_v50  ;;  %v777_v56 = vmax.f32 %v700_v51, 0.0  ;;  %v1056_v57 = vadd.f32 %v1055_v54, %v1054_v52  ;;  %v1137_v58 = vpop.f32.mrb[9].mxu1  ;;  %v1057_v59 = vpop.f32.mrb[10].mxu0 }
 0x109   :  { %v1138_v60 = vadd.f32 %v1137_v58, %v1136_v53  ;;  %v1139_v61 = vpop.f32.mrb[10].mxu1  ;;  %v1058_v62 = vpop.f32.mrb[11].mxu0 }
 0x10a   :  { %883 = vst.msk [vmem:[%s1640_s3 + $0x8] sm:$0xf] %vm880_vm0, %v1007_v55  ;;  %v1008_v63 = vpack.c.bf16 %v777_v56, %v777_v56  ;;  %v585_v0 = vadd.f32 %v1056_v57, %v1531_v16  ;;  %v1059_v1 = vadd.f32 %v1058_v62, %v1057_v59  ;;  %v1140_v2 = vpop.f32.mrb[11].mxu1 }
 0x10b   :  { %v1141_v3 = vadd.f32 %v1140_v2, %v1139_v61 }
 0x10c   :  { %884 = vst.msk [vmem:[%s1640_s3 + $0xc] sm:$0xf] %vm880_vm0, %v1008_v63  ;;  %v705_v4 = vadd.f32 %v1138_v60, %v585_v0  ;;  %v588_v5 = vadd.f32 %v1059_v1, %v1531_v16 }
 0x10e   :  { %v778_v6 = vmax.f32 %v705_v4, 0.0  ;;  %v708_v7 = vadd.f32 %v1141_v3, %v588_v5  ;;  %v1060_v8 = vpop.f32.mrb[12].mxu0 }
 0x10f   :  { %v1142_v9 = vpop.f32.mrb[12].mxu1  ;;  %v1061_v10 = vpop.f32.mrb[13].mxu0 }
 0x110   :  { %v1009_v11 = vpack.c.bf16 %v778_v6, %v778_v6  ;;  %v779_v12 = vmax.f32 %v708_v7, 0.0  ;;  %v1062_v13 = vadd.f32 %v1061_v10, %v1060_v8  ;;  %v1143_v14 = vpop.f32.mrb[13].mxu1  ;;  %v1063_v15 = vpop.f32.mrb[14].mxu0 }
 0x111   :  { %v1144_v17 = vadd.f32 %v1143_v14, %v1142_v9  ;;  %v1145_v18 = vpop.f32.mrb[14].mxu1  ;;  %v1064_v19 = vpop.f32.mrb[15].mxu0 }
 0x112   :  { %885 = vst.msk [vmem:[%s1640_s3 + $0x10] sm:$0xf] %vm880_vm0, %v1009_v11  ;;  %v1010_v20 = vpack.c.bf16 %v779_v12, %v779_v12  ;;  %v593_v21 = vadd.f32 %v1062_v13, %v1531_v16  ;;  %v1065_v22 = vadd.f32 %v1064_v19, %v1063_v15  ;;  %v1146_v23 = vpop.f32.mrb[15].mxu1 }
 0x113   :  { %v1147_v24 = vadd.f32 %v1146_v23, %v1145_v18 }
 0x114   :  { %886 = vst.msk [vmem:[%s1640_s3 + $0x14] sm:$0xf] %vm880_vm0, %v1010_v20  ;;  %v713_v25 = vadd.f32 %v1144_v17, %v593_v21  ;;  %v596_v26 = vadd.f32 %v1065_v22, %v1531_v16 }
 0x116   :  { %v780_v27 = vmax.f32 %v713_v25, 0.0  ;;  %v716_v28 = vadd.f32 %v1147_v24, %v596_v26  ;;  %v1066_v29 = vpop.f32.mrb[16].mxu0 }
 0x117   :  { %v1148_v30 = vpop.f32.mrb[16].mxu1  ;;  %v1067_v31 = vpop.f32.mrb[17].mxu0 }
 0x118   :  { %v1011_v32 = vpack.c.bf16 %v780_v27, %v780_v27  ;;  %v781_v33 = vmax.f32 %v716_v28, 0.0  ;;  %v1068_v34 = vadd.f32 %v1067_v31, %v1066_v29  ;;  %v1149_v35 = vpop.f32.mrb[17].mxu1  ;;  %v1069_v36 = vpop.f32.mrb[18].mxu0 }
 0x119   :  { %v1150_v37 = vadd.f32 %v1149_v35, %v1148_v30  ;;  %v1151_v38 = vpop.f32.mrb[18].mxu1  ;;  %v1070_v39 = vpop.f32.mrb[19].mxu0 }
 0x11a   :  { %887 = vst.msk [vmem:[%s1640_s3 + $0x18] sm:$0xf] %vm880_vm0, %v1011_v32  ;;  %v1012_v40 = vpack.c.bf16 %v781_v33, %v781_v33  ;;  %v601_v41 = vadd.f32 %v1068_v34, %v1531_v16  ;;  %v1071_v42 = vadd.f32 %v1070_v39, %v1069_v36  ;;  %v1152_v43 = vpop.f32.mrb[19].mxu1 }
 0x11b   :  { %v1153_v44 = vadd.f32 %v1152_v43, %v1151_v38 }
 0x11c   :  { %888 = vst.msk [vmem:[%s1640_s3 + $0x1c] sm:$0xf] %vm880_vm0, %v1012_v40  ;;  %v721_v45 = vadd.f32 %v1150_v37, %v601_v41  ;;  %v604_v46 = vadd.f32 %v1071_v42, %v1531_v16 }
 0x11e   :  { %v782_v47 = vmax.f32 %v721_v45, 0.0  ;;  %v724_v48 = vadd.f32 %v1153_v44, %v604_v46  ;;  %v1072_v49 = vpop.f32.mrb[20].mxu0 }
 0x11f   :  { %v1154_v50 = vpop.f32.mrb[20].mxu1  ;;  %v1073_v51 = vpop.f32.mrb[21].mxu0 }
 0x120   :  { %v1013_v52 = vpack.c.bf16 %v782_v47, %v782_v47  ;;  %v783_v53 = vmax.f32 %v724_v48, 0.0  ;;  %v1074_v54 = vadd.f32 %v1073_v51, %v1072_v49  ;;  %v1155_v55 = vpop.f32.mrb[21].mxu1  ;;  %v1075_v56 = vpop.f32.mrb[22].mxu0 }
 0x121   :  { %v1156_v57 = vadd.f32 %v1155_v55, %v1154_v50  ;;  %v1157_v58 = vpop.f32.mrb[22].mxu1  ;;  %v1076_v59 = vpop.f32.mrb[23].mxu0 }
 0x122   :  { %889 = vst.msk [vmem:[%s1640_s3 + $0x20] sm:$0xf] %vm880_vm0, %v1013_v52  ;;  %v1014_v60 = vpack.c.bf16 %v783_v53, %v783_v53  ;;  %v609_v61 = vadd.f32 %v1074_v54, %v1531_v16  ;;  %v1077_v62 = vadd.f32 %v1076_v59, %v1075_v56  ;;  %v1158_v63 = vpop.f32.mrb[23].mxu1 }
 0x123   :  { %v1159_v0 = vadd.f32 %v1158_v63, %v1157_v58 }
 0x124   :  { %890 = vst.msk [vmem:[%s1640_s3 + $0x24] sm:$0xf] %vm880_vm0, %v1014_v60  ;;  %v729_v1 = vadd.f32 %v1156_v57, %v609_v61  ;;  %v612_v2 = vadd.f32 %v1077_v62, %v1531_v16 }
 0x126   :  { %v784_v3 = vmax.f32 %v729_v1, 0.0  ;;  %v732_v4 = vadd.f32 %v1159_v0, %v612_v2  ;;  %v1078_v5 = vpop.f32.mrb[24].mxu0 }
 0x127   :  { %v1160_v6 = vpop.f32.mrb[24].mxu1  ;;  %v1079_v7 = vpop.f32.mrb[25].mxu0 }
 0x128   :  { %v1015_v8 = vpack.c.bf16 %v784_v3, %v784_v3  ;;  %v785_v9 = vmax.f32 %v732_v4, 0.0  ;;  %v1080_v10 = vadd.f32 %v1079_v7, %v1078_v5  ;;  %v1161_v11 = vpop.f32.mrb[25].mxu1  ;;  %v1081_v12 = vpop.f32.mrb[26].mxu0 }
 0x129   :  { %v1162_v13 = vadd.f32 %v1161_v11, %v1160_v6  ;;  %v1163_v14 = vpop.f32.mrb[26].mxu1  ;;  %v1082_v15 = vpop.f32.mrb[27].mxu0 }
 0x12a   :  { %891 = vst.msk [vmem:[%s1640_s3 + $0x28] sm:$0xf] %vm880_vm0, %v1015_v8  ;;  %v1016_v17 = vpack.c.bf16 %v785_v9, %v785_v9  ;;  %v617_v18 = vadd.f32 %v1080_v10, %v1531_v16  ;;  %v1083_v19 = vadd.f32 %v1082_v15, %v1081_v12  ;;  %v1164_v20 = vpop.f32.mrb[27].mxu1 }
 0x12b   :  { %v1165_v21 = vadd.f32 %v1164_v20, %v1163_v14 }
 0x12c   :  { %892 = vst.msk [vmem:[%s1640_s3 + $0x2c] sm:$0xf] %vm880_vm0, %v1016_v17  ;;  %v737_v22 = vadd.f32 %v1162_v13, %v617_v18  ;;  %v620_v23 = vadd.f32 %v1083_v19, %v1531_v16 }
 0x12e   :  { %v786_v24 = vmax.f32 %v737_v22, 0.0  ;;  %v740_v25 = vadd.f32 %v1165_v21, %v620_v23  ;;  %v1084_v26 = vpop.f32.mrb[28].mxu0 }
 0x12f   :  { %v1166_v27 = vpop.f32.mrb[28].mxu1  ;;  %v1085_v28 = vpop.f32.mrb[29].mxu0 }
 0x130   :  { %v1017_v29 = vpack.c.bf16 %v786_v24, %v786_v24  ;;  %v787_v30 = vmax.f32 %v740_v25, 0.0  ;;  %v1086_v31 = vadd.f32 %v1085_v28, %v1084_v26  ;;  %v1167_v32 = vpop.f32.mrb[29].mxu1  ;;  %v1087_v33 = vpop.f32.mrb[30].mxu0 }
 0x131   :  { %v1168_v34 = vadd.f32 %v1167_v32, %v1166_v27  ;;  %v1169_v35 = vpop.f32.mrb[30].mxu1  ;;  %v1088_v36 = vpop.f32.mrb[31].mxu0 }
 0x132   :  { %893 = vst.msk [vmem:[%s1640_s3 + $0x30] sm:$0xf] %vm880_vm0, %v1017_v29  ;;  %v1018_v37 = vpack.c.bf16 %v787_v30, %v787_v30  ;;  %v625_v38 = vadd.f32 %v1086_v31, %v1531_v16  ;;  %v1089_v39 = vadd.f32 %v1088_v36, %v1087_v33  ;;  %v1170_v40 = vpop.f32.mrb[31].mxu1 }
 0x133   :  { %v1171_v41 = vadd.f32 %v1170_v40, %v1169_v35 }
 0x134   :  { %894 = vst.msk [vmem:[%s1640_s3 + $0x34] sm:$0xf] %vm880_vm0, %v1018_v37  ;;  %v745_v42 = vadd.f32 %v1168_v34, %v625_v38  ;;  %v628_v43 = vadd.f32 %v1089_v39, %v1531_v16 }
 0x136   :  { %v788_v44 = vmax.f32 %v745_v42, 0.0  ;;  %v748_v45 = vadd.f32 %v1171_v41, %v628_v43  ;;  %v1090_v46 = vpop.f32.mrb[32].mxu0 }
 0x137   :  { %v1172_v47 = vpop.f32.mrb[32].mxu1  ;;  %v1091_v48 = vpop.f32.mrb[33].mxu0 }
 0x138   :  { %v1019_v49 = vpack.c.bf16 %v788_v44, %v788_v44  ;;  %v789_v50 = vmax.f32 %v748_v45, 0.0  ;;  %v1092_v51 = vadd.f32 %v1091_v48, %v1090_v46  ;;  %v1173_v52 = vpop.f32.mrb[33].mxu1  ;;  %v1093_v53 = vpop.f32.mrb[34].mxu0 }
 0x139   :  { %v1174_v54 = vadd.f32 %v1173_v52, %v1172_v47  ;;  %v1175_v55 = vpop.f32.mrb[34].mxu1  ;;  %v1094_v56 = vpop.f32.mrb[35].mxu0 }
 0x13a   :  { %895 = vst.msk [vmem:[%s1640_s3 + $0x38] sm:$0xf] %vm880_vm0, %v1019_v49  ;;  %v1020_v57 = vpack.c.bf16 %v789_v50, %v789_v50  ;;  %v633_v58 = vadd.f32 %v1092_v51, %v1531_v16  ;;  %v1095_v59 = vadd.f32 %v1094_v56, %v1093_v53  ;;  %v1176_v60 = vpop.f32.mrb[35].mxu1 }
 0x13b   :  { %v1177_v61 = vadd.f32 %v1176_v60, %v1175_v55 }
 0x13c   :  { %896 = vst.msk [vmem:[%s1640_s3 + $0x3c] sm:$0xf] %vm880_vm0, %v1020_v57  ;;  %v753_v62 = vadd.f32 %v1174_v54, %v633_v58  ;;  %v636_v63 = vadd.f32 %v1095_v59, %v1531_v16 }
 0x13e   :  { %v790_v0 = vmax.f32 %v753_v62, 0.0  ;;  %v756_v1 = vadd.f32 %v1177_v61, %v636_v63  ;;  %v1096_v2 = vpop.f32.mrb[36].mxu0 }
 0x13f   :  { %v1178_v3 = vpop.f32.mrb[36].mxu1  ;;  %v1097_v4 = vpop.f32.mrb[37].mxu0 }
 0x140   :  { %v1021_v5 = vpack.c.bf16 %v790_v0, %v790_v0  ;;  %v791_v6 = vmax.f32 %v756_v1, 0.0  ;;  %v1098_v7 = vadd.f32 %v1097_v4, %v1096_v2  ;;  %v1179_v8 = vpop.f32.mrb[37].mxu1  ;;  %v1099_v9 = vpop.f32.mrb[38].mxu0 }
 0x141   :  { %v1180_v10 = vadd.f32 %v1179_v8, %v1178_v3  ;;  %v1181_v11 = vpop.f32.mrb[38].mxu1  ;;  %v1100_v12 = vpop.f32.mrb[39].mxu0 }
 0x142   :  { %897 = vst.msk [vmem:[%s1640_s3 + $0x40] sm:$0xf] %vm880_vm0, %v1021_v5  ;;  %v1022_v13 = vpack.c.bf16 %v791_v6, %v791_v6  ;;  %v641_v14 = vadd.f32 %v1098_v7, %v1531_v16  ;;  %v1101_v15 = vadd.f32 %v1100_v12, %v1099_v9  ;;  %v1182_v17 = vpop.f32.mrb[39].mxu1 }
 0x143   :  { %v1183_v18 = vadd.f32 %v1182_v17, %v1181_v11 }
 0x144   :  { %898 = vst.msk [vmem:[%s1640_s3 + $0x44] sm:$0xf] %vm880_vm0, %v1022_v13  ;;  %v761_v19 = vadd.f32 %v1180_v10, %v641_v14  ;;  %v644_v20 = vadd.f32 %v1101_v15, %v1531_v16 }
 0x146   :  { %v792_v21 = vmax.f32 %v761_v19, 0.0  ;;  %v764_v22 = vadd.f32 %v1183_v18, %v644_v20  ;;  %v1102_v23 = vpop.f32.mrb[40].mxu0 }
 0x147   :  { %v1184_v24 = vpop.f32.mrb[40].mxu1  ;;  %v1103_v25 = vpop.f32.mrb[41].mxu0 }
 0x148   :  { %v1023_v26 = vpack.c.bf16 %v792_v21, %v792_v21  ;;  %v793_v27 = vmax.f32 %v764_v22, 0.0  ;;  %v1104_v28 = vadd.f32 %v1103_v25, %v1102_v23  ;;  %v1185_v29 = vpop.f32.mrb[41].mxu1  ;;  %v1105_v30 = vpop.f32.mrb[42].mxu0 }
 0x149   :  { %v1186_v31 = vadd.f32 %v1185_v29, %v1184_v24  ;;  %v1187_v32 = vpop.f32.mrb[42].mxu1  ;;  %v1106_v33 = vpop.f32.mrb[43].mxu0 }
 0x14a   :  { %899 = vst.msk [vmem:[%s1640_s3 + $0x48] sm:$0xf] %vm880_vm0, %v1023_v26  ;;  %v1024_v34 = vpack.c.bf16 %v793_v27, %v793_v27  ;;  %v649_v35 = vadd.f32 %v1104_v28, %v1531_v16  ;;  %v1188_v36 = vpop.f32.mrb[43].mxu1 }
 0x14c   :  { %900 = vst.msk [vmem:[%s1640_s3 + $0x4c] sm:$0xf] %vm880_vm0, %v1024_v34  ;;  %v769_v37 = vadd.f32 %v1186_v31, %v649_v35 }
 0x14e   :  { %v794_v38 = vmax.f32 %v769_v37, 0.0 }
 0x150   :  { %v1025_v39 = vpack.c.bf16 %v794_v38, %v794_v38 }
 0x152   :  { %902 = vst.msk [vmem:[%s1640_s3 + $0x50] sm:$0x1] %vm901_vm1, %v1025_v39 }

// kernel: cnn_base_forward.6
= control target key start
LH: loop header
LB: loop body
LE: loop exit
PB: predicated region body
PF: predicated region fallthrough
CT: control target
= control target key end

     0   :  { %v1248_v34 = vmov 0.0   ;;  %vm1249_vm0 = vmmov 0   ;;  %vm516_vm1 = vcmask 523264   ;;  %vm868_vm2 = vcmask 257024   ;;  %s1599_s1 = inlined_call_operand.vmem [shape: bf16[576,32], index: 1, kind: input, shape index: {}]   ;;  %s1600_s0 = inlined_call_operand.vmem [shape: bf16[98,576], index: 0, kind: input, shape index: {}]   ;;  %s1601_s2 = inlined_call_operand.vmem [shape: f32[1,32], index: 2, kind: input, shape index: {}]   ;;  %s1602_s3 = inlined_call_operand.vmem [shape: bf16[98,32], index: 3, kind: output, shape index: {}]  }
   0x1   :  { %v1165_v0 = vld [vmem:[%s1599_s1 + $0x40] sm:$0xff]   ;;  %v1169_v4 = vld [vmem:[%s1599_s1 + $0x48] sm:$0xff]   ;;  %v1173_v8 = vld [vmem:[%s1599_s1 + $0x50] sm:$0xff]   ;;  %vm881_vm3 = vcmask 253952  }
   0x2   :  { %v1166_v1 = vld [vmem:[%s1599_s1 + $0xc0] sm:$0xff]   ;;  %992 = vmatprep.subr.bf16.mxu0 %v1165_v0  ;;  %v1170_v5 = vld [vmem:[%s1599_s1 + $0xc8] sm:$0xff]   ;;  %v1174_v9 = vld [vmem:[%s1599_s1 + $0xd0] sm:$0xff]  }
   0x3   :  { %v1167_v2 = vld [vmem:[%s1599_s1] sm:$0xff]   ;;  %1050 = vmatprep.subr.bf16.mxu1 %v1166_v1  ;;  %v1171_v6 = vld [vmem:[%s1599_s1 + $0x8] sm:$0xff]   ;;  %v1175_v10 = vld [vmem:[%s1599_s1 + $0x10] sm:$0xff]  }
   0x4   :  { %v1168_v3 = vld [vmem:[%s1599_s1 + $0x80] sm:$0xff]   ;;  %993 = vmatpush3.bf16.msra.mxu0 %v1167_v2  ;;  %v1172_v7 = vld [vmem:[%s1599_s1 + $0x88] sm:$0xff]   ;;  %v1176_v11 = vld [vmem:[%s1599_s1 + $0x90] sm:$0xff]  }
   0x5   :  { %1051 = vmatpush3.bf16.msra.mxu1 %v1168_v3  ;;  %994 = vmatprep.subr.bf16.mxu0 %v1169_v4  ;;  %v1177_v12 = vld [vmem:[%s1599_s1 + $0x58] sm:$0xff]   ;;  %v1181_v16 = vld [vmem:[%s1599_s1 + $0x60] sm:$0xff]   ;;  %v1185_v20 = vld [vmem:[%s1599_s1 + $0x68] sm:$0xff]  }
   0x6   :  { %1052 = vmatprep.subr.bf16.mxu1 %v1170_v5  ;;  %v1178_v13 = vld [vmem:[%s1599_s1 + $0xd8] sm:$0xff]   ;;  %v1182_v17 = vld [vmem:[%s1599_s1 + $0xe0] sm:$0xff]   ;;  %v1186_v21 = vld [vmem:[%s1599_s1 + $0xe8] sm:$0xff]  }
   0x7   :  { %v1179_v14 = vld [vmem:[%s1599_s1 + $0x18] sm:$0xff]   ;;  %v1183_v18 = vld [vmem:[%s1599_s1 + $0x20] sm:$0xff]   ;;  %v1187_v22 = vld [vmem:[%s1599_s1 + $0x28] sm:$0xff]  }
   0x8   :  { %995 = vmatpush3.bf16.msra.mxu0 %v1171_v6  ;;  %v1180_v15 = vld [vmem:[%s1599_s1 + $0x98] sm:$0xff]   ;;  %v1184_v19 = vld [vmem:[%s1599_s1 + $0xa0] sm:$0xff]   ;;  %v1188_v23 = vld [vmem:[%s1599_s1 + $0xa8] sm:$0xff]  }
   0x9   :  { %1053 = vmatpush3.bf16.msra.mxu1 %v1172_v7  ;;  %996 = vmatprep.subr.bf16.mxu0 %v1173_v8  ;;  %v1189_v24 = vld [vmem:[%s1599_s1 + $0x70] sm:$0xff]   ;;  %v1193_v28 = vld [vmem:[%s1599_s1 + $0x78] sm:$0xff]   ;;  %v1202_v36 = vld [vmem:[%s1600_s0 + $0xc] ss:$20 sps:$4 sm:$0xff]  }
   0xa   :  { %1054 = vmatprep.subr.bf16.mxu1 %v1174_v9  ;;  %v1190_v25 = vld [vmem:[%s1599_s1 + $0xf0] sm:$0xff]   ;;  %v1194_v29 = vld [vmem:[%s1599_s1 + $0xf8] sm:$0xff]   ;;  %v1203_v37 = vld [vmem:[%s1599_s1 + $0x100] sm:$0xff]   ;;  %658 = vmatprep.mubr.bf16.mxu1 %v1202_v36 }
   0xb   :  { %v1191_v26 = vld [vmem:[%s1599_s1 + $0x30] sm:$0xff]   ;;  %v1195_v30 = vld [vmem:[%s1599_s1 + $0x38] sm:$0xff]   ;;  %v1204_v38 = vld [vmem:[%s1600_s0 + $0x2c] ss:$20 sps:$4 sm:$0xff]  }
   0xc   :  { %997 = vmatpush3.bf16.msra.mxu0 %v1175_v10  ;;  %v1192_v27 = vld [vmem:[%s1599_s1 + $0xb0] sm:$0xff]   ;;  %v1196_v31 = vld [vmem:[%s1599_s1 + $0xb8] sm:$0xff]   ;;  %v1214_v43 = vld [vmem:[%s1599_s1 + $0x108] sm:$0xff]  }
   0xd   :  { %1055 = vmatpush3.bf16.msra.mxu1 %v1176_v11  ;;  %998 = vmatprep.subr.bf16.mxu0 %v1177_v12  ;;  %v1197_v32 = vld [vmem:[%s1600_s0] ss:$20 sps:$4 sm:$0xff]   ;;  %v1199_v33 = vld [vmem:[%s1600_s0 + $0x4] ss:$20 sps:$4 sm:$0xff]   ;;  %v1200_v35 = vld [vmem:[%s1600_s0 + $0x8] ss:$20 sps:$4 sm:$0xff]  }
   0xe   :  { %1056 = vmatprep.subr.bf16.mxu1 %v1178_v13  ;;  %570 = vmatprep.mubr.bf16.mxu0 %v1199_v33  ;;  %v1206_v39 = vld [vmem:[%s1600_s0 + $0x34] ss:$20 sps:$4 sm:$0xff]   ;;  %v1209_v41 = vld [vmem:[%s1600_s0 + $0x30] ss:$20 sps:$4 sm:$0xff]   ;;  %v1216_v47 = vld [vmem:[%s1600_s0 + $0x58] ss:$20 sps:$4 sm:$0xff]  }
   0xf   :  { %v1208_v40 = vld [vmem:[%s1600_s0 + $0x28] ss:$20 sps:$4 sm:$0xff]   ;;  %v1223_v45 = vld [vmem:[%s1599_s1 + $0x110] sm:$0xff]   ;;  %v1219_v49 = vld [vmem:[%s1600_s0 + $0x84] ss:$20 sps:$4 sm:$0xff]  }
  0x10   :  { %999 = vmatpush3.bf16.msra.mxu0 %v1179_v14  ;;  %v1210_v42 = vld [vmem:[%s1600_s0 + $0x54] ss:$20 sps:$4 sm:$0xff]   ;;  %v1212_v44 = vld [vmem:[%s1600_s0 + $0x5c] ss:$20 sps:$4 sm:$0xff]   ;;  %v1221_v51 = vld [vmem:[%s1600_s0 + $0x78] ss:$20 sps:$4 sm:$0xff]  }
  0x11   :  { %1057 = vmatpush3.bf16.msra.mxu1 %v1180_v15  ;;  %1000 = vmatprep.subr.bf16.mxu0 %v1181_v16  ;;  %v1215_v46 = vld [vmem:[%s1600_s0 + $0x50] ss:$20 sps:$4 sm:$0xff]   ;;  %v1236_v50 = vld [vmem:[%s1599_s1 + $0x118] sm:$0xff]   ;;  %v1222_v52 = vld [vmem:[%s1600_s0 + $0x80] ss:$20 sps:$4 sm:$0xff]  }
  0x12   :  { %1058 = vmatprep.subr.bf16.mxu1 %v1182_v17  ;;  %v1217_v48 = vld [vmem:[%s1600_s0 + $0x7c] ss:$20 sps:$4 sm:$0xff]   ;;  %v1224_v53 = vld [vmem:[%s1600_s0 + $0xa4] ss:$20 sps:$4 sm:$0xff]   ;;  %v1226_v54 = vld [vmem:[%s1600_s0 + $0xac] ss:$20 sps:$4 sm:$0xff]  }
  0x13   :  { %v1228_v55 = vld [vmem:[%s1600_s0 + $0xa0] ss:$20 sps:$4 sm:$0xff]   ;;  %v1229_v56 = vld [vmem:[%s1600_s0 + $0xa8] ss:$20 sps:$4 sm:$0xff]   ;;  %v1235_v62 = vld [vmem:[%s1600_s0 + $0xd0] ss:$20 sps:$4 sm:$0xff]  }
  0x14   :  { %1001 = vmatpush3.bf16.msra.mxu0 %v1183_v18  ;;  %v1230_v57 = vld [vmem:[%s1600_s0 + $0xcc] ss:$20 sps:$4 sm:$0xff]   ;;  %v1232_v58 = vld [vmem:[%s1600_s0 + $0xd4] ss:$20 sps:$4 sm:$0xff]   ;;  %v52_v60 = vld [vmem:[%s1600_s0 + $0xf8] sm:$0x11] }
  0x15   :  { %1059 = vmatpush3.bf16.msra.mxu1 %v1184_v19  ;;  %1002 = vmatprep.subr.bf16.mxu0 %v1185_v20  ;;  %v51_v59 = vld [vmem:[%s1600_s0 + $0xf0] sm:$0x11]  ;;  %v1234_v61 = vld [vmem:[%s1600_s0 + $0xc8] ss:$20 sps:$4 sm:$0xff]   ;;  %v921_v0 = vcombine.high %v52_v60, %v52_v60  ;;  %v920_v2 = vcombine.low %v52_v60, %v52_v60  ;;  %v1243_v5 = vld [vmem:[%s1600_s0 + $0x38] ss:$20 sps:$4 sm:$0xff]  }
  0x16   :  { %1060 = vmatprep.subr.bf16.mxu1 %v1186_v21  ;;  %v919_v63 = vcombine.high %v51_v59, %v51_v59  ;;  %v918_v1 = vcombine.low %v51_v59, %v51_v59  ;;  %v1241_v3 = vld [vmem:[%s1600_s0 + $0x10] ss:$20 sps:$4 sm:$0xff]   ;;  %v1244_v6 = vld [vmem:[%s1600_s0 + $0xd8] ss:$20 sps:$4 sm:$0xff]   ;;  %v1245_v7 = vld [vmem:[%s1600_s0 + $0x60] ss:$20 sps:$4 sm:$0xff]  }
  0x17   :  { %v1242_v4 = vld [vmem:[%s1600_s0 + $0xb0] ss:$20 sps:$4 sm:$0xff]   ;;  %v1246_v8 = vld [vmem:[%s1600_s0 + $0x100] ss:$0 sps:$4 sm:$0x11]  }
  0x18   :  { %1003 = vmatpush3.bf16.msra.mxu0 %v1187_v22  ;;  %v1247_v9 = vld [vmem:[%s1600_s0 + $0x88] ss:$20 sps:$4 sm:$0xff]   ;;  %v1509_v11 = vld [vmem:[%s1601_s2] ss:$0 sm:$0xff] }
  0x19   :  { %1061 = vmatpush3.bf16.msra.mxu1 %v1188_v23  ;;  %1004 = vmatprep.subr.bf16.mxu0 %v1189_v24 }
  0x1a   :  { %1062 = vmatprep.subr.bf16.mxu1 %v1190_v25 }
  0x1c   :  { %1005 = vmatpush3.bf16.msra.mxu0 %v1191_v26 }
  0x1d   :  { %1063 = vmatpush3.bf16.msra.mxu1 %v1192_v27  ;;  %1006 = vmatprep.subr.bf16.mxu0 %v1193_v28 }
  0x1e   :  { %1064 = vmatprep.subr.bf16.mxu1 %v1194_v29 }
  0x20   :  { %1007 = vmatpush3.bf16.msra.mxu0 %v1195_v30 }
  0x21   :  { %1065 = vmatpush3.bf16.msra.mxu1 %v1196_v31  ;;  %1119 = vmatprep.subr.bf16.mxu0 %v1248_v34 }
  0x22   :  { %1155 = vmatprep.subr.bf16.mxu1 %v1248_v34 }
  0x23   :  { %571 = vmatmul.mubr.bf16.vlgmr.msra.gmra.mrb[0].mxu0 %v1197_v32 }
  0x24   :  { %659 = vmatmul.mubr.bf16.vlgmr.msra.gmra.mrb[0].mxu1 %v1200_v35  ;;  %1120 = vmatpush3.bf16.msra.mxu0 %v1203_v37 }
  0x25   :  { %578 = vmatprep.mubr.bf16.mxu0 %v1204_v38  ;;  %1159 = vmatpush3.bf16.msra.mxu1 %v1203_v37 }
  0x26   :  { %666 = vmatprep.mubr.bf16.mxu1 %v1206_v39  ;;  %1121 = vmatprep.subr.bf16.mxu0 %v1248_v34 }
  0x27   :  { %1156 = vmatprep.subr.bf16.mxu1 %v1248_v34 }
  0x28   :  { %1122 = vmatpush3.bf16.msra.mxu0 %v1214_v43 }
  0x29   :  { %1160 = vmatpush3.bf16.msra.mxu1 %v1214_v43  ;;  %1123 = vmatprep.subr.bf16.mxu0 %v1248_v34 }
  0x2a   :  { %1157 = vmatprep.subr.bf16.mxu1 %v1248_v34 }
  0x2b   :  { %579 = vmatmul.mubr.bf16.gmra.mrb[4].mxu0 %v1208_v40 }
  0x2c   :  { %667 = vmatmul.mubr.bf16.gmra.mrb[4].mxu1 %v1209_v41  ;;  %586 = vmatprep.mubr.bf16.mxu0 %v1210_v42 }
  0x2d   :  { %674 = vmatprep.mubr.bf16.mxu1 %v1212_v44  ;;  %1124 = vmatpush3.bf16.msra.mxu0 %v1223_v45 }
  0x2e   :  { %1161 = vmatpush3.bf16.msra.mxu1 %v1223_v45  ;;  %1125 = vmatprep.subr.bf16.mxu0 %v1248_v34 }
  0x2f   :  { %1158 = vmatprep.subr.bf16.mxu1 %v1248_v34 }
  0x31   :  { %1126 = vmatpush3.bf16.msra.mxu0 %v1236_v50 }
  0x32   :  { %1162 = vmatpush3.bf16.msra.mxu1 %v1236_v50 }
  0x33   :  { %587 = vmatmul.mubr.bf16.gmra.mrb[8].mxu0 %v1215_v46 }
  0x34   :  { %675 = vmatmul.mubr.bf16.gmra.mrb[8].mxu1 %v1216_v47  ;;  %594 = vmatprep.mubr.bf16.mxu0 %v1217_v48 }
  0x35   :  { %682 = vmatprep.mubr.bf16.mxu1 %v1219_v49 }
  0x3b   :  { %595 = vmatmul.mubr.bf16.gmra.mrb[12].mxu0 %v1221_v51 }
  0x3c   :  { %683 = vmatmul.mubr.bf16.gmra.mrb[12].mxu1 %v1222_v52  ;;  %602 = vmatprep.mubr.bf16.mxu0 %v1224_v53 }
  0x3d   :  { %690 = vmatprep.mubr.bf16.mxu1 %v1226_v54 }
  0x43   :  { %603 = vmatmul.mubr.bf16.gmra.mrb[16].mxu0 %v1228_v55 }
  0x44   :  { %691 = vmatmul.mubr.bf16.gmra.mrb[16].mxu1 %v1229_v56  ;;  %610 = vmatprep.mubr.bf16.mxu0 %v1230_v57 }
  0x45   :  { %698 = vmatprep.mubr.bf16.mxu1 %v1232_v58 }
  0x4b   :  { %611 = vmatmul.mubr.bf16.gmra.mrb[20].mxu0 %v1234_v61 }
  0x4c   :  { %699 = vmatmul.mubr.bf16.gmra.mrb[20].mxu1 %v1235_v62  ;;  %618 = vmatprep.mubr.bf16.mxu0 %v919_v63 }
  0x4d   :  { %706 = vmatprep.mubr.bf16.mxu1 %v921_v0 }
  0x53   :  { %619 = vmatmul.mubr.bf16.gmra.mrb[24].mxu0 %v918_v1 }
  0x54   :  { %707 = vmatmul.mubr.bf16.gmra.mrb[24].mxu1 %v920_v2  ;;  %1127 = vmatprep.mubr.msk.bf16.mxu0 %vm1249_vm0, %v1248_v34 }
  0x55   :  { %1143 = vmatprep.mubr.msk.bf16.mxu1 %vm1249_vm0, %v1248_v34 }
  0x5b   :  { %1128 = vmatmul.mubr.msk.bf16.vlgmr.msra.gmra.mrb[28].mxu0 %vm516_vm1, %v1241_v3 }
  0x5c   :  { %1144 = vmatmul.mubr.msk.bf16.vlgmr.msra.gmra.mrb[28].mxu1 %vm516_vm1, %v1242_v4  ;;  %1131 = vmatprep.mubr.msk.bf16.mxu0 %vm1249_vm0, %v1248_v34 }
  0x5d   :  { %1147 = vmatprep.mubr.msk.bf16.mxu1 %vm1249_vm0, %v1248_v34 }
  0x63   :  { %1132 = vmatmul.mubr.msk.bf16.gmra.mrb[32].mxu0 %vm516_vm1, %v1243_v5 }
  0x64   :  { %1148 = vmatmul.mubr.msk.bf16.gmra.mrb[32].mxu1 %vm516_vm1, %v1244_v6  ;;  %1135 = vmatprep.mubr.msk.bf16.mxu0 %vm1249_vm0, %v1248_v34 }
  0x65   :  { %1151 = vmatprep.mubr.msk.bf16.mxu1 %vm1249_vm0, %v1248_v34 }
  0x6b   :  { %1136 = vmatmul.mubr.msk.bf16.gmra.mrb[36].mxu0 %vm516_vm1, %v1245_v7 }
  0x6c   :  { %1152 = vmatmul.mubr.msk.bf16.gmra.mrb[36].mxu1 %vm516_vm1, %v1246_v8  ;;  %1139 = vmatprep.mubr.msk.bf16.mxu0 %vm1249_vm0, %v1248_v34 }
  0x73   :  { %1140 = vmatmul.mubr.msk.bf16.gmra.mrb[40].mxu0 %vm516_vm1, %v1247_v9 }
  0xf6   :  { %v1008_v10 = vpop.f32.mrb[0].mxu0 }
  0xf7   :  { %v1009_v12 = vpop.f32.mrb[1].mxu0  ;;  %v1066_v13 = vpop.f32.mrb[0].mxu1 }
  0xf8   :  { %v1010_v14 = vadd.f32 %v1009_v12, %v1008_v10  ;;  %v1011_v15 = vpop.f32.mrb[2].mxu0  ;;  %v1067_v16 = vpop.f32.mrb[1].mxu1 }
  0xf9   :  { %v1012_v17 = vpop.f32.mrb[3].mxu0  ;;  %v1068_v18 = vadd.f32 %v1067_v16, %v1066_v13  ;;  %v1069_v19 = vpop.f32.mrb[2].mxu1 }
  0xfa   :  { %v573_v20 = vadd.f32 %v1010_v14, %v1509_v11  ;;  %v1013_v21 = vadd.f32 %v1012_v17, %v1011_v15  ;;  %v1070_v22 = vpop.f32.mrb[3].mxu1 }
  0xfb   :  { %v1071_v23 = vadd.f32 %v1070_v22, %v1069_v19 }
  0xfc   :  { %v576_v24 = vadd.f32 %v1013_v21, %v1509_v11  ;;  %v1513_v25 = vadd.f32 %v1068_v18, %v573_v20 }
  0xfe   :  { %v1014_v26 = vpop.f32.mrb[4].mxu0  ;;  %v1515_v27 = vadd.f32 %v1071_v23, %v576_v24 }
  0xff   :  { %v1015_v28 = vpop.f32.mrb[5].mxu0  ;;  %v1072_v29 = vpop.f32.mrb[4].mxu1 }
 0x100   :  { %v1016_v30 = vadd.f32 %v1015_v28, %v1014_v26  ;;  %v1017_v31 = vpop.f32.mrb[6].mxu0  ;;  %v1073_v32 = vpop.f32.mrb[5].mxu1 }
 0x101   :  { %v1018_v33 = vpop.f32.mrb[7].mxu0  ;;  %v1074_v34 = vadd.f32 %v1073_v32, %v1072_v29  ;;  %v1075_v35 = vpop.f32.mrb[6].mxu1 }
 0x102   :  { %v581_v36 = vadd.f32 %v1016_v30, %v1509_v11  ;;  %v1019_v37 = vadd.f32 %v1018_v33, %v1017_v31  ;;  %v1076_v38 = vpop.f32.mrb[7].mxu1 }
 0x103   :  { %v1077_v39 = vadd.f32 %v1076_v38, %v1075_v35 }
 0x104   :  { %v584_v40 = vadd.f32 %v1019_v37, %v1509_v11  ;;  %v1519_v41 = vadd.f32 %v1074_v34, %v581_v36 }
 0x106   :  { %v1020_v42 = vpop.f32.mrb[8].mxu0  ;;  %v1521_v43 = vadd.f32 %v1077_v39, %v584_v40 }
 0x107   :  { %v1021_v44 = vpop.f32.mrb[9].mxu0  ;;  %v1078_v45 = vpop.f32.mrb[8].mxu1 }
 0x108   :  { %v1022_v46 = vadd.f32 %v1021_v44, %v1020_v42  ;;  %v1023_v47 = vpop.f32.mrb[10].mxu0  ;;  %v1079_v48 = vpop.f32.mrb[9].mxu1 }
 0x109   :  { %v1024_v49 = vpop.f32.mrb[11].mxu0  ;;  %v1080_v50 = vadd.f32 %v1079_v48, %v1078_v45  ;;  %v1081_v51 = vpop.f32.mrb[10].mxu1 }
 0x10a   :  { %v589_v52 = vadd.f32 %v1022_v46, %v1509_v11  ;;  %v1025_v53 = vadd.f32 %v1024_v49, %v1023_v47  ;;  %v1082_v54 = vpop.f32.mrb[11].mxu1 }
 0x10b   :  { %v1083_v55 = vadd.f32 %v1082_v54, %v1081_v51 }
 0x10c   :  { %v592_v56 = vadd.f32 %v1025_v53, %v1509_v11  ;;  %v1525_v57 = vadd.f32 %v1080_v50, %v589_v52 }
 0x10e   :  { %v1026_v58 = vpop.f32.mrb[12].mxu0  ;;  %v1527_v59 = vadd.f32 %v1083_v55, %v592_v56 }
 0x10f   :  { %v1027_v60 = vpop.f32.mrb[13].mxu0  ;;  %v1084_v61 = vpop.f32.mrb[12].mxu1 }
 0x110   :  { %v1028_v62 = vadd.f32 %v1027_v60, %v1026_v58  ;;  %v1029_v63 = vpop.f32.mrb[14].mxu0  ;;  %v1085_v0 = vpop.f32.mrb[13].mxu1 }
 0x111   :  { %v1030_v1 = vpop.f32.mrb[15].mxu0  ;;  %v1086_v2 = vadd.f32 %v1085_v0, %v1084_v61  ;;  %v1087_v3 = vpop.f32.mrb[14].mxu1 }
 0x112   :  { %v597_v4 = vadd.f32 %v1028_v62, %v1509_v11  ;;  %v1031_v5 = vadd.f32 %v1030_v1, %v1029_v63  ;;  %v1088_v6 = vpop.f32.mrb[15].mxu1 }
 0x113   :  { %v1089_v7 = vadd.f32 %v1088_v6, %v1087_v3 }
 0x114   :  { %v600_v8 = vadd.f32 %v1031_v5, %v1509_v11  ;;  %v1531_v9 = vadd.f32 %v1086_v2, %v597_v4 }
 0x116   :  { %v1032_v10 = vpop.f32.mrb[16].mxu0  ;;  %v1533_v12 = vadd.f32 %v1089_v7, %v600_v8 }
 0x117   :  { %v1033_v13 = vpop.f32.mrb[17].mxu0  ;;  %v1090_v14 = vpop.f32.mrb[16].mxu1 }
 0x118   :  { %v1034_v15 = vadd.f32 %v1033_v13, %v1032_v10  ;;  %v1035_v16 = vpop.f32.mrb[18].mxu0  ;;  %v1091_v17 = vpop.f32.mrb[17].mxu1 }
 0x119   :  { %v1036_v18 = vpop.f32.mrb[19].mxu0  ;;  %v1092_v19 = vadd.f32 %v1091_v17, %v1090_v14  ;;  %v1093_v20 = vpop.f32.mrb[18].mxu1 }
 0x11a   :  { %v605_v21 = vadd.f32 %v1034_v15, %v1509_v11  ;;  %v1037_v22 = vadd.f32 %v1036_v18, %v1035_v16  ;;  %v1094_v23 = vpop.f32.mrb[19].mxu1 }
 0x11b   :  { %v1095_v24 = vadd.f32 %v1094_v23, %v1093_v20 }
 0x11c   :  { %v608_v26 = vadd.f32 %v1037_v22, %v1509_v11  ;;  %v693_v28 = vadd.f32 %v1092_v19, %v605_v21 }
 0x11e   :  { %v1038_v29 = vpop.f32.mrb[20].mxu0  ;;  %v696_v30 = vadd.f32 %v1095_v24, %v608_v26 }
 0x11f   :  { %v1039_v31 = vpop.f32.mrb[21].mxu0  ;;  %v1096_v32 = vpop.f32.mrb[20].mxu1 }
 0x120   :  { %v1040_v33 = vadd.f32 %v1039_v31, %v1038_v29  ;;  %v1041_v34 = vpop.f32.mrb[22].mxu0  ;;  %v1097_v35 = vpop.f32.mrb[21].mxu1 }
 0x121   :  { %v1042_v36 = vpop.f32.mrb[23].mxu0  ;;  %v1098_v37 = vadd.f32 %v1097_v35, %v1096_v32  ;;  %v1099_v38 = vpop.f32.mrb[22].mxu1 }
 0x122   :  { %v613_v39 = vadd.f32 %v1040_v33, %v1509_v11  ;;  %v1043_v40 = vadd.f32 %v1042_v36, %v1041_v34  ;;  %v1100_v42 = vpop.f32.mrb[23].mxu1 }
 0x123   :  { %v1101_v44 = vadd.f32 %v1100_v42, %v1099_v38 }
 0x124   :  { %v616_v45 = vadd.f32 %v1043_v40, %v1509_v11  ;;  %v701_v46 = vadd.f32 %v1098_v37, %v613_v39 }
 0x126   :  { %v1044_v47 = vpop.f32.mrb[24].mxu0  ;;  %v704_v48 = vadd.f32 %v1101_v44, %v616_v45 }
 0x127   :  { %v1045_v49 = vpop.f32.mrb[25].mxu0  ;;  %v1102_v50 = vpop.f32.mrb[24].mxu1 }
 0x128   :  { %v1046_v51 = vadd.f32 %v1045_v49, %v1044_v47  ;;  %v1047_v52 = vpop.f32.mrb[26].mxu0  ;;  %v1103_v53 = vpop.f32.mrb[25].mxu1 }
 0x129   :  { %v1048_v54 = vpop.f32.mrb[27].mxu0  ;;  %v1104_v55 = vadd.f32 %v1103_v53, %v1102_v50  ;;  %v1105_v56 = vpop.f32.mrb[26].mxu1 }
 0x12a   :  { %v621_v58 = vadd.f32 %v1046_v51, %v1509_v11  ;;  %v1106_v60 = vpop.f32.mrb[27].mxu1 }
 0x12c   :  { %v709_v61 = vadd.f32 %v1104_v55, %v621_v58 }
 0x12e   :  { %v748_v62 = vpop.f32.mrb[28].mxu0 }
 0x12f   :  { %v749_v63 = vadd.f32 %v748_v62, %v1513_v25  ;;  %v780_v0 = vpop.f32.mrb[28].mxu1  ;;  %v1129_v1 = vpop.f32.mrb[29].mxu0 }
 0x130   :  { %v781_v2 = vadd.f32 %v780_v0, %v693_v28  ;;  %v1145_v3 = vpop.f32.mrb[29].mxu1  ;;  %v751_v4 = vpop.f32.mrb[30].mxu0 }
 0x131   :  { %v802_v5 = vmax.f32 %v749_v63, 0.0  ;;  %v752_v6 = vadd.f32 %v751_v4, %v1515_v27  ;;  %v783_v7 = vpop.f32.mrb[30].mxu1  ;;  %v1130_v8 = vpop.f32.mrb[31].mxu0 }
 0x132   :  { %v810_v10 = vmax.f32 %v781_v2, 0.0  ;;  %v784_v13 = vadd.f32 %v783_v7, %v696_v30  ;;  %v1146_v14 = vpop.f32.mrb[31].mxu1 }
 0x133   :  { %v979_v11 = vpack.c.bf16 %v802_v5, %v802_v5  ;;  %v803_v15 = vmax.f32 %v752_v6, 0.0 }
 0x134   :  { %v987_v16 = vpack.c.bf16 %v810_v10, %v810_v10  ;;  %v811_v17 = vmax.f32 %v784_v13, 0.0 }
 0x135   :  { %869 = vst.msk [vmem:[%s1602_s3] sm:$0xf] %vm868_vm2, %v979_v11  ;;  %v980_v25 = vpack.c.bf16 %v803_v15, %v803_v15 }
 0x136   :  { %877 = vst.msk [vmem:[%s1602_s3 + $0x20] sm:$0xf] %vm868_vm2, %v987_v16  ;;  %v988_v27 = vpack.c.bf16 %v811_v17, %v811_v17  ;;  %v756_v18 = vpop.f32.mrb[32].mxu0 }
 0x137   :  { %870 = vst.msk [vmem:[%s1602_s3 + $0x4] sm:$0xf] %vm868_vm2, %v980_v25  ;;  %v757_v19 = vadd.f32 %v756_v18, %v1519_v41  ;;  %v788_v20 = vpop.f32.mrb[32].mxu1  ;;  %v1133_v21 = vpop.f32.mrb[33].mxu0 }
 0x138   :  { %878 = vst.msk [vmem:[%s1602_s3 + $0x24] sm:$0xf] %vm868_vm2, %v988_v27  ;;  %v789_v22 = vadd.f32 %v788_v20, %v701_v46  ;;  %v1149_v23 = vpop.f32.mrb[33].mxu1  ;;  %v759_v24 = vpop.f32.mrb[34].mxu0 }
 0x139   :  { %v804_v26 = vmax.f32 %v757_v19, 0.0  ;;  %v760_v28 = vadd.f32 %v759_v24, %v1521_v43  ;;  %v791_v29 = vpop.f32.mrb[34].mxu1  ;;  %v1134_v30 = vpop.f32.mrb[35].mxu0 }
 0x13a   :  { %v812_v31 = vmax.f32 %v789_v22, 0.0  ;;  %v792_v32 = vadd.f32 %v791_v29, %v704_v48  ;;  %v1150_v33 = vpop.f32.mrb[35].mxu1 }
 0x13b   :  { %v981_v34 = vpack.c.bf16 %v804_v26, %v804_v26  ;;  %v805_v41 = vmax.f32 %v760_v28, 0.0 }
 0x13c   :  { %v989_v35 = vpack.c.bf16 %v812_v31, %v812_v31  ;;  %v813_v36 = vmax.f32 %v792_v32, 0.0 }
 0x13d   :  { %871 = vst.msk [vmem:[%s1602_s3 + $0x8] sm:$0xf] %vm868_vm2, %v981_v34  ;;  %v982_v37 = vpack.c.bf16 %v805_v41, %v805_v41 }
 0x13e   :  { %879 = vst.msk [vmem:[%s1602_s3 + $0x28] sm:$0xf] %vm868_vm2, %v989_v35  ;;  %v990_v43 = vpack.c.bf16 %v813_v36, %v813_v36  ;;  %v764_v38 = vpop.f32.mrb[36].mxu0 }
 0x13f   :  { %872 = vst.msk [vmem:[%s1602_s3 + $0xc] sm:$0xf] %vm868_vm2, %v982_v37  ;;  %v765_v39 = vadd.f32 %v764_v38, %v1525_v57  ;;  %v796_v40 = vpop.f32.mrb[36].mxu1  ;;  %v1137_v42 = vpop.f32.mrb[37].mxu0 }
 0x140   :  { %880 = vst.msk [vmem:[%s1602_s3 + $0x2c] sm:$0xf] %vm868_vm2, %v990_v43  ;;  %v797_v44 = vadd.f32 %v796_v40, %v709_v61  ;;  %v767_v45 = vpop.f32.mrb[38].mxu0  ;;  %v1153_v46 = vpop.f32.mrb[37].mxu1 }
 0x141   :  { %v806_v47 = vmax.f32 %v765_v39, 0.0  ;;  %v768_v48 = vadd.f32 %v767_v45, %v1527_v59  ;;  %v1138_v49 = vpop.f32.mrb[39].mxu0  ;;  %v799_v50 = vpop.f32.mrb[38].mxu1 }
 0x142   :  { %v814_v51 = vmax.f32 %v797_v44, 0.0  ;;  %v1154_v52 = vpop.f32.mrb[39].mxu1 }
 0x143   :  { %v983_v53 = vpack.c.bf16 %v806_v47, %v806_v47  ;;  %v807_v57 = vmax.f32 %v768_v48, 0.0 }
 0x144   :  { %v991_v54 = vpack.c.bf16 %v814_v51, %v814_v51 }
 0x145   :  { %873 = vst.msk [vmem:[%s1602_s3 + $0x10] sm:$0xf] %vm868_vm2, %v983_v53  ;;  %v984_v55 = vpack.c.bf16 %v807_v57, %v807_v57 }
 0x146   :  { %882 = vst.msk [vmem:[%s1602_s3 + $0x30] sm:$0x1] %vm881_vm3, %v991_v54  ;;  %v772_v56 = vpop.f32.mrb[40].mxu0 }
 0x147   :  { %874 = vst.msk [vmem:[%s1602_s3 + $0x14] sm:$0xf] %vm868_vm2, %v984_v55  ;;  %v773_v59 = vadd.f32 %v772_v56, %v1531_v9  ;;  %v1141_v58 = vpop.f32.mrb[41].mxu0 }
 0x148   :  { %v775_v60 = vpop.f32.mrb[42].mxu0 }
 0x149   :  { %v808_v61 = vmax.f32 %v773_v59, 0.0  ;;  %v776_v62 = vadd.f32 %v775_v60, %v1533_v12  ;;  %v1142_v63 = vpop.f32.mrb[43].mxu0 }
 0x14b   :  { %v985_v0 = vpack.c.bf16 %v808_v61, %v808_v61  ;;  %v809_v1 = vmax.f32 %v776_v62, 0.0 }
 0x14d   :  { %875 = vst.msk [vmem:[%s1602_s3 + $0x18] sm:$0xf] %vm868_vm2, %v985_v0  ;;  %v986_v2 = vpack.c.bf16 %v809_v1, %v809_v1 }
 0x14f   :  { %876 = vst.msk [vmem:[%s1602_s3 + $0x1c] sm:$0xf] %vm868_vm2, %v986_v2 }

// kernel: cnn_base_forward.7
= control target key start
LH: loop header
LB: loop body
LE: loop exit
PB: predicated region body
PF: predicated region fallthrough
CT: control target
= control target key end

     0   :  { %s5558_s0 = inlined_call_operand.vmem [shape: bf16[2,1568], index: 0, kind: input, shape index: {}]   ;;  %s5559_s1 = inlined_call_operand.vmem [shape: bf16[1568,512], index: 1, kind: input, shape index: {}]   ;;  %s5560_s2 = inlined_call_operand.vmem [shape: f32[1,512], index: 2, kind: input, shape index: {}]   ;;  %s5561_s3 = inlined_call_operand.vmem [shape: f32[1,512], index: 3, kind: input, shape index: {}]   ;;  %s5562_s4 = inlined_call_operand.<no memory space> [shape: f32[1,1], index: 4, kind: input, shape index: {}]   ;;  %s5563_s5 = inlined_call_operand.hbm [shape: f32[2,512], index: 5, kind: output, shape index: {0}]   ;;  %s5564_s6 = inlined_call_operand.vmem [shape: f32[2,1], index: 6, kind: output, shape index: {1}]  }
   0x1   :  { %v12_v0 = vstv %s5562_s4 }
   0x2   :  { %13 = vst [vmem:[#allocation2] sm:$0x1] %v12_v0 }
   0x3   :  { %v3624_v1 = vld [vmem:[%s5559_s1 + $0x4] ss:$16 sps:$4 sm:$0xff]   ;;  %v3626_v2 = vld [vmem:[%s5559_s1 + $0xc] ss:$16 sps:$4 sm:$0xff]   ;;  %v3628_v3 = vld [vmem:[%s5559_s1] ss:$16 sps:$4 sm:$0xff]   ;;  %v422_v37 = vlaneseq }
   0x4   :  { %2508 = vmatprep.subr.bf16.mxu0 %v3624_v1  ;;  %v3629_v4 = vld [vmem:[%s5559_s1 + $0x8] ss:$16 sps:$4 sm:$0xff]   ;;  %2795 = vmatprep.subr.bf16.mxu1 %v3626_v2  ;;  %v3630_v5 = vld [vmem:[%s5559_s1 + $0x24] ss:$16 sps:$4 sm:$0xff]   ;;  %v3632_v6 = vld [vmem:[%s5559_s1 + $0x2c] ss:$16 sps:$4 sm:$0xff]  }
   0x5   :  { %2509 = vmatpush1.bf16.msra.mxu0 %v3628_v3  ;;  %2796 = vmatpush1.bf16.msra.mxu1 %v3629_v4  ;;  %v3634_v7 = vld [vmem:[%s5559_s1 + $0x20] ss:$16 sps:$4 sm:$0xff]   ;;  %v3635_v8 = vld [vmem:[%s5559_s1 + $0x28] ss:$16 sps:$4 sm:$0xff]   ;;  %v3636_v9 = vld [vmem:[%s5559_s1 + $0x44] ss:$16 sps:$4 sm:$0xff]  }
   0x6   :  { %2510 = vmatprep.subr.bf16.mxu0 %v3630_v5  ;;  %2797 = vmatprep.subr.bf16.mxu1 %v3632_v6  ;;  %v3638_v10 = vld [vmem:[%s5559_s1 + $0x4c] ss:$16 sps:$4 sm:$0xff]   ;;  %v3640_v11 = vld [vmem:[%s5559_s1 + $0x40] ss:$16 sps:$4 sm:$0xff]   ;;  %v3641_v12 = vld [vmem:[%s5559_s1 + $0x48] ss:$16 sps:$4 sm:$0xff]  }
   0x7   :  { %v3642_v13 = vld [vmem:[%s5559_s1 + $0x64] ss:$16 sps:$4 sm:$0xff]   ;;  %v3644_v14 = vld [vmem:[%s5559_s1 + $0x6c] ss:$16 sps:$4 sm:$0xff]   ;;  %v3646_v15 = vld [vmem:[%s5559_s1 + $0x60] ss:$16 sps:$4 sm:$0xff]  }
   0x8   :  { %v3647_v16 = vld [vmem:[%s5559_s1 + $0x68] ss:$16 sps:$4 sm:$0xff]   ;;  %v3648_v17 = vld [vmem:[%s5559_s1 + $0x84] ss:$16 sps:$4 sm:$0xff]   ;;  %v3650_v18 = vld [vmem:[%s5559_s1 + $0x8c] ss:$16 sps:$4 sm:$0xff]  }
   0x9   :  { %2511 = vmatpush1.bf16.msra.mxu0 %v3634_v7  ;;  %2798 = vmatpush1.bf16.msra.mxu1 %v3635_v8  ;;  %v3652_v19 = vld [vmem:[%s5559_s1 + $0x80] ss:$16 sps:$4 sm:$0xff]   ;;  %v3653_v20 = vld [vmem:[%s5559_s1 + $0x88] ss:$16 sps:$4 sm:$0xff]   ;;  %v3654_v21 = vld [vmem:[%s5559_s1 + $0xa4] ss:$16 sps:$4 sm:$0xff]  }
   0xa   :  { %2512 = vmatprep.subr.bf16.mxu0 %v3636_v9  ;;  %2799 = vmatprep.subr.bf16.mxu1 %v3638_v10  ;;  %v3656_v22 = vld [vmem:[%s5559_s1 + $0xac] ss:$16 sps:$4 sm:$0xff]   ;;  %v3658_v23 = vld [vmem:[%s5559_s1 + $0xa0] ss:$16 sps:$4 sm:$0xff]   ;;  %v3659_v24 = vld [vmem:[%s5559_s1 + $0xa8] ss:$16 sps:$4 sm:$0xff]  }
   0xb   :  { %v3660_v25 = vld [vmem:[%s5559_s1 + $0xc4] ss:$16 sps:$4 sm:$0xff]   ;;  %v3662_v26 = vld [vmem:[%s5559_s1 + $0xcc] ss:$16 sps:$4 sm:$0xff]   ;;  %v3664_v27 = vld [vmem:[%s5559_s1 + $0xc0] ss:$16 sps:$4 sm:$0xff]  }
   0xc   :  { %v3665_v28 = vld [vmem:[%s5559_s1 + $0xc8] ss:$16 sps:$4 sm:$0xff]   ;;  %v3666_v29 = vld [vmem:[%s5559_s1 + $0xe4] ss:$16 sps:$4 sm:$0xff]   ;;  %v3668_v30 = vld [vmem:[%s5559_s1 + $0xec] ss:$16 sps:$4 sm:$0xff]  }
   0xd   :  { %2513 = vmatpush1.bf16.msra.mxu0 %v3640_v11  ;;  %2800 = vmatpush1.bf16.msra.mxu1 %v3641_v12  ;;  %v3670_v31 = vld [vmem:[%s5559_s1 + $0xe0] ss:$16 sps:$4 sm:$0xff]   ;;  %v3671_v32 = vld [vmem:[%s5559_s1 + $0xe8] ss:$16 sps:$4 sm:$0xff]   ;;  %v3672_v33 = vld [vmem:[%s5559_s1 + $0x104] ss:$16 sps:$4 sm:$0xff]  }
   0xe   :  { %2514 = vmatprep.subr.bf16.mxu0 %v3642_v13  ;;  %2801 = vmatprep.subr.bf16.mxu1 %v3644_v14  ;;  %v3674_v34 = vld [vmem:[%s5559_s1 + $0x10c] ss:$16 sps:$4 sm:$0xff]   ;;  %v3676_v35 = vld [vmem:[%s5559_s1 + $0x100] ss:$16 sps:$4 sm:$0xff]   ;;  %v3677_v36 = vld [vmem:[%s5559_s1 + $0x108] ss:$16 sps:$4 sm:$0xff]  }
   0xf   :  { %v4238_v38 = vmov 1966171168   ;;  %v3678_v40 = vld [vmem:[%s5559_s1 + $0x124] ss:$16 sps:$4 sm:$0xff]   ;;  %v3680_v41 = vld [vmem:[%s5559_s1 + $0x12c] ss:$16 sps:$4 sm:$0xff]  }
  0x10   :  { %v446_v39 = vunpack.c.l.s4 %v4238_v38  ;;  %v3682_v42 = vld [vmem:[%s5559_s1 + $0x120] ss:$16 sps:$4 sm:$0xff]   ;;  %v4397_v43 = vshrl.u32 %v422_v37, 7  ;;  %v3683_v45 = vld [vmem:[%s5559_s1 + $0x128] ss:$16 sps:$4 sm:$0xff]  }
  0x11   :  { %2515 = vmatpush1.bf16.msra.mxu0 %v3646_v15  ;;  %2802 = vmatpush1.bf16.msra.mxu1 %v3647_v16  ;;  %v3684_v46 = vld [vmem:[%s5559_s1 + $0x144] ss:$16 sps:$4 sm:$0xff]   ;;  %v3686_v47 = vld [vmem:[%s5559_s1 + $0x14c] ss:$16 sps:$4 sm:$0xff]   ;;  %v3688_v48 = vld [vmem:[%s5559_s1 + $0x140] ss:$16 sps:$4 sm:$0xff]  }
  0x12   :  { %2516 = vmatprep.subr.bf16.mxu0 %v3648_v17  ;;  %2803 = vmatprep.subr.bf16.mxu1 %v3650_v18  ;;  %v447_v44 = vunpack.c.0.s8 %v446_v39  ;;  %v3689_v49 = vld [vmem:[%s5559_s1 + $0x148] ss:$16 sps:$4 sm:$0xff]   ;;  %v3690_v51 = vld [vmem:[%s5559_s1 + $0x164] ss:$16 sps:$4 sm:$0xff]   ;;  %v3692_v52 = vld [vmem:[%s5559_s1 + $0x16c] ss:$16 sps:$4 sm:$0xff]  }
  0x13   :  { %v4426_v53 = vld [vmem:[%s5558_s0] sm:$0xff]  ;;  %v3695_v56 = vld [vmem:[%s5559_s1 + $0x168] ss:$16 sps:$4 sm:$0xff]   ;;  %v3698_v58 = vld [vmem:[%s5559_s1 + $0x18c] ss:$16 sps:$4 sm:$0xff]  }
  0x14   :  { %v4415_v50 = vsub.s32 %v447_v44, %v4397_v43  ;;  %v3694_v54 = vld [vmem:[%s5559_s1 + $0x160] ss:$16 sps:$4 sm:$0xff]   ;;  %v3696_v57 = vld [vmem:[%s5559_s1 + $0x184] ss:$16 sps:$4 sm:$0xff]   ;;  %v3701_v62 = vld [vmem:[%s5559_s1 + $0x188] ss:$16 sps:$4 sm:$0xff]  }
  0x15   :  { %2517 = vmatpush1.bf16.msra.mxu0 %v3652_v19  ;;  %2804 = vmatpush1.bf16.msra.mxu1 %v3653_v20  ;;  %v3700_v60 = vld [vmem:[%s5559_s1 + $0x180] ss:$16 sps:$4 sm:$0xff]   ;;  %v3702_v63 = vld [vmem:[%s5559_s1 + $0x1a4] ss:$16 sps:$4 sm:$0xff]   ;;  %v3704_v0 = vld [vmem:[%s5559_s1 + $0x1ac] ss:$16 sps:$4 sm:$0xff]  }
  0x16   :  { %2518 = vmatprep.subr.bf16.mxu0 %v3654_v21  ;;  %2805 = vmatprep.subr.bf16.mxu1 %v3656_v22  ;;  %v451_v55 = vrot.slane %v4426_v53, %v4415_v50  ;;  %v3706_v1 = vld [vmem:[%s5559_s1 + $0x1a0] ss:$16 sps:$4 sm:$0xff]   ;;  %v3707_v2 = vld [vmem:[%s5559_s1 + $0x1a8] ss:$16 sps:$4 sm:$0xff]   ;;  %v3708_v3 = vld [vmem:[%s5559_s1 + $0x1c4] ss:$16 sps:$4 sm:$0xff]  }
  0x17   :  { %v3710_v4 = vld [vmem:[%s5559_s1 + $0x1cc] ss:$16 sps:$4 sm:$0xff]   ;;  %v3712_v5 = vld [vmem:[%s5559_s1 + $0x1c0] ss:$16 sps:$4 sm:$0xff]   ;;  %v3713_v6 = vld [vmem:[%s5559_s1 + $0x1c8] ss:$16 sps:$4 sm:$0xff]  }
  0x18   :  { %v459_v59 = vcombine.high %v451_v55, %v451_v55  ;;  %v3714_v7 = vld [vmem:[%s5559_s1 + $0x1e4] ss:$16 sps:$4 sm:$0xff]   ;;  %v3716_v8 = vld [vmem:[%s5559_s1 + $0x1ec] ss:$16 sps:$4 sm:$0xff]   ;;  %v3718_v9 = vld [vmem:[%s5559_s1 + $0x1e0] ss:$16 sps:$4 sm:$0xff]   ;;  %v4495_v14 = vrot.slane %v451_v55, %v4415_v50 }
  0x19   :  { %2519 = vmatpush1.bf16.msra.mxu0 %v3658_v23  ;;  %2806 = vmatpush1.bf16.msra.mxu1 %v3659_v24  ;;  %v3719_v10 = vld [vmem:[%s5559_s1 + $0x1e8] ss:$16 sps:$4 sm:$0xff]   ;;  %v3722_v11 = vld [vmem:[%s5559_s1 + $0x204] ss:$16 sps:$4 sm:$0xff]   ;;  %v3725_v12 = vld [vmem:[%s5559_s1 + $0x20c] ss:$16 sps:$4 sm:$0xff]  }
  0x1a   :  { %2520 = vmatprep.subr.bf16.mxu0 %v3660_v25  ;;  %2807 = vmatprep.subr.bf16.mxu1 %v3662_v26  ;;  %v481_v61 = vrot.slane %v459_v59, %v4415_v50  ;;  %v3720_v13 = vld [vmem:[%s5559_s1 + $0x200] ss:$16 sps:$4 sm:$0xff]   ;;  %v3723_v15 = vld [vmem:[%s5559_s1 + $0x208] ss:$16 sps:$4 sm:$0xff]   ;;  %v3728_v16 = vld [vmem:[%s5559_s1 + $0x224] ss:$16 sps:$4 sm:$0xff]  }
  0x1b   :  { %v3731_v17 = vld [vmem:[%s5559_s1 + $0x22c] ss:$16 sps:$4 sm:$0xff]   ;;  %v3726_v19 = vld [vmem:[%s5559_s1 + $0x220] ss:$16 sps:$4 sm:$0xff]   ;;  %v3729_v20 = vld [vmem:[%s5559_s1 + $0x228] ss:$16 sps:$4 sm:$0xff]  }
  0x1c   :  { %2540 = vmatprep.mubr.bf16.mxu0 %v481_v61  ;;  %2827 = vmatprep.mubr.bf16.mxu1 %v481_v61  ;;  %v491_v18 = vcombine.high %v481_v61, %v481_v61  ;;  %v3734_v21 = vld [vmem:[%s5559_s1 + $0x244] ss:$16 sps:$4 sm:$0xff]   ;;  %v3737_v22 = vld [vmem:[%s5559_s1 + $0x24c] ss:$16 sps:$4 sm:$0xff]   ;;  %v3732_v23 = vld [vmem:[%s5559_s1 + $0x240] ss:$16 sps:$4 sm:$0xff]  }
  0x1d   :  { %2521 = vmatpush1.bf16.msra.mxu0 %v3664_v27  ;;  %2808 = vmatpush1.bf16.msra.mxu1 %v3665_v28  ;;  %v3735_v24 = vld [vmem:[%s5559_s1 + $0x248] ss:$16 sps:$4 sm:$0xff]   ;;  %v3740_v25 = vld [vmem:[%s5559_s1 + $0x264] ss:$16 sps:$4 sm:$0xff]   ;;  %v3743_v26 = vld [vmem:[%s5559_s1 + $0x26c] ss:$16 sps:$4 sm:$0xff]  }
  0x1e   :  { %2522 = vmatprep.subr.bf16.mxu0 %v3666_v29  ;;  %2809 = vmatprep.subr.bf16.mxu1 %v3668_v30  ;;  %v3738_v27 = vld [vmem:[%s5559_s1 + $0x260] ss:$16 sps:$4 sm:$0xff]   ;;  %v3741_v28 = vld [vmem:[%s5559_s1 + $0x268] ss:$16 sps:$4 sm:$0xff]   ;;  %v3746_v29 = vld [vmem:[%s5559_s1 + $0x284] ss:$16 sps:$4 sm:$0xff]  }
  0x1f   :  { %v3749_v30 = vld [vmem:[%s5559_s1 + $0x28c] ss:$16 sps:$4 sm:$0xff]   ;;  %v3758_v37 = vld [vmem:[%s5559_s1 + $0x2c4] ss:$16 sps:$4 sm:$0xff]   ;;  %v3756_v39 = vld [vmem:[%s5559_s1 + $0x2c0] ss:$16 sps:$4 sm:$0xff]  }
  0x20   :  { %v3761_v38 = vld [vmem:[%s5559_s1 + $0x2cc] ss:$16 sps:$4 sm:$0xff]   ;;  %v3762_v44 = vld [vmem:[%s5559_s1 + $0x2e0] ss:$16 sps:$4 sm:$0xff]   ;;  %v3777_v55 = vld [vmem:[%s5559_s1 + $0x328] ss:$16 sps:$4 sm:$0xff]  }
  0x21   :  { %2523 = vmatpush1.bf16.msra.mxu0 %v3670_v31  ;;  %2810 = vmatpush1.bf16.msra.mxu1 %v3671_v32  ;;  %v3744_v31 = vld [vmem:[%s5559_s1 + $0x280] ss:$16 sps:$4 sm:$0xff]   ;;  %v3747_v32 = vld [vmem:[%s5559_s1 + $0x288] ss:$16 sps:$4 sm:$0xff]   ;;  %v3791_v61 = vld [vmem:[%s5559_s1 + $0x36c] ss:$16 sps:$4 sm:$0xff]  }
  0x22   :  { %2524 = vmatprep.subr.bf16.mxu0 %v3672_v33  ;;  %2811 = vmatprep.subr.bf16.mxu1 %v3674_v34  ;;  %v3752_v33 = vld [vmem:[%s5559_s1 + $0x2a4] ss:$16 sps:$4 sm:$0xff]   ;;  %v3755_v34 = vld [vmem:[%s5559_s1 + $0x2ac] ss:$16 sps:$4 sm:$0xff]   ;;  %v3783_v59 = vld [vmem:[%s5559_s1 + $0x348] ss:$16 sps:$4 sm:$0xff]  }
  0x25   :  { %2525 = vmatpush1.bf16.msra.mxu0 %v3676_v35  ;;  %2812 = vmatpush1.bf16.msra.mxu1 %v3677_v36  ;;  %v3750_v35 = vld [vmem:[%s5559_s1 + $0x2a0] ss:$16 sps:$4 sm:$0xff]   ;;  %v3753_v36 = vld [vmem:[%s5559_s1 + $0x2a8] ss:$16 sps:$4 sm:$0xff]  }
  0x26   :  { %2526 = vmatprep.subr.bf16.mxu0 %v3678_v40  ;;  %2813 = vmatprep.subr.bf16.mxu1 %v3680_v41  ;;  %v3759_v40 = vld [vmem:[%s5559_s1 + $0x2c8] ss:$16 sps:$4 sm:$0xff]   ;;  %v3764_v41 = vld [vmem:[%s5559_s1 + $0x2e4] ss:$16 sps:$4 sm:$0xff]  }
  0x29   :  { %2527 = vmatpush1.bf16.msra.mxu0 %v3682_v42  ;;  %2814 = vmatpush1.bf16.msra.mxu1 %v3683_v45  ;;  %v3767_v42 = vld [vmem:[%s5559_s1 + $0x2ec] ss:$16 sps:$4 sm:$0xff]   ;;  %v3765_v45 = vld [vmem:[%s5559_s1 + $0x2e8] ss:$16 sps:$4 sm:$0xff]  }
  0x2a   :  { %2528 = vmatprep.subr.bf16.mxu0 %v3684_v46  ;;  %2815 = vmatprep.subr.bf16.mxu1 %v3686_v47  ;;  %v3770_v46 = vld [vmem:[%s5559_s1 + $0x304] ss:$16 sps:$4 sm:$0xff]   ;;  %v3773_v47 = vld [vmem:[%s5559_s1 + $0x30c] ss:$16 sps:$4 sm:$0xff]  }
  0x2d   :  { %2529 = vmatpush1.bf16.msra.mxu0 %v3688_v48  ;;  %2816 = vmatpush1.bf16.msra.mxu1 %v3689_v49  ;;  %v3768_v48 = vld [vmem:[%s5559_s1 + $0x300] ss:$16 sps:$4 sm:$0xff]   ;;  %v3771_v49 = vld [vmem:[%s5559_s1 + $0x308] ss:$16 sps:$4 sm:$0xff]  }
  0x2e   :  { %2530 = vmatprep.subr.bf16.mxu0 %v3690_v51  ;;  %2817 = vmatprep.subr.bf16.mxu1 %v3692_v52  ;;  %v3776_v51 = vld [vmem:[%s5559_s1 + $0x324] ss:$16 sps:$4 sm:$0xff]   ;;  %v3779_v52 = vld [vmem:[%s5559_s1 + $0x32c] ss:$16 sps:$4 sm:$0xff]  }
  0x31   :  { %2531 = vmatpush1.bf16.msra.mxu0 %v3694_v54  ;;  %2818 = vmatpush1.bf16.msra.mxu1 %v3695_v56  ;;  %v3774_v54 = vld [vmem:[%s5559_s1 + $0x320] ss:$16 sps:$4 sm:$0xff]   ;;  %v3782_v56 = vld [vmem:[%s5559_s1 + $0x344] ss:$16 sps:$4 sm:$0xff]  }
  0x32   :  { %2532 = vmatprep.subr.bf16.mxu0 %v3696_v57  ;;  %2819 = vmatprep.subr.bf16.mxu1 %v3698_v58  ;;  %v3785_v57 = vld [vmem:[%s5559_s1 + $0x34c] ss:$16 sps:$4 sm:$0xff]   ;;  %v3780_v58 = vld [vmem:[%s5559_s1 + $0x340] ss:$16 sps:$4 sm:$0xff]  }
  0x35   :  { %2533 = vmatpush1.bf16.msra.mxu0 %v3700_v60  ;;  %2820 = vmatpush1.bf16.msra.mxu1 %v3701_v62  ;;  %v3788_v60 = vld [vmem:[%s5559_s1 + $0x364] ss:$16 sps:$4 sm:$0xff]   ;;  %v3786_v62 = vld [vmem:[%s5559_s1 + $0x360] ss:$16 sps:$4 sm:$0xff]  }
  0x36   :  { %2534 = vmatprep.subr.bf16.mxu0 %v3702_v63  ;;  %2821 = vmatprep.subr.bf16.mxu1 %v3704_v0  ;;  %v3789_v63 = vld [vmem:[%s5559_s1 + $0x368] ss:$16 sps:$4 sm:$0xff]   ;;  %v3794_v0 = vld [vmem:[%s5559_s1 + $0x384] ss:$16 sps:$4 sm:$0xff]  }
  0x39   :  { %2535 = vmatpush1.bf16.msra.mxu0 %v3706_v1  ;;  %2822 = vmatpush1.bf16.msra.mxu1 %v3707_v2  ;;  %v3797_v1 = vld [vmem:[%s5559_s1 + $0x38c] ss:$16 sps:$4 sm:$0xff]   ;;  %v3792_v2 = vld [vmem:[%s5559_s1 + $0x380] ss:$16 sps:$4 sm:$0xff]  }
  0x3a   :  { %2536 = vmatprep.subr.bf16.mxu0 %v3708_v3  ;;  %2823 = vmatprep.subr.bf16.mxu1 %v3710_v4  ;;  %v3795_v3 = vld [vmem:[%s5559_s1 + $0x388] ss:$16 sps:$4 sm:$0xff]   ;;  %v3800_v4 = vld [vmem:[%s5559_s1 + $0x3a4] ss:$16 sps:$4 sm:$0xff]  }
  0x3d   :  { %2537 = vmatpush1.bf16.msra.mxu0 %v3712_v5  ;;  %2824 = vmatpush1.bf16.msra.mxu1 %v3713_v6  ;;  %v3803_v5 = vld [vmem:[%s5559_s1 + $0x3ac] ss:$16 sps:$4 sm:$0xff]   ;;  %v3798_v6 = vld [vmem:[%s5559_s1 + $0x3a0] ss:$16 sps:$4 sm:$0xff]  }
  0x3e   :  { %2538 = vmatprep.subr.bf16.mxu0 %v3714_v7  ;;  %2825 = vmatprep.subr.bf16.mxu1 %v3716_v8  ;;  %v3801_v7 = vld [vmem:[%s5559_s1 + $0x3a8] ss:$16 sps:$4 sm:$0xff]   ;;  %v3806_v8 = vld [vmem:[%s5559_s1 + $0x3c4] ss:$16 sps:$4 sm:$0xff]  }
  0x41   :  { %2539 = vmatpush1.bf16.msra.mxu0 %v3718_v9  ;;  %2826 = vmatpush1.bf16.msra.mxu1 %v3719_v10  ;;  %v3809_v9 = vld [vmem:[%s5559_s1 + $0x3cc] ss:$16 sps:$4 sm:$0xff]   ;;  %v444_v10 = vcombine.high %v4426_v53, %v4426_v53 }
  0x42   :  { %2549 = vmatprep.subr.bf16.mxu0 %v3722_v11  ;;  %2836 = vmatprep.subr.bf16.mxu1 %v3725_v12  ;;  %v3804_v11 = vld [vmem:[%s5559_s1 + $0x3c0] ss:$16 sps:$4 sm:$0xff]   ;;  %v3807_v12 = vld [vmem:[%s5559_s1 + $0x3c8] ss:$16 sps:$4 sm:$0xff]   ;;  %v3815_v53 = vld [vmem:[%s5559_s1 + $0x3ec] ss:$16 sps:$4 sm:$0xff]  }
  0x44   :  { %2541 = vmatmul.mubr.bf16.vlgmr.msra.gmra.mrb[0].mxu0 %v4495_v14  ;;  %2828 = vmatmul.mubr.bf16.vlgmr.msra.gmra.mrb[0].mxu1 %v4495_v14 }
  0x45   :  { %2550 = vmatpush1.bf16.msra.mxu0 %v3720_v13  ;;  %2837 = vmatpush1.bf16.msra.mxu1 %v3723_v15  ;;  %v3812_v13 = vld [vmem:[%s5559_s1 + $0x3e4] ss:$16 sps:$4 sm:$0xff]   ;;  %v4679_v15 = vrot.slane %v444_v10, %v4415_v50  ;;  %v3891_v10 = vld [vmem:[%s5559_s1 + $0x588] ss:$16 sps:$4 sm:$0xff]  }
  0x46   :  { %2551 = vmatprep.subr.bf16.mxu0 %v3728_v16  ;;  %2838 = vmatprep.subr.bf16.mxu1 %v3731_v17  ;;  %v3810_v16 = vld [vmem:[%s5559_s1 + $0x3e0] ss:$16 sps:$4 sm:$0xff]   ;;  %v3813_v17 = vld [vmem:[%s5559_s1 + $0x3e8] ss:$16 sps:$4 sm:$0xff]  }
  0x47   :  { %2581 = vmatprep.mubr.bf16.mxu0 %v491_v18  ;;  %2868 = vmatprep.mubr.bf16.mxu1 %v491_v18  ;;  %v3818_v18 = vld [vmem:[%s5559_s1 + $0x404] ss:$16 sps:$4 sm:$0xff]  }
  0x49   :  { %2552 = vmatpush1.bf16.msra.mxu0 %v3726_v19  ;;  %2839 = vmatpush1.bf16.msra.mxu1 %v3729_v20  ;;  %v3821_v19 = vld [vmem:[%s5559_s1 + $0x40c] ss:$16 sps:$4 sm:$0xff]   ;;  %v460_v20 = vcombine.high %v4679_v15, %v4679_v15 }
  0x4a   :  { %2553 = vmatprep.subr.bf16.mxu0 %v3734_v21  ;;  %2840 = vmatprep.subr.bf16.mxu1 %v3737_v22  ;;  %v3816_v21 = vld [vmem:[%s5559_s1 + $0x400] ss:$16 sps:$4 sm:$0xff]   ;;  %v489_v22 = vcombine.high %v4495_v14, %v4495_v14 }
  0x4b   :  { %v3822_v14 = vld [vmem:[%s5559_s1 + $0x420] ss:$16 sps:$4 sm:$0xff]  }
  0x4d   :  { %2554 = vmatpush1.bf16.msra.mxu0 %v3732_v23  ;;  %2841 = vmatpush1.bf16.msra.mxu1 %v3735_v24  ;;  %v3819_v23 = vld [vmem:[%s5559_s1 + $0x408] ss:$16 sps:$4 sm:$0xff]   ;;  %v3824_v24 = vld [vmem:[%s5559_s1 + $0x424] ss:$16 sps:$4 sm:$0xff]  }
  0x4e   :  { %2555 = vmatprep.subr.bf16.mxu0 %v3740_v25  ;;  %2842 = vmatprep.subr.bf16.mxu1 %v3743_v26  ;;  %v3827_v25 = vld [vmem:[%s5559_s1 + $0x42c] ss:$16 sps:$4 sm:$0xff]   ;;  %v4710_v26 = vrot.slane %v460_v20, %v4415_v50  ;;  %v3908_v20 = vld [vmem:[%s5559_s1 + $0x5e4] ss:$16 sps:$4 sm:$0xff]  }
  0x51   :  { %2556 = vmatpush1.bf16.msra.mxu0 %v3738_v27  ;;  %2843 = vmatpush1.bf16.msra.mxu1 %v3741_v28  ;;  %v3825_v27 = vld [vmem:[%s5559_s1 + $0x428] ss:$16 sps:$4 sm:$0xff]   ;;  %v3830_v28 = vld [vmem:[%s5559_s1 + $0x444] ss:$16 sps:$4 sm:$0xff]  }
  0x52   :  { %2557 = vmatprep.subr.bf16.mxu0 %v3746_v29  ;;  %2844 = vmatprep.subr.bf16.mxu1 %v3749_v30  ;;  %v3833_v29 = vld [vmem:[%s5559_s1 + $0x44c] ss:$16 sps:$4 sm:$0xff]   ;;  %v3828_v30 = vld [vmem:[%s5559_s1 + $0x440] ss:$16 sps:$4 sm:$0xff]  }
  0x55   :  { %2558 = vmatpush1.bf16.msra.mxu0 %v3744_v31  ;;  %2845 = vmatpush1.bf16.msra.mxu1 %v3747_v32  ;;  %v3831_v31 = vld [vmem:[%s5559_s1 + $0x448] ss:$16 sps:$4 sm:$0xff]   ;;  %v3836_v32 = vld [vmem:[%s5559_s1 + $0x464] ss:$16 sps:$4 sm:$0xff]  }
  0x56   :  { %2559 = vmatprep.subr.bf16.mxu0 %v3752_v33  ;;  %2846 = vmatprep.subr.bf16.mxu1 %v3755_v34  ;;  %v3839_v33 = vld [vmem:[%s5559_s1 + $0x46c] ss:$16 sps:$4 sm:$0xff]   ;;  %v3834_v34 = vld [vmem:[%s5559_s1 + $0x460] ss:$16 sps:$4 sm:$0xff]  }
  0x59   :  { %2560 = vmatpush1.bf16.msra.mxu0 %v3750_v35  ;;  %2847 = vmatpush1.bf16.msra.mxu1 %v3753_v36  ;;  %v3837_v35 = vld [vmem:[%s5559_s1 + $0x468] ss:$16 sps:$4 sm:$0xff]   ;;  %v3842_v36 = vld [vmem:[%s5559_s1 + $0x484] ss:$16 sps:$4 sm:$0xff]  }
  0x5a   :  { %2561 = vmatprep.subr.bf16.mxu0 %v3758_v37  ;;  %2848 = vmatprep.subr.bf16.mxu1 %v3761_v38  ;;  %v3845_v37 = vld [vmem:[%s5559_s1 + $0x48c] ss:$16 sps:$4 sm:$0xff]   ;;  %v3840_v38 = vld [vmem:[%s5559_s1 + $0x480] ss:$16 sps:$4 sm:$0xff]  }
  0x5d   :  { %2562 = vmatpush1.bf16.msra.mxu0 %v3756_v39  ;;  %2849 = vmatpush1.bf16.msra.mxu1 %v3759_v40  ;;  %v3843_v39 = vld [vmem:[%s5559_s1 + $0x488] ss:$16 sps:$4 sm:$0xff]   ;;  %v3848_v40 = vld [vmem:[%s5559_s1 + $0x4a4] ss:$16 sps:$4 sm:$0xff]  }
  0x5e   :  { %2563 = vmatprep.subr.bf16.mxu0 %v3764_v41  ;;  %2850 = vmatprep.subr.bf16.mxu1 %v3767_v42  ;;  %v3851_v41 = vld [vmem:[%s5559_s1 + $0x4ac] ss:$16 sps:$4 sm:$0xff]   ;;  %v3846_v42 = vld [vmem:[%s5559_s1 + $0x4a0] ss:$16 sps:$4 sm:$0xff]  }
  0x61   :  { %2564 = vmatpush1.bf16.msra.mxu0 %v3762_v44  ;;  %2851 = vmatpush1.bf16.msra.mxu1 %v3765_v45  ;;  %v3849_v44 = vld [vmem:[%s5559_s1 + $0x4a8] ss:$16 sps:$4 sm:$0xff]   ;;  %v3854_v45 = vld [vmem:[%s5559_s1 + $0x4c4] ss:$16 sps:$4 sm:$0xff]  }
  0x62   :  { %2565 = vmatprep.subr.bf16.mxu0 %v3770_v46  ;;  %2852 = vmatprep.subr.bf16.mxu1 %v3773_v47  ;;  %v3857_v46 = vld [vmem:[%s5559_s1 + $0x4cc] ss:$16 sps:$4 sm:$0xff]   ;;  %v3852_v47 = vld [vmem:[%s5559_s1 + $0x4c0] ss:$16 sps:$4 sm:$0xff]  }
  0x65   :  { %2566 = vmatpush1.bf16.msra.mxu0 %v3768_v48  ;;  %2853 = vmatpush1.bf16.msra.mxu1 %v3771_v49  ;;  %v3855_v48 = vld [vmem:[%s5559_s1 + $0x4c8] ss:$16 sps:$4 sm:$0xff]   ;;  %v3860_v49 = vld [vmem:[%s5559_s1 + $0x4e4] ss:$16 sps:$4 sm:$0xff]  }
  0x66   :  { %2567 = vmatprep.subr.bf16.mxu0 %v3776_v51  ;;  %2854 = vmatprep.subr.bf16.mxu1 %v3779_v52  ;;  %v3863_v51 = vld [vmem:[%s5559_s1 + $0x4ec] ss:$16 sps:$4 sm:$0xff]   ;;  %v3858_v52 = vld [vmem:[%s5559_s1 + $0x4e0] ss:$16 sps:$4 sm:$0xff]  }
  0x69   :  { %2568 = vmatpush1.bf16.msra.mxu0 %v3774_v54  ;;  %2855 = vmatpush1.bf16.msra.mxu1 %v3777_v55  ;;  %v3861_v54 = vld [vmem:[%s5559_s1 + $0x4e8] ss:$16 sps:$4 sm:$0xff]   ;;  %v3866_v55 = vld [vmem:[%s5559_s1 + $0x504] ss:$16 sps:$4 sm:$0xff]  }
  0x6a   :  { %2569 = vmatprep.subr.bf16.mxu0 %v3782_v56  ;;  %2856 = vmatprep.subr.bf16.mxu1 %v3785_v57  ;;  %v3869_v56 = vld [vmem:[%s5559_s1 + $0x50c] ss:$16 sps:$4 sm:$0xff]   ;;  %v3864_v57 = vld [vmem:[%s5559_s1 + $0x500] ss:$16 sps:$4 sm:$0xff]  }
  0x6d   :  { %2570 = vmatpush1.bf16.msra.mxu0 %v3780_v58  ;;  %2857 = vmatpush1.bf16.msra.mxu1 %v3783_v59  ;;  %v3867_v58 = vld [vmem:[%s5559_s1 + $0x508] ss:$16 sps:$4 sm:$0xff]   ;;  %v3872_v59 = vld [vmem:[%s5559_s1 + $0x524] ss:$16 sps:$4 sm:$0xff]  }
  0x6e   :  { %2571 = vmatprep.subr.bf16.mxu0 %v3788_v60  ;;  %2858 = vmatprep.subr.bf16.mxu1 %v3791_v61  ;;  %v3875_v60 = vld [vmem:[%s5559_s1 + $0x52c] ss:$16 sps:$4 sm:$0xff]   ;;  %v3870_v61 = vld [vmem:[%s5559_s1 + $0x520] ss:$16 sps:$4 sm:$0xff]  }
  0x71   :  { %2572 = vmatpush1.bf16.msra.mxu0 %v3786_v62  ;;  %2859 = vmatpush1.bf16.msra.mxu1 %v3789_v63  ;;  %v3873_v62 = vld [vmem:[%s5559_s1 + $0x528] ss:$16 sps:$4 sm:$0xff]   ;;  %v3878_v63 = vld [vmem:[%s5559_s1 + $0x544] ss:$16 sps:$4 sm:$0xff]  }
  0x72   :  { %2573 = vmatprep.subr.bf16.mxu0 %v3794_v0  ;;  %2860 = vmatprep.subr.bf16.mxu1 %v3797_v1  ;;  %v3881_v0 = vld [vmem:[%s5559_s1 + $0x54c] ss:$16 sps:$4 sm:$0xff]   ;;  %v3876_v1 = vld [vmem:[%s5559_s1 + $0x540] ss:$16 sps:$4 sm:$0xff]  }
  0x75   :  { %2574 = vmatpush1.bf16.msra.mxu0 %v3792_v2  ;;  %2861 = vmatpush1.bf16.msra.mxu1 %v3795_v3  ;;  %v3879_v2 = vld [vmem:[%s5559_s1 + $0x548] ss:$16 sps:$4 sm:$0xff]   ;;  %v3884_v3 = vld [vmem:[%s5559_s1 + $0x564] ss:$16 sps:$4 sm:$0xff]  }
  0x76   :  { %2575 = vmatprep.subr.bf16.mxu0 %v3800_v4  ;;  %2862 = vmatprep.subr.bf16.mxu1 %v3803_v5  ;;  %v3887_v4 = vld [vmem:[%s5559_s1 + $0x56c] ss:$16 sps:$4 sm:$0xff]   ;;  %v3882_v5 = vld [vmem:[%s5559_s1 + $0x560] ss:$16 sps:$4 sm:$0xff]  }
  0x79   :  { %2576 = vmatpush1.bf16.msra.mxu0 %v3798_v6  ;;  %2863 = vmatpush1.bf16.msra.mxu1 %v3801_v7  ;;  %v3885_v6 = vld [vmem:[%s5559_s1 + $0x568] ss:$16 sps:$4 sm:$0xff]   ;;  %v3890_v7 = vld [vmem:[%s5559_s1 + $0x584] ss:$16 sps:$4 sm:$0xff]  }
  0x7a   :  { %2577 = vmatprep.subr.bf16.mxu0 %v3806_v8  ;;  %2864 = vmatprep.subr.bf16.mxu1 %v3809_v9  ;;  %v3893_v8 = vld [vmem:[%s5559_s1 + $0x58c] ss:$16 sps:$4 sm:$0xff]   ;;  %v3888_v9 = vld [vmem:[%s5559_s1 + $0x580] ss:$16 sps:$4 sm:$0xff]  }
  0x7d   :  { %2578 = vmatpush1.bf16.msra.mxu0 %v3804_v11  ;;  %2865 = vmatpush1.bf16.msra.mxu1 %v3807_v12  ;;  %v3896_v11 = vld [vmem:[%s5559_s1 + $0x5a4] ss:$16 sps:$4 sm:$0xff]   ;;  %v3899_v12 = vld [vmem:[%s5559_s1 + $0x5ac] ss:$16 sps:$4 sm:$0xff]  }
  0x7e   :  { %2579 = vmatprep.subr.bf16.mxu0 %v3812_v13  ;;  %2866 = vmatprep.subr.bf16.mxu1 %v3815_v53  ;;  %v3894_v13 = vld [vmem:[%s5559_s1 + $0x5a0] ss:$16 sps:$4 sm:$0xff]   ;;  %v3897_v53 = vld [vmem:[%s5559_s1 + $0x5a8] ss:$16 sps:$4 sm:$0xff]  }
  0x81   :  { %2580 = vmatpush1.bf16.msra.mxu0 %v3810_v16  ;;  %2867 = vmatpush1.bf16.msra.mxu1 %v3813_v17  ;;  %v3902_v16 = vld [vmem:[%s5559_s1 + $0x5c4] ss:$16 sps:$4 sm:$0xff]   ;;  %v3905_v17 = vld [vmem:[%s5559_s1 + $0x5cc] ss:$16 sps:$4 sm:$0xff]  }
  0x82   :  { %2590 = vmatprep.subr.bf16.mxu0 %v3818_v18  ;;  %2877 = vmatprep.subr.bf16.mxu1 %v3821_v19  ;;  %v3900_v18 = vld [vmem:[%s5559_s1 + $0x5c0] ss:$16 sps:$4 sm:$0xff]   ;;  %v3903_v19 = vld [vmem:[%s5559_s1 + $0x5c8] ss:$16 sps:$4 sm:$0xff]  }
  0x84   :  { %2582 = vmatmul.mubr.bf16.vlgmr.msra.gmra.mrb[0].mxu0 %v489_v22  ;;  %2869 = vmatmul.mubr.bf16.vlgmr.msra.gmra.mrb[0].mxu1 %v489_v22  ;;  %v3906_v22 = vld [vmem:[%s5559_s1 + $0x5e0] ss:$16 sps:$4 sm:$0xff]  }
  0x85   :  { %2591 = vmatpush1.bf16.msra.mxu0 %v3816_v21  ;;  %2878 = vmatpush1.bf16.msra.mxu1 %v3819_v23  ;;  %v3911_v21 = vld [vmem:[%s5559_s1 + $0x5ec] ss:$16 sps:$4 sm:$0xff]   ;;  %v3909_v23 = vld [vmem:[%s5559_s1 + $0x5e8] ss:$16 sps:$4 sm:$0xff]  }
  0x86   :  { %2592 = vmatprep.subr.bf16.mxu0 %v3824_v24  ;;  %2879 = vmatprep.subr.bf16.mxu1 %v3827_v25  ;;  %v3915_v24 = vld [vmem:[%s5559_s1 + $0x604] ss:$16 sps:$4 sm:$0xff]   ;;  %v3918_v25 = vld [vmem:[%s5559_s1 + $0x60c] ss:$16 sps:$4 sm:$0xff]  }
  0x87   :  { %2622 = vmatprep.mubr.bf16.mxu0 %v4710_v26  ;;  %2909 = vmatprep.mubr.bf16.mxu1 %v4710_v26 }
  0x89   :  { %2593 = vmatpush1.bf16.msra.mxu0 %v3822_v14  ;;  %2880 = vmatpush1.bf16.msra.mxu1 %v3825_v27  ;;  %v3913_v14 = vld [vmem:[%s5559_s1 + $0x600] ss:$16 sps:$4 sm:$0xff]   ;;  %v4899_v27 = vrot.slane %v4679_v15, %v4415_v50  ;;  %v492_v15 = vcombine.high %v4710_v26, %v4710_v26  ;;  %v3927_v26 = vld [vmem:[%s5559_s1 + $0x644] ss:$16 sps:$4 sm:$0xff]  }
  0x8a   :  { %2594 = vmatprep.subr.bf16.mxu0 %v3830_v28  ;;  %2881 = vmatprep.subr.bf16.mxu1 %v3833_v29  ;;  %v3916_v28 = vld [vmem:[%s5559_s1 + $0x608] ss:$16 sps:$4 sm:$0xff]   ;;  %v3921_v29 = vld [vmem:[%s5559_s1 + $0x624] ss:$16 sps:$4 sm:$0xff]  }
  0x8d   :  { %2595 = vmatpush1.bf16.msra.mxu0 %v3828_v30  ;;  %2882 = vmatpush1.bf16.msra.mxu1 %v3831_v31  ;;  %v3924_v30 = vld [vmem:[%s5559_s1 + $0x62c] ss:$16 sps:$4 sm:$0xff]   ;;  %v3919_v31 = vld [vmem:[%s5559_s1 + $0x620] ss:$16 sps:$4 sm:$0xff]  }
  0x8e   :  { %2596 = vmatprep.subr.bf16.mxu0 %v3836_v32  ;;  %2883 = vmatprep.subr.bf16.mxu1 %v3839_v33  ;;  %v3922_v32 = vld [vmem:[%s5559_s1 + $0x628] ss:$16 sps:$4 sm:$0xff]   ;;  %v3930_v33 = vld [vmem:[%s5559_s1 + $0x64c] ss:$16 sps:$4 sm:$0xff]  }
  0x91   :  { %2597 = vmatpush1.bf16.msra.mxu0 %v3834_v34  ;;  %2884 = vmatpush1.bf16.msra.mxu1 %v3837_v35  ;;  %v3925_v34 = vld [vmem:[%s5559_s1 + $0x640] ss:$16 sps:$4 sm:$0xff]   ;;  %v3928_v35 = vld [vmem:[%s5559_s1 + $0x648] ss:$16 sps:$4 sm:$0xff]  }
  0x92   :  { %2598 = vmatprep.subr.bf16.mxu0 %v3842_v36  ;;  %2885 = vmatprep.subr.bf16.mxu1 %v3845_v37  ;;  %v3933_v36 = vld [vmem:[%s5559_s1 + $0x664] ss:$16 sps:$4 sm:$0xff]   ;;  %v3936_v37 = vld [vmem:[%s5559_s1 + $0x66c] ss:$16 sps:$4 sm:$0xff]  }
  0x95   :  { %2599 = vmatpush1.bf16.msra.mxu0 %v3840_v38  ;;  %2886 = vmatpush1.bf16.msra.mxu1 %v3843_v39  ;;  %v3931_v38 = vld [vmem:[%s5559_s1 + $0x660] ss:$16 sps:$4 sm:$0xff]   ;;  %v3934_v39 = vld [vmem:[%s5559_s1 + $0x668] ss:$16 sps:$4 sm:$0xff]  }
  0x96   :  { %2600 = vmatprep.subr.bf16.mxu0 %v3848_v40  ;;  %2887 = vmatprep.subr.bf16.mxu1 %v3851_v41  ;;  %v3939_v40 = vld [vmem:[%s5559_s1 + $0x684] ss:$16 sps:$4 sm:$0xff]   ;;  %v3942_v41 = vld [vmem:[%s5559_s1 + $0x68c] ss:$16 sps:$4 sm:$0xff]  }
  0x99   :  { %2601 = vmatpush1.bf16.msra.mxu0 %v3846_v42  ;;  %2888 = vmatpush1.bf16.msra.mxu1 %v3849_v44  ;;  %v3937_v42 = vld [vmem:[%s5559_s1 + $0x680] ss:$16 sps:$4 sm:$0xff]   ;;  %v3940_v44 = vld [vmem:[%s5559_s1 + $0x688] ss:$16 sps:$4 sm:$0xff]  }
  0x9a   :  { %2602 = vmatprep.subr.bf16.mxu0 %v3854_v45  ;;  %2889 = vmatprep.subr.bf16.mxu1 %v3857_v46  ;;  %v3945_v45 = vld [vmem:[%s5559_s1 + $0x6a4] ss:$16 sps:$4 sm:$0xff]   ;;  %v3948_v46 = vld [vmem:[%s5559_s1 + $0x6ac] ss:$16 sps:$4 sm:$0xff]  }
  0x9d   :  { %2603 = vmatpush1.bf16.msra.mxu0 %v3852_v47  ;;  %2890 = vmatpush1.bf16.msra.mxu1 %v3855_v48  ;;  %v3943_v47 = vld [vmem:[%s5559_s1 + $0x6a0] ss:$16 sps:$4 sm:$0xff]   ;;  %v3946_v48 = vld [vmem:[%s5559_s1 + $0x6a8] ss:$16 sps:$4 sm:$0xff]  }
  0x9e   :  { %2604 = vmatprep.subr.bf16.mxu0 %v3860_v49  ;;  %2891 = vmatprep.subr.bf16.mxu1 %v3863_v51  ;;  %v3951_v49 = vld [vmem:[%s5559_s1 + $0x6c4] ss:$16 sps:$4 sm:$0xff]   ;;  %v3954_v51 = vld [vmem:[%s5559_s1 + $0x6cc] ss:$16 sps:$4 sm:$0xff]  }
  0xa1   :  { %2605 = vmatpush1.bf16.msra.mxu0 %v3858_v52  ;;  %2892 = vmatpush1.bf16.msra.mxu1 %v3861_v54  ;;  %v3949_v52 = vld [vmem:[%s5559_s1 + $0x6c0] ss:$16 sps:$4 sm:$0xff]   ;;  %v3952_v54 = vld [vmem:[%s5559_s1 + $0x6c8] ss:$16 sps:$4 sm:$0xff]  }
  0xa2   :  { %2606 = vmatprep.subr.bf16.mxu0 %v3866_v55  ;;  %2893 = vmatprep.subr.bf16.mxu1 %v3869_v56  ;;  %v3957_v55 = vld [vmem:[%s5559_s1 + $0x6e4] ss:$16 sps:$4 sm:$0xff]   ;;  %v3960_v56 = vld [vmem:[%s5559_s1 + $0x6ec] ss:$16 sps:$4 sm:$0xff]  }
  0xa5   :  { %2607 = vmatpush1.bf16.msra.mxu0 %v3864_v57  ;;  %2894 = vmatpush1.bf16.msra.mxu1 %v3867_v58  ;;  %v3955_v57 = vld [vmem:[%s5559_s1 + $0x6e0] ss:$16 sps:$4 sm:$0xff]   ;;  %v3958_v58 = vld [vmem:[%s5559_s1 + $0x6e8] ss:$16 sps:$4 sm:$0xff]  }
  0xa6   :  { %2608 = vmatprep.subr.bf16.mxu0 %v3872_v59  ;;  %2895 = vmatprep.subr.bf16.mxu1 %v3875_v60  ;;  %v3963_v59 = vld [vmem:[%s5559_s1 + $0x704] ss:$16 sps:$4 sm:$0xff]   ;;  %v3966_v60 = vld [vmem:[%s5559_s1 + $0x70c] ss:$16 sps:$4 sm:$0xff]  }
  0xa9   :  { %2609 = vmatpush1.bf16.msra.mxu0 %v3870_v61  ;;  %2896 = vmatpush1.bf16.msra.mxu1 %v3873_v62  ;;  %v3961_v61 = vld [vmem:[%s5559_s1 + $0x700] ss:$16 sps:$4 sm:$0xff]   ;;  %v3964_v62 = vld [vmem:[%s5559_s1 + $0x708] ss:$16 sps:$4 sm:$0xff]  }
  0xaa   :  { %2610 = vmatprep.subr.bf16.mxu0 %v3878_v63  ;;  %2897 = vmatprep.subr.bf16.mxu1 %v3881_v0  ;;  %v3969_v63 = vld [vmem:[%s5559_s1 + $0x724] ss:$16 sps:$4 sm:$0xff]   ;;  %v3972_v0 = vld [vmem:[%s5559_s1 + $0x72c] ss:$16 sps:$4 sm:$0xff]  }
  0xad   :  { %2611 = vmatpush1.bf16.msra.mxu0 %v3876_v1  ;;  %2898 = vmatpush1.bf16.msra.mxu1 %v3879_v2  ;;  %v3967_v1 = vld [vmem:[%s5559_s1 + $0x720] ss:$16 sps:$4 sm:$0xff]   ;;  %v3970_v2 = vld [vmem:[%s5559_s1 + $0x728] ss:$16 sps:$4 sm:$0xff]  }
  0xae   :  { %2612 = vmatprep.subr.bf16.mxu0 %v3884_v3  ;;  %2899 = vmatprep.subr.bf16.mxu1 %v3887_v4  ;;  %v3975_v3 = vld [vmem:[%s5559_s1 + $0x744] ss:$16 sps:$4 sm:$0xff]   ;;  %v3978_v4 = vld [vmem:[%s5559_s1 + $0x74c] ss:$16 sps:$4 sm:$0xff]  }
  0xb1   :  { %2613 = vmatpush1.bf16.msra.mxu0 %v3882_v5  ;;  %2900 = vmatpush1.bf16.msra.mxu1 %v3885_v6  ;;  %v3973_v5 = vld [vmem:[%s5559_s1 + $0x740] ss:$16 sps:$4 sm:$0xff]   ;;  %v3976_v6 = vld [vmem:[%s5559_s1 + $0x748] ss:$16 sps:$4 sm:$0xff]  }
  0xb2   :  { %2614 = vmatprep.subr.bf16.mxu0 %v3890_v7  ;;  %2901 = vmatprep.subr.bf16.mxu1 %v3893_v8  ;;  %v3981_v7 = vld [vmem:[%s5559_s1 + $0x764] ss:$16 sps:$4 sm:$0xff]   ;;  %v3984_v8 = vld [vmem:[%s5559_s1 + $0x76c] ss:$16 sps:$4 sm:$0xff]  }
  0xb5   :  { %2615 = vmatpush1.bf16.msra.mxu0 %v3888_v9  ;;  %2902 = vmatpush1.bf16.msra.mxu1 %v3891_v10  ;;  %v3979_v9 = vld [vmem:[%s5559_s1 + $0x760] ss:$16 sps:$4 sm:$0xff]   ;;  %v3982_v10 = vld [vmem:[%s5559_s1 + $0x768] ss:$16 sps:$4 sm:$0xff]  }
  0xb6   :  { %2616 = vmatprep.subr.bf16.mxu0 %v3896_v11  ;;  %2903 = vmatprep.subr.bf16.mxu1 %v3899_v12  ;;  %v3987_v11 = vld [vmem:[%s5559_s1 + $0x784] ss:$16 sps:$4 sm:$0xff]   ;;  %v3990_v12 = vld [vmem:[%s5559_s1 + $0x78c] ss:$16 sps:$4 sm:$0xff]  }
  0xb9   :  { %2617 = vmatpush1.bf16.msra.mxu0 %v3894_v13  ;;  %2904 = vmatpush1.bf16.msra.mxu1 %v3897_v53  ;;  %v3985_v13 = vld [vmem:[%s5559_s1 + $0x780] ss:$16 sps:$4 sm:$0xff]   ;;  %v3988_v53 = vld [vmem:[%s5559_s1 + $0x788] ss:$16 sps:$4 sm:$0xff]  }
  0xba   :  { %2618 = vmatprep.subr.bf16.mxu0 %v3902_v16  ;;  %2905 = vmatprep.subr.bf16.mxu1 %v3905_v17  ;;  %v3993_v16 = vld [vmem:[%s5559_s1 + $0x7a4] ss:$16 sps:$4 sm:$0xff]   ;;  %v3996_v17 = vld [vmem:[%s5559_s1 + $0x7ac] ss:$16 sps:$4 sm:$0xff]  }
  0xbd   :  { %2619 = vmatpush1.bf16.msra.mxu0 %v3900_v18  ;;  %2906 = vmatpush1.bf16.msra.mxu1 %v3903_v19  ;;  %v3991_v18 = vld [vmem:[%s5559_s1 + $0x7a0] ss:$16 sps:$4 sm:$0xff]   ;;  %v3994_v19 = vld [vmem:[%s5559_s1 + $0x7a8] ss:$16 sps:$4 sm:$0xff]  }
  0xbe   :  { %2620 = vmatprep.subr.bf16.mxu0 %v3908_v20  ;;  %2907 = vmatprep.subr.bf16.mxu1 %v3911_v21  ;;  %v3999_v20 = vld [vmem:[%s5559_s1 + $0x7c4] ss:$16 sps:$4 sm:$0xff]   ;;  %v4002_v21 = vld [vmem:[%s5559_s1 + $0x7cc] ss:$16 sps:$4 sm:$0xff]  }
  0xc1   :  { %2621 = vmatpush1.bf16.msra.mxu0 %v3906_v22  ;;  %2908 = vmatpush1.bf16.msra.mxu1 %v3909_v23  ;;  %v5073_v22 = vld [vmem:[%s5558_s0 + $0x8] sm:$0x1f]  ;;  %v3997_v23 = vld [vmem:[%s5559_s1 + $0x7c0] ss:$16 sps:$4 sm:$0xff]  }
  0xc2   :  { %2631 = vmatprep.subr.bf16.mxu0 %v3915_v24  ;;  %2918 = vmatprep.subr.bf16.mxu1 %v3918_v25  ;;  %v4000_v24 = vld [vmem:[%s5559_s1 + $0x7c8] ss:$16 sps:$4 sm:$0xff]   ;;  %v4005_v25 = vld [vmem:[%s5559_s1 + $0x7e4] ss:$16 sps:$4 sm:$0xff]  }
  0xc4   :  { %2623 = vmatmul.mubr.bf16.vlgmr.msra.gmra.mrb[0].mxu0 %v4899_v27  ;;  %2910 = vmatmul.mubr.bf16.vlgmr.msra.gmra.mrb[0].mxu1 %v4899_v27 }
  0xc5   :  { %2632 = vmatpush1.bf16.msra.mxu0 %v3913_v14  ;;  %2919 = vmatpush1.bf16.msra.mxu1 %v3916_v28  ;;  %v4008_v14 = vld [vmem:[%s5559_s1 + $0x7ec] ss:$16 sps:$4 sm:$0xff]   ;;  %v5089_v28 = vrot.slane %v5073_v22, %v4415_v50 }
  0xc6   :  { %2633 = vmatprep.subr.bf16.mxu0 %v3921_v29  ;;  %2920 = vmatprep.subr.bf16.mxu1 %v3924_v30  ;;  %v4003_v29 = vld [vmem:[%s5559_s1 + $0x7e0] ss:$16 sps:$4 sm:$0xff]   ;;  %v4006_v30 = vld [vmem:[%s5559_s1 + $0x7e8] ss:$16 sps:$4 sm:$0xff]  }
  0xc7   :  { %2663 = vmatprep.mubr.bf16.mxu0 %v492_v15  ;;  %2950 = vmatprep.mubr.bf16.mxu1 %v492_v15  ;;  %v4011_v15 = vld [vmem:[%s5559_s1 + $0x804] ss:$16 sps:$4 sm:$0xff]  }
  0xc9   :  { %2634 = vmatpush1.bf16.msra.mxu0 %v3919_v31  ;;  %2921 = vmatpush1.bf16.msra.mxu1 %v3922_v32  ;;  %v4014_v31 = vld [vmem:[%s5559_s1 + $0x80c] ss:$16 sps:$4 sm:$0xff]   ;;  %v4009_v32 = vld [vmem:[%s5559_s1 + $0x800] ss:$16 sps:$4 sm:$0xff]  }
  0xca   :  { %2635 = vmatprep.subr.bf16.mxu0 %v3927_v26  ;;  %2922 = vmatprep.subr.bf16.mxu1 %v3930_v33  ;;  %v508_v26 = vcombine.high %v5089_v28, %v5089_v28  ;;  %v4012_v33 = vld [vmem:[%s5559_s1 + $0x808] ss:$16 sps:$4 sm:$0xff]  }
  0xcd   :  { %2636 = vmatpush1.bf16.msra.mxu0 %v3925_v34  ;;  %2923 = vmatpush1.bf16.msra.mxu1 %v3928_v35  ;;  %v490_v34 = vcombine.high %v4899_v27, %v4899_v27  ;;  %v4017_v35 = vld [vmem:[%s5559_s1 + $0x824] ss:$16 sps:$4 sm:$0xff]   ;;  %v4015_v27 = vld [vmem:[%s5559_s1 + $0x820] ss:$16 sps:$4 sm:$0xff]  }
  0xce   :  { %2637 = vmatprep.subr.bf16.mxu0 %v3933_v36  ;;  %2924 = vmatprep.subr.bf16.mxu1 %v3936_v37  ;;  %v4020_v36 = vld [vmem:[%s5559_s1 + $0x82c] ss:$16 sps:$4 sm:$0xff]   ;;  %v5120_v37 = vrot.slane %v508_v26, %v4415_v50 }
  0xd1   :  { %2638 = vmatpush1.bf16.msra.mxu0 %v3931_v38  ;;  %2925 = vmatpush1.bf16.msra.mxu1 %v3934_v39  ;;  %v4018_v38 = vld [vmem:[%s5559_s1 + $0x828] ss:$16 sps:$4 sm:$0xff]   ;;  %v4023_v39 = vld [vmem:[%s5559_s1 + $0x844] ss:$16 sps:$4 sm:$0xff]  }
  0xd2   :  { %2639 = vmatprep.subr.bf16.mxu0 %v3939_v40  ;;  %2926 = vmatprep.subr.bf16.mxu1 %v3942_v41  ;;  %v4026_v40 = vld [vmem:[%s5559_s1 + $0x84c] ss:$16 sps:$4 sm:$0xff]  }
  0xd5   :  { %2640 = vmatpush1.bf16.msra.mxu0 %v3937_v42  ;;  %2927 = vmatpush1.bf16.msra.mxu1 %v3940_v44 }
  0xd6   :  { %2641 = vmatprep.subr.bf16.mxu0 %v3945_v45  ;;  %2928 = vmatprep.subr.bf16.mxu1 %v3948_v46 }
  0xd9   :  { %2642 = vmatpush1.bf16.msra.mxu0 %v3943_v47  ;;  %2929 = vmatpush1.bf16.msra.mxu1 %v3946_v48 }
  0xda   :  { %2643 = vmatprep.subr.bf16.mxu0 %v3951_v49  ;;  %2930 = vmatprep.subr.bf16.mxu1 %v3954_v51 }
  0xdd   :  { %2644 = vmatpush1.bf16.msra.mxu0 %v3949_v52  ;;  %2931 = vmatpush1.bf16.msra.mxu1 %v3952_v54 }
  0xde   :  { %2645 = vmatprep.subr.bf16.mxu0 %v3957_v55  ;;  %2932 = vmatprep.subr.bf16.mxu1 %v3960_v56 }
  0xe1   :  { %2646 = vmatpush1.bf16.msra.mxu0 %v3955_v57  ;;  %2933 = vmatpush1.bf16.msra.mxu1 %v3958_v58 }
  0xe2   :  { %2647 = vmatprep.subr.bf16.mxu0 %v3963_v59  ;;  %2934 = vmatprep.subr.bf16.mxu1 %v3966_v60 }
  0xe5   :  { %2648 = vmatpush1.bf16.msra.mxu0 %v3961_v61  ;;  %2935 = vmatpush1.bf16.msra.mxu1 %v3964_v62 }
  0xe6   :  { %2649 = vmatprep.subr.bf16.mxu0 %v3969_v63  ;;  %2936 = vmatprep.subr.bf16.mxu1 %v3972_v0 }
  0xe9   :  { %2650 = vmatpush1.bf16.msra.mxu0 %v3967_v1  ;;  %2937 = vmatpush1.bf16.msra.mxu1 %v3970_v2 }
  0xea   :  { %2651 = vmatprep.subr.bf16.mxu0 %v3975_v3  ;;  %2938 = vmatprep.subr.bf16.mxu1 %v3978_v4 }
  0xed   :  { %2652 = vmatpush1.bf16.msra.mxu0 %v3973_v5  ;;  %2939 = vmatpush1.bf16.msra.mxu1 %v3976_v6 }
  0xee   :  { %2653 = vmatprep.subr.bf16.mxu0 %v3981_v7  ;;  %2940 = vmatprep.subr.bf16.mxu1 %v3984_v8 }
  0xf1   :  { %2654 = vmatpush1.bf16.msra.mxu0 %v3979_v9  ;;  %2941 = vmatpush1.bf16.msra.mxu1 %v3982_v10 }
  0xf2   :  { %2655 = vmatprep.subr.bf16.mxu0 %v3987_v11  ;;  %2942 = vmatprep.subr.bf16.mxu1 %v3990_v12 }
  0xf5   :  { %2656 = vmatpush1.bf16.msra.mxu0 %v3985_v13  ;;  %2943 = vmatpush1.bf16.msra.mxu1 %v3988_v53 }
  0xf6   :  { %2657 = vmatprep.subr.bf16.mxu0 %v3993_v16  ;;  %2944 = vmatprep.subr.bf16.mxu1 %v3996_v17 }
  0xf9   :  { %2658 = vmatpush1.bf16.msra.mxu0 %v3991_v18  ;;  %2945 = vmatpush1.bf16.msra.mxu1 %v3994_v19 }
  0xfa   :  { %2659 = vmatprep.subr.bf16.mxu0 %v3999_v20  ;;  %2946 = vmatprep.subr.bf16.mxu1 %v4002_v21 }
  0xfd   :  { %2660 = vmatpush1.bf16.msra.mxu0 %v3997_v23  ;;  %2947 = vmatpush1.bf16.msra.mxu1 %v4000_v24 }
  0xfe   :  { %2661 = vmatprep.subr.bf16.mxu0 %v4005_v25  ;;  %2948 = vmatprep.subr.bf16.mxu1 %v4008_v14 }
 0x101   :  { %2662 = vmatpush1.bf16.msra.mxu0 %v4003_v29  ;;  %2949 = vmatpush1.bf16.msra.mxu1 %v4006_v30 }
 0x102   :  { %2672 = vmatprep.subr.bf16.mxu0 %v4011_v15  ;;  %2959 = vmatprep.subr.bf16.mxu1 %v4014_v31 }
 0x104   :  { %2664 = vmatmul.mubr.bf16.vlgmr.msra.gmra.mrb[0].mxu0 %v490_v34  ;;  %2951 = vmatmul.mubr.bf16.vlgmr.msra.gmra.mrb[0].mxu1 %v490_v34 }
 0x105   :  { %2673 = vmatpush1.bf16.msra.mxu0 %v4009_v32  ;;  %2960 = vmatpush1.bf16.msra.mxu1 %v4012_v33 }
 0x106   :  { %2674 = vmatprep.subr.bf16.mxu0 %v4017_v35  ;;  %2961 = vmatprep.subr.bf16.mxu1 %v4020_v36 }
 0x107   :  { %14 = vsyncpa [#allocation4], 0  ;;  %2704 = vmatprep.mubr.bf16.mxu0 %v5120_v37  ;;  %2991 = vmatprep.mubr.bf16.mxu1 %v5120_v37  ;;  %v4021_v41 = vld [vmem:[%s5559_s1 + $0x840] ss:$16 sps:$4 sm:$0xff]   ;;  %v4024_v42 = vld [vmem:[%s5559_s1 + $0x848] ss:$16 sps:$4 sm:$0xff]  }
 0x108   :  { %v4029_v44 = vld [vmem:[%s5559_s1 + $0x864] ss:$16 sps:$4 sm:$0xff]   ;;  %v4032_v45 = vld [vmem:[%s5559_s1 + $0x86c] ss:$16 sps:$4 sm:$0xff]   ;;  %v4027_v46 = vld [vmem:[%s5559_s1 + $0x860] ss:$16 sps:$4 sm:$0xff]  }
 0x109   :  { %2675 = vmatpush1.bf16.msra.mxu0 %v4015_v27  ;;  %2962 = vmatpush1.bf16.msra.mxu1 %v4018_v38  ;;  %v4030_v47 = vld [vmem:[%s5559_s1 + $0x868] ss:$16 sps:$4 sm:$0xff]   ;;  %v4035_v48 = vld [vmem:[%s5559_s1 + $0x884] ss:$16 sps:$4 sm:$0xff]   ;;  %v4038_v49 = vld [vmem:[%s5559_s1 + $0x88c] ss:$16 sps:$4 sm:$0xff]   ;;  %v5306_v38 = vrot.slane %v5089_v28, %v4415_v50 }
 0x10a   :  { %2676 = vmatprep.subr.bf16.mxu0 %v4023_v39  ;;  %2963 = vmatprep.subr.bf16.mxu1 %v4026_v40  ;;  %v4033_v51 = vld [vmem:[%s5559_s1 + $0x880] ss:$16 sps:$4 sm:$0xff]   ;;  %v4036_v52 = vld [vmem:[%s5559_s1 + $0x888] ss:$16 sps:$4 sm:$0xff]   ;;  %v4041_v54 = vld [vmem:[%s5559_s1 + $0x8a4] ss:$16 sps:$4 sm:$0xff]  }
 0x10b   :  { %v4044_v55 = vld [vmem:[%s5559_s1 + $0x8ac] ss:$16 sps:$4 sm:$0xff]   ;;  %v4039_v56 = vld [vmem:[%s5559_s1 + $0x8a0] ss:$16 sps:$4 sm:$0xff]   ;;  %v4042_v57 = vld [vmem:[%s5559_s1 + $0x8a8] ss:$16 sps:$4 sm:$0xff]  }
 0x10c   :  { %v4047_v58 = vld [vmem:[%s5559_s1 + $0x8c4] ss:$16 sps:$4 sm:$0xff]   ;;  %v4050_v59 = vld [vmem:[%s5559_s1 + $0x8cc] ss:$16 sps:$4 sm:$0xff]   ;;  %v4045_v60 = vld [vmem:[%s5559_s1 + $0x8c0] ss:$16 sps:$4 sm:$0xff]  }
 0x10d   :  { %2677 = vmatpush1.bf16.msra.mxu0 %v4021_v41  ;;  %2964 = vmatpush1.bf16.msra.mxu1 %v4024_v42  ;;  %v4048_v61 = vld [vmem:[%s5559_s1 + $0x8c8] ss:$16 sps:$4 sm:$0xff]   ;;  %v4053_v62 = vld [vmem:[%s5559_s1 + $0x8e4] ss:$16 sps:$4 sm:$0xff]   ;;  %v4056_v63 = vld [vmem:[%s5559_s1 + $0x8ec] ss:$16 sps:$4 sm:$0xff]   ;;  %v531_v42 = vcombine.high %v5120_v37, %v5120_v37 }
 0x10e   :  { %2678 = vmatprep.subr.bf16.mxu0 %v4029_v44  ;;  %2965 = vmatprep.subr.bf16.mxu1 %v4032_v45  ;;  %v4051_v0 = vld [vmem:[%s5559_s1 + $0x8e0] ss:$16 sps:$4 sm:$0xff]   ;;  %v4054_v1 = vld [vmem:[%s5559_s1 + $0x8e8] ss:$16 sps:$4 sm:$0xff]   ;;  %v4059_v2 = vld [vmem:[%s5559_s1 + $0x904] ss:$16 sps:$4 sm:$0xff]  }
 0x10f   :  { %v4062_v3 = vld [vmem:[%s5559_s1 + $0x90c] ss:$16 sps:$4 sm:$0xff]   ;;  %v4057_v4 = vld [vmem:[%s5559_s1 + $0x900] ss:$16 sps:$4 sm:$0xff]   ;;  %v4060_v5 = vld [vmem:[%s5559_s1 + $0x908] ss:$16 sps:$4 sm:$0xff]  }
 0x110   :  { %v4065_v6 = vld [vmem:[%s5559_s1 + $0x924] ss:$16 sps:$4 sm:$0xff]   ;;  %v4068_v7 = vld [vmem:[%s5559_s1 + $0x92c] ss:$16 sps:$4 sm:$0xff]   ;;  %v4063_v8 = vld [vmem:[%s5559_s1 + $0x920] ss:$16 sps:$4 sm:$0xff]  }
 0x111   :  { %2679 = vmatpush1.bf16.msra.mxu0 %v4027_v46  ;;  %2966 = vmatpush1.bf16.msra.mxu1 %v4030_v47  ;;  %v4066_v9 = vld [vmem:[%s5559_s1 + $0x928] ss:$16 sps:$4 sm:$0xff]   ;;  %v4071_v10 = vld [vmem:[%s5559_s1 + $0x944] ss:$16 sps:$4 sm:$0xff]   ;;  %v4074_v11 = vld [vmem:[%s5559_s1 + $0x94c] ss:$16 sps:$4 sm:$0xff]  }
 0x112   :  { %2680 = vmatprep.subr.bf16.mxu0 %v4035_v48  ;;  %2967 = vmatprep.subr.bf16.mxu1 %v4038_v49  ;;  %v4069_v12 = vld [vmem:[%s5559_s1 + $0x940] ss:$16 sps:$4 sm:$0xff]   ;;  %v4072_v13 = vld [vmem:[%s5559_s1 + $0x948] ss:$16 sps:$4 sm:$0xff]   ;;  %v4077_v53 = vld [vmem:[%s5559_s1 + $0x964] ss:$16 sps:$4 sm:$0xff]  }
 0x113   :  { %v4080_v16 = vld [vmem:[%s5559_s1 + $0x96c] ss:$16 sps:$4 sm:$0xff]   ;;  %v4075_v17 = vld [vmem:[%s5559_s1 + $0x960] ss:$16 sps:$4 sm:$0xff]   ;;  %v4078_v18 = vld [vmem:[%s5559_s1 + $0x968] ss:$16 sps:$4 sm:$0xff]  }
 0x114   :  { %v4083_v19 = vld [vmem:[%s5559_s1 + $0x984] ss:$16 sps:$4 sm:$0xff]   ;;  %v4086_v20 = vld [vmem:[%s5559_s1 + $0x98c] ss:$16 sps:$4 sm:$0xff]   ;;  %v4081_v21 = vld [vmem:[%s5559_s1 + $0x980] ss:$16 sps:$4 sm:$0xff]  }
 0x115   :  { %2681 = vmatpush1.bf16.msra.mxu0 %v4033_v51  ;;  %2968 = vmatpush1.bf16.msra.mxu1 %v4036_v52  ;;  %v4084_v23 = vld [vmem:[%s5559_s1 + $0x988] ss:$16 sps:$4 sm:$0xff]   ;;  %v4089_v24 = vld [vmem:[%s5559_s1 + $0x9a4] ss:$16 sps:$4 sm:$0xff]   ;;  %v4092_v25 = vld [vmem:[%s5559_s1 + $0x9ac] ss:$16 sps:$4 sm:$0xff]  }
 0x116   :  { %2682 = vmatprep.subr.bf16.mxu0 %v4041_v54  ;;  %2969 = vmatprep.subr.bf16.mxu1 %v4044_v55  ;;  %v4087_v14 = vld [vmem:[%s5559_s1 + $0x9a0] ss:$16 sps:$4 sm:$0xff]   ;;  %v4090_v29 = vld [vmem:[%s5559_s1 + $0x9a8] ss:$16 sps:$4 sm:$0xff]   ;;  %v4095_v30 = vld [vmem:[%s5559_s1 + $0x9c4] ss:$16 sps:$4 sm:$0xff]  }
 0x117   :  { %v4098_v15 = vld [vmem:[%s5559_s1 + $0x9cc] ss:$16 sps:$4 sm:$0xff]   ;;  %v4093_v31 = vld [vmem:[%s5559_s1 + $0x9c0] ss:$16 sps:$4 sm:$0xff]   ;;  %v4096_v32 = vld [vmem:[%s5559_s1 + $0x9c8] ss:$16 sps:$4 sm:$0xff]  }
 0x118   :  { %v4101_v26 = vld [vmem:[%s5559_s1 + $0x9e4] ss:$16 sps:$4 sm:$0xff]   ;;  %v4104_v33 = vld [vmem:[%s5559_s1 + $0x9ec] ss:$16 sps:$4 sm:$0xff]   ;;  %v4099_v34 = vld [vmem:[%s5559_s1 + $0x9e0] ss:$16 sps:$4 sm:$0xff]  }
 0x119   :  { %2683 = vmatpush1.bf16.msra.mxu0 %v4039_v56  ;;  %2970 = vmatpush1.bf16.msra.mxu1 %v4042_v57  ;;  %v4102_v35 = vld [vmem:[%s5559_s1 + $0x9e8] ss:$16 sps:$4 sm:$0xff]   ;;  %v4108_v36 = vld [vmem:[%s5559_s1 + $0xa04] ss:$16 sps:$4 sm:$0xff]   ;;  %v4111_v27 = vld [vmem:[%s5559_s1 + $0xa0c] ss:$16 sps:$4 sm:$0xff]  }
 0x11a   :  { %2684 = vmatprep.subr.bf16.mxu0 %v4047_v58  ;;  %2971 = vmatprep.subr.bf16.mxu1 %v4050_v59  ;;  %v4106_v39 = vld [vmem:[%s5559_s1 + $0xa00] ss:$16 sps:$4 sm:$0xff]   ;;  %v4109_v40 = vld [vmem:[%s5559_s1 + $0xa08] ss:$16 sps:$4 sm:$0xff]   ;;  %v4114_v41 = vld [vmem:[%s5559_s1 + $0xa24] ss:$16 sps:$4 sm:$0xff]  }
 0x11b   :  { %v4117_v28 = vld [vmem:[%s5559_s1 + $0xa2c] ss:$16 sps:$4 sm:$0xff]   ;;  %v4112_v44 = vld [vmem:[%s5559_s1 + $0xa20] ss:$16 sps:$4 sm:$0xff]   ;;  %v4115_v45 = vld [vmem:[%s5559_s1 + $0xa28] ss:$16 sps:$4 sm:$0xff]  }
 0x11c   :  { %v4120_v37 = vld [vmem:[%s5559_s1 + $0xa44] ss:$16 sps:$4 sm:$0xff]   ;;  %v4123_v46 = vld [vmem:[%s5559_s1 + $0xa4c] ss:$16 sps:$4 sm:$0xff]   ;;  %v4118_v47 = vld [vmem:[%s5559_s1 + $0xa40] ss:$16 sps:$4 sm:$0xff]  }
 0x11d   :  { %2685 = vmatpush1.bf16.msra.mxu0 %v4045_v60  ;;  %2972 = vmatpush1.bf16.msra.mxu1 %v4048_v61  ;;  %v4121_v48 = vld [vmem:[%s5559_s1 + $0xa48] ss:$16 sps:$4 sm:$0xff]   ;;  %v4126_v49 = vld [vmem:[%s5559_s1 + $0xa64] ss:$16 sps:$4 sm:$0xff]   ;;  %v4129_v51 = vld [vmem:[%s5559_s1 + $0xa6c] ss:$16 sps:$4 sm:$0xff]  }
 0x11e   :  { %2686 = vmatprep.subr.bf16.mxu0 %v4053_v62  ;;  %2973 = vmatprep.subr.bf16.mxu1 %v4056_v63  ;;  %v4124_v52 = vld [vmem:[%s5559_s1 + $0xa60] ss:$16 sps:$4 sm:$0xff]   ;;  %v4127_v54 = vld [vmem:[%s5559_s1 + $0xa68] ss:$16 sps:$4 sm:$0xff]   ;;  %v4132_v55 = vld [vmem:[%s5559_s1 + $0xa84] ss:$16 sps:$4 sm:$0xff]  }
 0x11f   :  { %v4135_v56 = vld [vmem:[%s5559_s1 + $0xa8c] ss:$16 sps:$4 sm:$0xff]   ;;  %v4130_v57 = vld [vmem:[%s5559_s1 + $0xa80] ss:$16 sps:$4 sm:$0xff]   ;;  %v4133_v58 = vld [vmem:[%s5559_s1 + $0xa88] ss:$16 sps:$4 sm:$0xff]  }
 0x120   :  { %v4138_v59 = vld [vmem:[%s5559_s1 + $0xaa4] ss:$16 sps:$4 sm:$0xff]   ;;  %v4141_v60 = vld [vmem:[%s5559_s1 + $0xaac] ss:$16 sps:$4 sm:$0xff]   ;;  %v4136_v61 = vld [vmem:[%s5559_s1 + $0xaa0] ss:$16 sps:$4 sm:$0xff]  }
 0x121   :  { %2687 = vmatpush1.bf16.msra.mxu0 %v4051_v0  ;;  %2974 = vmatpush1.bf16.msra.mxu1 %v4054_v1  ;;  %v4139_v62 = vld [vmem:[%s5559_s1 + $0xaa8] ss:$16 sps:$4 sm:$0xff]   ;;  %v4144_v63 = vld [vmem:[%s5559_s1 + $0xac4] ss:$16 sps:$4 sm:$0xff]   ;;  %v4147_v0 = vld [vmem:[%s5559_s1 + $0xacc] ss:$16 sps:$4 sm:$0xff]  }
 0x122   :  { %2688 = vmatprep.subr.bf16.mxu0 %v4059_v2  ;;  %2975 = vmatprep.subr.bf16.mxu1 %v4062_v3  ;;  %v4142_v1 = vld [vmem:[%s5559_s1 + $0xac0] ss:$16 sps:$4 sm:$0xff]   ;;  %v4145_v2 = vld [vmem:[%s5559_s1 + $0xac8] ss:$16 sps:$4 sm:$0xff]   ;;  %v4150_v3 = vld [vmem:[%s5559_s1 + $0xae4] ss:$16 sps:$4 sm:$0xff]  }
 0x123   :  { %vm2504_vm0 = vcmask 261120   ;;  %vm3135_vm1 = vcmask 1041408  }
 0x125   :  { %2689 = vmatpush1.bf16.msra.mxu0 %v4057_v4  ;;  %2976 = vmatpush1.bf16.msra.mxu1 %v4060_v5  ;;  %v4153_v4 = vld [vmem:[%s5559_s1 + $0xaec] ss:$16 sps:$4 sm:$0xff]   ;;  %v4148_v5 = vld [vmem:[%s5559_s1 + $0xae0] ss:$16 sps:$4 sm:$0xff]  }
 0x126   :  { %2690 = vmatprep.subr.bf16.mxu0 %v4065_v6  ;;  %2977 = vmatprep.subr.bf16.mxu1 %v4068_v7  ;;  %v4151_v6 = vld [vmem:[%s5559_s1 + $0xae8] ss:$16 sps:$4 sm:$0xff]   ;;  %v4156_v7 = vld [vmem:[%s5559_s1 + $0xb04] ss:$16 sps:$4 sm:$0xff]  }
 0x129   :  { %2691 = vmatpush1.bf16.msra.mxu0 %v4063_v8  ;;  %2978 = vmatpush1.bf16.msra.mxu1 %v4066_v9  ;;  %v4159_v8 = vld [vmem:[%s5559_s1 + $0xb0c] ss:$16 sps:$4 sm:$0xff]   ;;  %v4154_v9 = vld [vmem:[%s5559_s1 + $0xb00] ss:$16 sps:$4 sm:$0xff]  }
 0x12a   :  { %2692 = vmatprep.subr.bf16.mxu0 %v4071_v10  ;;  %2979 = vmatprep.subr.bf16.mxu1 %v4074_v11  ;;  %v4157_v10 = vld [vmem:[%s5559_s1 + $0xb08] ss:$16 sps:$4 sm:$0xff]   ;;  %v4162_v11 = vld [vmem:[%s5559_s1 + $0xb24] ss:$16 sps:$4 sm:$0xff]  }
 0x12d   :  { %2693 = vmatpush1.bf16.msra.mxu0 %v4069_v12  ;;  %2980 = vmatpush1.bf16.msra.mxu1 %v4072_v13  ;;  %v4165_v12 = vld [vmem:[%s5559_s1 + $0xb2c] ss:$16 sps:$4 sm:$0xff]   ;;  %v4160_v13 = vld [vmem:[%s5559_s1 + $0xb20] ss:$16 sps:$4 sm:$0xff]  }
 0x12e   :  { %2694 = vmatprep.subr.bf16.mxu0 %v4077_v53  ;;  %2981 = vmatprep.subr.bf16.mxu1 %v4080_v16  ;;  %v4163_v53 = vld [vmem:[%s5559_s1 + $0xb28] ss:$16 sps:$4 sm:$0xff]   ;;  %v4168_v16 = vld [vmem:[%s5559_s1 + $0xb44] ss:$16 sps:$4 sm:$0xff]  }
 0x131   :  { %2695 = vmatpush1.bf16.msra.mxu0 %v4075_v17  ;;  %2982 = vmatpush1.bf16.msra.mxu1 %v4078_v18  ;;  %v4171_v17 = vld [vmem:[%s5559_s1 + $0xb4c] ss:$16 sps:$4 sm:$0xff]   ;;  %v4166_v18 = vld [vmem:[%s5559_s1 + $0xb40] ss:$16 sps:$4 sm:$0xff]  }
 0x132   :  { %2696 = vmatprep.subr.bf16.mxu0 %v4083_v19  ;;  %2983 = vmatprep.subr.bf16.mxu1 %v4086_v20  ;;  %v4169_v19 = vld [vmem:[%s5559_s1 + $0xb48] ss:$16 sps:$4 sm:$0xff]   ;;  %v4174_v20 = vld [vmem:[%s5559_s1 + $0xb64] ss:$16 sps:$4 sm:$0xff]  }
 0x135   :  { %2697 = vmatpush1.bf16.msra.mxu0 %v4081_v21  ;;  %2984 = vmatpush1.bf16.msra.mxu1 %v4084_v23  ;;  %v4177_v21 = vld [vmem:[%s5559_s1 + $0xb6c] ss:$16 sps:$4 sm:$0xff]   ;;  %v4172_v23 = vld [vmem:[%s5559_s1 + $0xb60] ss:$16 sps:$4 sm:$0xff]  }
 0x136   :  { %2698 = vmatprep.subr.bf16.mxu0 %v4089_v24  ;;  %2985 = vmatprep.subr.bf16.mxu1 %v4092_v25  ;;  %v4175_v24 = vld [vmem:[%s5559_s1 + $0xb68] ss:$16 sps:$4 sm:$0xff]   ;;  %v4180_v25 = vld [vmem:[%s5559_s1 + $0xb84] ss:$16 sps:$4 sm:$0xff]  }
 0x139   :  { %2699 = vmatpush1.bf16.msra.mxu0 %v4087_v14  ;;  %2986 = vmatpush1.bf16.msra.mxu1 %v4090_v29  ;;  %v4183_v14 = vld [vmem:[%s5559_s1 + $0xb8c] ss:$16 sps:$4 sm:$0xff]   ;;  %v4178_v29 = vld [vmem:[%s5559_s1 + $0xb80] ss:$16 sps:$4 sm:$0xff]  }
 0x13a   :  { %2700 = vmatprep.subr.bf16.mxu0 %v4095_v30  ;;  %2987 = vmatprep.subr.bf16.mxu1 %v4098_v15  ;;  %v4181_v30 = vld [vmem:[%s5559_s1 + $0xb88] ss:$16 sps:$4 sm:$0xff]   ;;  %v4186_v15 = vld [vmem:[%s5559_s1 + $0xba4] ss:$16 sps:$4 sm:$0xff]  }
 0x13d   :  { %2701 = vmatpush1.bf16.msra.mxu0 %v4093_v31  ;;  %2988 = vmatpush1.bf16.msra.mxu1 %v4096_v32  ;;  %v4189_v31 = vld [vmem:[%s5559_s1 + $0xbac] ss:$16 sps:$4 sm:$0xff]   ;;  %v4184_v32 = vld [vmem:[%s5559_s1 + $0xba0] ss:$16 sps:$4 sm:$0xff]  }
 0x13e   :  { %2702 = vmatprep.subr.bf16.mxu0 %v4101_v26  ;;  %2989 = vmatprep.subr.bf16.mxu1 %v4104_v33  ;;  %v4187_v26 = vld [vmem:[%s5559_s1 + $0xba8] ss:$16 sps:$4 sm:$0xff]   ;;  %v4192_v33 = vld [vmem:[%s5559_s1 + $0xbc4] ss:$16 sps:$4 sm:$0xff]  }
 0x141   :  { %2703 = vmatpush1.bf16.msra.mxu0 %v4099_v34  ;;  %2990 = vmatpush1.bf16.msra.mxu1 %v4102_v35  ;;  %v4195_v34 = vld [vmem:[%s5559_s1 + $0xbcc] ss:$16 sps:$4 sm:$0xff]   ;;  %v4190_v35 = vld [vmem:[%s5559_s1 + $0xbc0] ss:$16 sps:$4 sm:$0xff]  }
 0x142   :  { %2713 = vmatprep.subr.bf16.mxu0 %v4108_v36  ;;  %3000 = vmatprep.subr.bf16.mxu1 %v4111_v27  ;;  %v4193_v36 = vld [vmem:[%s5559_s1 + $0xbc8] ss:$16 sps:$4 sm:$0xff]   ;;  %v4198_v27 = vld [vmem:[%s5559_s1 + $0xbe4] ss:$16 sps:$4 sm:$0xff]  }
 0x144   :  { %2705 = vmatmul.mubr.bf16.vlgmr.msra.gmra.mrb[0].mxu0 %v5306_v38  ;;  %2992 = vmatmul.mubr.bf16.vlgmr.msra.gmra.mrb[0].mxu1 %v5306_v38 }
 0x145   :  { %2714 = vmatpush1.bf16.msra.mxu0 %v4106_v39  ;;  %3001 = vmatpush1.bf16.msra.mxu1 %v4109_v40  ;;  %v4201_v39 = vld [vmem:[%s5559_s1 + $0xbec] ss:$16 sps:$4 sm:$0xff]   ;;  %v4196_v40 = vld [vmem:[%s5559_s1 + $0xbe0] ss:$16 sps:$4 sm:$0xff]  }
 0x146   :  { %2715 = vmatprep.subr.bf16.mxu0 %v4114_v41  ;;  %3002 = vmatprep.subr.bf16.mxu1 %v4117_v28  ;;  %v4199_v41 = vld [vmem:[%s5559_s1 + $0xbe8] ss:$16 sps:$4 sm:$0xff]   ;;  %v4204_v28 = vld [vmem:[%s5559_s1 + $0xc04] ss:$16 sps:$4 sm:$0xff]  }
 0x147   :  { %2745 = vmatprep.mubr.bf16.mxu0 %v531_v42  ;;  %3032 = vmatprep.mubr.bf16.mxu1 %v531_v42  ;;  %v4207_v42 = vld [vmem:[%s5559_s1 + $0xc0c] ss:$16 sps:$4 sm:$0xff]  }
 0x149   :  { %2716 = vmatpush1.bf16.msra.mxu0 %v4112_v44  ;;  %3003 = vmatpush1.bf16.msra.mxu1 %v4115_v45  ;;  %v530_v44 = vcombine.high %v5306_v38, %v5306_v38  ;;  %v4202_v45 = vld [vmem:[%s5559_s1 + $0xc00] ss:$16 sps:$4 sm:$0xff]   ;;  %v4213_v38 = vld [vmem:[%s5559_s1 + $0xc2c] ss:$16 sps:$4 sm:$0xff]  }
 0x14a   :  { %2717 = vmatprep.subr.bf16.mxu0 %v4120_v37  ;;  %3004 = vmatprep.subr.bf16.mxu1 %v4123_v46  ;;  %v4205_v37 = vld [vmem:[%s5559_s1 + $0xc08] ss:$16 sps:$4 sm:$0xff]   ;;  %v4210_v46 = vld [vmem:[%s5559_s1 + $0xc24] ss:$16 sps:$4 sm:$0xff]  }
 0x14d   :  { %2718 = vmatpush1.bf16.msra.mxu0 %v4118_v47  ;;  %3005 = vmatpush1.bf16.msra.mxu1 %v4121_v48  ;;  %v493_v47 = vcombine.high %v5073_v22, %v5073_v22  ;;  %v4208_v48 = vld [vmem:[%s5559_s1 + $0xc20] ss:$16 sps:$4 sm:$0xff]  }
 0x14e   :  { %2719 = vmatprep.subr.bf16.mxu0 %v4126_v49  ;;  %3006 = vmatprep.subr.bf16.mxu1 %v4129_v51  ;;  %v4211_v49 = vld [vmem:[%s5559_s1 + $0xc28] ss:$16 sps:$4 sm:$0xff]   ;;  %v4239_v51 = vmov 0  }
 0x151   :  { %2720 = vmatpush1.bf16.msra.mxu0 %v4124_v52  ;;  %3007 = vmatpush1.bf16.msra.mxu1 %v4127_v54  ;;  %v507_v52 = vrot.slane %v493_v47, %v4415_v50  ;;  %v424_v54 = vsub.s32 0, %v4397_v43 }
 0x152   :  { %2721 = vmatprep.subr.bf16.mxu0 %v4132_v55  ;;  %3008 = vmatprep.subr.bf16.mxu1 %v4135_v56  ;;  %v432_v55 = vsub.s32 2, %v4397_v43  ;;  %v420_v56 = vld [vmem:[%s5560_s2] sm:$0xf]  ;;  %s4241_s2 = smov [#allocation3]  }
 0x153   :  { %v522_v22 = vrot.slane %v507_v52, %v4415_v50  ;;  %v3109_v50 = vld [vmem:[%s5561_s3] sm:$0xf]  ;;  %s3161_s3 = sshll.u32 %s4241_s2, 4  ;;  %s3162_s3 = int_to_ptr.vmem [resolvable:$true] %s3161_s3 }
 0x154   :  { %s4214_s28 = scalar_lea.vmem %s3162_s3, 128  ;;  %p4219_p1 = scmp.lt.s32.totalorder %s3162_s3, %s3162_s3 }
 0x155   :  { %2722 = vmatpush1.bf16.msra.mxu0 %v4130_v57  ;;  %3009 = vmatpush1.bf16.msra.mxu1 %v4133_v58  ;;  %v428_v57 = vsub.s32 1, %v4397_v43  ;;  %v436_v58 = vsub.s32 3, %v4397_v43  ;;  %p4215_p0 = scmp.ne.s32.totalorder %s3162_s3, %s4214_s28  ;;  %p4220_p2 = scmp.lt.s32.totalorder %s4214_s28, %s4214_s28 }
 0x156   :  { %2723 = vmatprep.subr.bf16.mxu0 %v4138_v59  ;;  %3010 = vmatprep.subr.bf16.mxu1 %v4141_v60  ;;  %v4240_v59 = vmov 1983009808  }
 0x157   :  { %v3093_v60 = vunpack.c.l.s4 %v4240_v59  ;;  %p4221_p3 = por %p4220_p2, %p4219_p1 }
 0x159   :  { %2724 = vmatpush1.bf16.msra.mxu0 %v4136_v61  ;;  %3011 = vmatpush1.bf16.msra.mxu1 %v4139_v62  ;;  %v425_v61 = vrot.slane %v420_v56, %v424_v54  ;;  %v433_v62 = vrot.slane %v420_v56, %v432_v55  ;;  %p4222_p4 = pnand %p4221_p3, %p4215_p0 }
 0x15a   :  { %2725 = vmatprep.subr.bf16.mxu0 %v4144_v63  ;;  %3012 = vmatprep.subr.bf16.mxu1 %v4147_v0  ;;  %v429_v63 = vrot.slane %v420_v56, %v428_v57  ;;  %v437_v0 = vrot.slane %v420_v56, %v436_v58 }
 0x15d   :  { %2726 = vmatpush1.bf16.msra.mxu0 %v4142_v1  ;;  %3013 = vmatpush1.bf16.msra.mxu1 %v4145_v2 }
 0x15e   :  { %2727 = vmatprep.subr.bf16.mxu0 %v4150_v3  ;;  %3014 = vmatprep.subr.bf16.mxu1 %v4153_v4  ;;  %v3094_v3 = vunpack.c.0.s8 %v3093_v60 }
 0x161   :  { %2728 = vmatpush1.bf16.msra.mxu0 %v4148_v5  ;;  %3015 = vmatpush1.bf16.msra.mxu1 %v4151_v6  ;;  %v3114_v5 = vrot.slane %v3109_v50, %v424_v54 }
 0x162   :  { %2729 = vmatprep.subr.bf16.mxu0 %v4156_v7  ;;  %3016 = vmatprep.subr.bf16.mxu1 %v4159_v8 }
 0x165   :  { %2730 = vmatpush1.bf16.msra.mxu0 %v4154_v9  ;;  %3017 = vmatpush1.bf16.msra.mxu1 %v4157_v10  ;;  %v3122_v9 = vrot.slane %v3109_v50, %v432_v55 }
 0x166   :  { %2731 = vmatprep.subr.bf16.mxu0 %v4162_v11  ;;  %3018 = vmatprep.subr.bf16.mxu1 %v4165_v12  ;;  %v3118_v11 = vrot.slane %v3109_v50, %v428_v57 }
 0x169   :  { %2732 = vmatpush1.bf16.msra.mxu0 %v4160_v13  ;;  %3019 = vmatpush1.bf16.msra.mxu1 %v4163_v53 }
 0x16a   :  { %2733 = vmatprep.subr.bf16.mxu0 %v4168_v16  ;;  %3020 = vmatprep.subr.bf16.mxu1 %v4171_v17 }
 0x16d   :  { %2734 = vmatpush1.bf16.msra.mxu0 %v4166_v18  ;;  %3021 = vmatpush1.bf16.msra.mxu1 %v4169_v19 }
 0x16e   :  { %2735 = vmatprep.subr.bf16.mxu0 %v4174_v20  ;;  %3022 = vmatprep.subr.bf16.mxu1 %v4177_v21  ;;  %v3126_v20 = vrot.slane %v3109_v50, %v436_v58 }
 0x171   :  { %2736 = vmatpush1.bf16.msra.mxu0 %v4172_v23  ;;  %3023 = vmatpush1.bf16.msra.mxu1 %v4175_v24  ;;  %v3097_v24 = vsub.s32 %v3094_v3, %v4397_v43 }
 0x172   :  { %2737 = vmatprep.subr.bf16.mxu0 %v4180_v25  ;;  %3024 = vmatprep.subr.bf16.mxu1 %v4183_v14 }
 0x175   :  { %2738 = vmatpush1.bf16.msra.mxu0 %v4178_v29  ;;  %3025 = vmatpush1.bf16.msra.mxu1 %v4181_v30 }
 0x176   :  { %2739 = vmatprep.subr.bf16.mxu0 %v4186_v15  ;;  %3026 = vmatprep.subr.bf16.mxu1 %v4189_v31 }
 0x179   :  { %2740 = vmatpush1.bf16.msra.mxu0 %v4184_v32  ;;  %3027 = vmatpush1.bf16.msra.mxu1 %v4187_v26 }
 0x17a   :  { %2741 = vmatprep.subr.bf16.mxu0 %v4192_v33  ;;  %3028 = vmatprep.subr.bf16.mxu1 %v4195_v34 }
 0x17d   :  { %2742 = vmatpush1.bf16.msra.mxu0 %v4190_v35  ;;  %3029 = vmatpush1.bf16.msra.mxu1 %v4193_v36 }
 0x17e   :  { %2743 = vmatprep.subr.bf16.mxu0 %v4198_v27  ;;  %3030 = vmatprep.subr.bf16.mxu1 %v4201_v39 }
 0x181   :  { %2744 = vmatpush1.bf16.msra.mxu0 %v4196_v40  ;;  %3031 = vmatpush1.bf16.msra.mxu1 %v4199_v41 }
 0x182   :  { %2754 = vmatprep.subr.bf16.mxu0 %v4204_v28  ;;  %3041 = vmatprep.subr.bf16.mxu1 %v4207_v42 }
 0x184   :  { %2746 = vmatmul.mubr.bf16.vlgmr.msra.gmra.mrb[0].mxu0 %v530_v44  ;;  %3033 = vmatmul.mubr.bf16.vlgmr.msra.gmra.mrb[0].mxu1 %v530_v44 }
 0x185   :  { %2755 = vmatpush1.bf16.msra.mxu0 %v4202_v45  ;;  %3042 = vmatpush1.bf16.msra.mxu1 %v4205_v37 }
 0x186   :  { %2756 = vmatprep.subr.bf16.mxu0 %v4210_v46  ;;  %3043 = vmatprep.subr.bf16.mxu1 %v4213_v38 }
 0x187   :  { %2786 = vmatprep.mubr.bf16.mxu0 %v4239_v51  ;;  %3073 = vmatprep.mubr.bf16.mxu1 %v4239_v51 }
 0x189   :  { %2757 = vmatpush1.bf16.msra.mxu0 %v4208_v48  ;;  %3044 = vmatpush1.bf16.msra.mxu1 %v4211_v49 }
 0x190   :  { %3565 = vmatmul.mubr.msk.bf16.vlgmr.msra.gmra.mrb[0].mxu0 %vm2504_vm0, %v522_v22  ;;  %3566 = vmatmul.mubr.msk.bf16.vlgmr.msra.gmra.mrb[0].mxu1 %vm2504_vm0, %v522_v22 }
 0x263   :  { %v2788_v1 = vpop.f32.mrb[0].mxu0  ;;  %v3075_v2 = vpop.f32.mrb[0].mxu1 }
 0x264   :  { %v3568_v4 = vadd.f32 %v2788_v1, %v425_v61  ;;  %v3570_v6 = vadd.f32 %v3075_v2, %v433_v62  ;;  %v2790_v7 = vpop.f32.mrb[1].mxu0  ;;  %v3077_v8 = vpop.f32.mrb[1].mxu1 }
 0x265   :  { %v3569_v10 = vadd.f32 %v2790_v7, %v429_v63  ;;  %v3571_v12 = vadd.f32 %v3077_v8, %v437_v0  ;;  %v2792_v13 = vpop.f32.mrb[2].mxu0  ;;  %v3079_v53 = vpop.f32.mrb[2].mxu1 }
 0x266   :  { %v3082_v16 = vmax.f32 %v3568_v4, 0.0  ;;  %v3084_v17 = vmax.f32 %v3570_v6, 0.0  ;;  %v2793_v18 = vpop.f32.mrb[3].mxu0  ;;  %v3080_v19 = vpop.f32.mrb[3].mxu1 }
 0x267   :  { %v3083_v21 = vmax.f32 %v3569_v10, 0.0  ;;  %v3085_v23 = vmax.f32 %v3571_v12, 0.0 }
 0x268   :  { %v3131_v25 = vmul.f32 %v3114_v5, %v3082_v16  ;;  %v3133_v14 = vmul.f32 %v3122_v9, %v3084_v17 }
 0x269   :  { %v3090_v29 = vcombine.low %v3082_v16, %v3083_v21  ;;  %v3132_v30 = vmul.f32 %v3118_v11, %v3083_v21  ;;  %v3091_v15 = vcombine.low %v3084_v17, %v3085_v23  ;;  %v3134_v32 = vmul.f32 %v3126_v20, %v3085_v23 }
 0x26a   :  { %v3136_v31 = vsel %vm3135_vm1, %v3131_v25, 0.0  ;;  %v3139_v36 = vsel %vm3135_vm1, %v3133_v14, 0.0 }
 0x26b   :  { %v3137_v26 = vsel %vm3135_vm1, %v3132_v30, 0.0  ;;  %v3098_v33 = vrot.slane %v3090_v29, %v3097_v24  ;;  %v3105_v34 = vrot.slane %v3091_v15, %v3097_v24  ;;  %v3141_v40 = vsel %vm3135_vm1, %v3134_v32, 0.0 }
 0x26c   :  { %v3138_v35 = vadd.f32 %v3137_v26, %v3136_v31 }
 0x26d   :  { %v3106_v27 = vcombine.low %v3098_v33, %v3105_v34 }
 0x26e   :  { %v3140_v39 = vadd.f32 %v3139_v36, %v3138_v35 }
 0x26f   :  { %3108 = vst [vmem:[#allocation3] sm:$0xff] %v3106_v27 }
 0x270   :  { %v3142_v43 = vadd.f32 %v3141_v40, %v3140_v39 }
 0x272   :  { %3143 = vadd.xlane.f32.xlu0 %v3142_v43 }
 0x273   :  { %4225 = shalt.err (!%p4222_p4)
}
 0x274   :  { %s4226_s4 = scalar_lea.hbm %s5563_s5, 128 }
 0x275   :  { %p4227_p5 = scmp.ne.s32.totalorder %s5563_s5, %s4226_s4  ;;  %p4230_p6 = scmp.lt.u32.totalorder %s4226_s4, %s5563_s5 }
 0x277   :  { %p4232_p7 = pnand %p4230_p6, %p4227_p5 }
 0x279   :  { %4235 = shalt.err (!%p4232_p7)
}
 0x27a   :  { %3164 = dma.vmem_to_hbm [thread:$0]  %s3162_s3, 128, %s5563_s5, [#allocation4]   ;;  %v3567_v41 = vld [vmem:[#allocation2] ss:$0 sm:$0xff]  ;;  %vm3153_vm2 = vcmask 1024  }
 0x2ff   :  { %v3144_v28 = vpop.xlane.xlu0 %3143 }
 0x300   :  { %v3152_v42 = vadd.f32 %v3567_v41, %v3144_v28 }
 0x302   :  { %3154 = vst.msk [vmem:[%s5564_s6] sm:$0x3] %vm3153_vm2, %v3152_v42 }
 0x303   :  { %4236 = dma.done.wait [#allocation4], 128  }
 0x304   :  { %4237 = vsyncadd [#allocation4], 4294967168 }
 0x305   :  { %3172 = vsyncpa [#allocation4], 1 }

</bundles_post_ra>
